<compile_context>
chip_gen: v6e
topology: v6e:2x2x1
jax: 0.10.0
libtpu: 0.0.40
codegen_flags: <defaults>
</compile_context>

<pallas_src>
import numpy as np
import jax
import jax.numpy as jnp
from jax import lax
from jax.experimental import pallas as pl
from jax.experimental.pallas import tpu as pltpu


# ----------------------------------------------------------------------------
# Fused forward kernel (one image per grid step)
# ----------------------------------------------------------------------------
def _cnn_kernel(x_ref, wk1_ref, b1_ref, wk2_ref, b2_ref, w1p_ref, fb1_ref,
                w2p_ref, fb2_ref, out_ref, o1_ref, a2_ref, o2_ref, p2_ref):
    f32 = jnp.float32

    # ---- conv1 + bias + ReLU : (32, 3*32) -> (28, 16*28)  [ho, co*28 + wo] --
    acc = jnp.dot(x_ref[pl.ds(0, 28), :], wk1_ref[0], preferred_element_type=f32)
    for kh in range(1, 5):
        acc = acc + jnp.dot(x_ref[pl.ds(kh, 28), :], wk1_ref[kh],
                            preferred_element_type=f32)
    o1_ref[...] = jnp.maximum(acc + b1_ref[...], 0.0)

    # ---- pool1 (2x2, stride 2) ---------------------------------------------
    # H: explicit row-pair maxes;  W: shift-by-one-lane + max (result valid at
    # even-wo lanes, odd lanes are garbage and get zero weights in conv2).
    hp = jnp.concatenate(
        [jnp.maximum(o1_ref[pl.ds(2 * i, 1), :], o1_ref[pl.ds(2 * i + 1, 1), :])
         for i in range(14)], axis=0)                          # (14, 448)
    hs = jnp.concatenate([hp[:, 1:], hp[:, :1]], axis=1)       # lanes shifted -1
    a2_ref[...] = jnp.maximum(hp, hs).astype(jnp.bfloat16)     # (14, 448) bf16

    # ---- conv2 + bias + ReLU : (14, 16*28) -> (12, 36*12) [ho, co*12 + wo] --
    acc = jnp.dot(a2_ref[pl.ds(0, 12), :], wk2_ref[0], preferred_element_type=f32)
    for kh in range(1, 3):
        acc = acc + jnp.dot(a2_ref[pl.ds(kh, 12), :], wk2_ref[kh],
                            preferred_element_type=f32)
    o2_ref[...] = jnp.maximum(acc + b2_ref[...], 0.0)

    # ---- pool2 (2x2, stride 2) ---------------------------------------------
    hp = jnp.concatenate(
        [jnp.maximum(o2_ref[pl.ds(2 * i, 1), :], o2_ref[pl.ds(2 * i + 1, 1), :])
         for i in range(6)], axis=0)                           # (6, 432)
    hs = jnp.concatenate([hp[:, 1:], hp[:, :1]], axis=1)
    p2_ref[...] = jnp.maximum(hp, hs).astype(jnp.bfloat16)     # (6, 432) bf16

    # ---- fc1 + ReLU : accumulate over the 6 pooled rows ---------------------
    # w1p rows are pre-permuted (and zeroed on stale lanes) so this equals
    # the PyTorch x.view(-1, 1296) @ fc1_w.T.
    acc = jnp.dot(p2_ref[pl.ds(0, 1), :], w1p_ref[0], preferred_element_type=f32)
    for h in range(1, 6):
        acc = acc + jnp.dot(p2_ref[pl.ds(h, 1), :], w1p_ref[h],
                            preferred_element_type=f32)
    h1 = jnp.maximum(acc + fb1_ref[...], 0.0).astype(jnp.bfloat16)  # (1, 128)

    # ---- fc2 + ReLU ----------------------------------------------------------
    y = jnp.dot(h1, w2p_ref[...], preferred_element_type=f32)       # (1, 10)
    out_ref[...] = jnp.maximum(y + fb2_ref[...], 0.0)


# ----------------------------------------------------------------------------
# Init-time weight preprocessing (hoisted out of the per-call path)
# ----------------------------------------------------------------------------
def _banded_conv_weights(w, in_wide, in_stride, out_w):
    """w: (Cout, Cin, K, K) OIHW -> (K, Cin*in_wide, Cout*out_w) banded mats.

    Input lane layout:  ci*in_wide + in_stride*w_pos
    Output lane layout: co*out_w + wo
    """
    Cout, Cin, K, _ = w.shape
    Wk = np.zeros((K, Cin * in_wide, Cout * out_w), np.float32)
    ci_base = np.arange(Cin) * in_wide
    co_base = np.arange(Cout) * out_w
    for kh in range(K):
        for kw in range(K):
            for wo in range(out_w):
                rows = ci_base + in_stride * (wo + kw)
                cols = co_base + wo
                Wk[kh][np.ix_(rows, cols)] = w[:, :, kh, kw].T   # (Cin, Cout)
    return Wk


def prepare_params(params):
    """PyTorch-layout params -> kernel-ready (banded / permuted / bf16) tensors."""
    w1 = np.asarray(params["conv1_w"], np.float32)   # (16, 3, 5, 5)
    b1 = np.asarray(params["conv1_b"], np.float32)   # (16,)
    w2 = np.asarray(params["conv2_w"], np.float32)   # (36, 16, 3, 3)
    b2 = np.asarray(params["conv2_b"], np.float32)   # (36,)
    f1 = np.asarray(params["fc1_w"], np.float32)     # (128, 1296)
    g1 = np.asarray(params["fc1_b"], np.float32)     # (128,)
    f2 = np.asarray(params["fc2_w"], np.float32)     # (10, 128)
    g2 = np.asarray(params["fc2_b"], np.float32)     # (10,)

    # conv1: input (32, 3*32) dense lanes; conv2: input lanes ci*28 + 2*w
    # (even positions of the un-compacted pooled map).
    wk1 = _banded_conv_weights(w1, in_wide=32, in_stride=1, out_w=28)  # (5, 96, 448)
    wk2 = _banded_conv_weights(w2, in_wide=28, in_stride=2, out_w=12)  # (3, 448, 432)

    # fc1: permute the 1296 input rows to match the kernel's pooled layout
    # (lane = c*12 + 2*w per row h); PyTorch flatten index is c*36 + h*6 + w.
    w1p = np.zeros((6, 432, 128), np.float32)
    f1r = f1.reshape(128, 36, 6, 6)                  # [o, c, h, w]
    lanes = np.arange(36) * 12
    for h in range(6):
        for w in range(6):
            w1p[h, lanes + 2 * w, :] = f1r[:, :, h, w].T

    return {
        "wk1": jnp.asarray(wk1, jnp.bfloat16),
        "b1":  jnp.asarray(np.repeat(b1, 28)[None, :], jnp.float32),   # (1, 448)
        "wk2": jnp.asarray(wk2, jnp.bfloat16),
        "b2":  jnp.asarray(np.repeat(b2, 12)[None, :], jnp.float32),   # (1, 432)
        "w1p": jnp.asarray(w1p, jnp.bfloat16),                         # (6, 432, 128)
        "fb1": jnp.asarray(g1[None, :], jnp.float32),                  # (1, 128)
        "w2p": jnp.asarray(f2.T, jnp.bfloat16),                        # (128, 10)
        "fb2": jnp.asarray(g2[None, :], jnp.float32),                  # (1, 10)
    }


# ----------------------------------------------------------------------------
# Forward wrapper (single fused pallas_call)
# ----------------------------------------------------------------------------
@jax.jit
def cnn_forward(prep, x_nchw):
    N = x_nchw.shape[0]
    # NCHW -> (N, H, C*W) lane layout (lane index = c*32 + w), bf16 for the MXU.
    x = jnp.transpose(x_nchw, (0, 2, 1, 3)).reshape(N, 32, 96).astype(jnp.bfloat16)

    out = pl.pallas_call(
        _cnn_kernel,
        out_shape=jax.ShapeDtypeStruct((N, 1, 10), jnp.float32),
        grid=(N,),
        in_specs=[
            pl.BlockSpec((None, 32, 96), lambda n: (n, 0, 0)),     # x (per image)
            pl.BlockSpec((5, 96, 448), lambda n: (0, 0, 0)),       # conv1 banded
            pl.BlockSpec((1, 448), lambda n: (0, 0)),              # conv1 bias row
            pl.BlockSpec((3, 448, 432), lambda n: (0, 0, 0)),      # conv2 banded
            pl.BlockSpec((1, 432), lambda n: (0, 0)),              # conv2 bias row
            pl.BlockSpec((6, 432, 128), lambda n: (0, 0, 0)),      # fc1 (permuted)
            pl.BlockSpec((1, 128), lambda n: (0, 0)),              # fc1 bias
            pl.BlockSpec((128, 10), lambda n: (0, 0)),             # fc2 weight
            pl.BlockSpec((1, 10), lambda n: (0, 0)),               # fc2 bias
        ],
        out_specs=pl.BlockSpec((None, 1, 10), lambda n: (n, 0, 0)),
        scratch_shapes=[
            pltpu.VMEM((28, 448), jnp.float32),    # conv1 out (post ReLU)
            pltpu.VMEM((14, 448), jnp.bfloat16),   # pooled map feeding conv2
            pltpu.VMEM((12, 432), jnp.float32),    # conv2 out (post ReLU)
            pltpu.VMEM((6, 432), jnp.bfloat16),    # pooled map feeding fc1
        ],
        compiler_params=pltpu.CompilerParams(
            dimension_semantics=("parallel",)),
    )(x, prep["wk1"], prep["b1"], prep["wk2"], prep["b2"],
      prep["w1p"], prep["fb1"], prep["w2p"], prep["fb2"])

    return out.reshape(N, 10)


# ----------------------------------------------------------------------------
# Plain-JAX reference (matches the PyTorch module exactly, f32)
# ----------------------------------------------------------------------------
def _conv_ref(x, w, b):
    y = lax.conv_general_dilated(x, w, window_strides=(1, 1), padding="VALID",
                                 dimension_numbers=("NCHW", "OIHW", "NCHW"))
    return y + b[None, :, None, None]


def _maxpool_ref(y):
    return lax.reduce_window(y, -jnp.inf, lax.max,
                             (1, 1, 2, 2), (1, 1, 2, 2), "VALID")


def reference_forward(params, x):
    y = _maxpool_ref(jnp.maximum(_conv_ref(x, params["conv1_w"], params["conv1_b"]), 0.0))
    y = _maxpool_ref(jnp.maximum(_conv_ref(y, params["conv2_w"], params["conv2_b"]), 0.0))
    y = y.reshape(y.shape[0], -1)                                  # NCHW flatten
    y = jnp.maximum(y @ params["fc1_w"].T + params["fc1_b"], 0.0)
    y = jnp.maximum(y @ params["fc2_w"].T + params["fc2_b"], 0.0)
    return y


# ----------------------------------------------------------------------------
# Deterministic parameter init (shapes from CNNNet.__init__)
# ----------------------------------------------------------------------------
def init_params(key):
    def uniform(k, shape, fan_in):
        bound = 1.0 / jnp.sqrt(jnp.float32(fan_in))
        return jax.random.uniform(k, shape, jnp.float32, -bound, bound)

    ks = jax.random.split(key, 8)
    return {
        "conv1_w": uniform(ks[0], (16, 3, 5, 5), 3 * 5 * 5),
        "conv1_b": uniform(ks[1], (16,), 3 * 5 * 5),
        "conv2_w": uniform(ks[2], (36, 16, 3, 3), 16 * 3 * 3),
        "conv2_b": uniform(ks[3], (36,), 16 * 3 * 3),
        "fc1_w":   uniform(ks[4], (128, 1296), 1296),
        "fc1_b":   uniform(ks[5], (128,), 1296),
        "fc2_w":   uniform(ks[6], (10, 128), 128),
        "fc2_b":   uniform(ks[7], (10,), 128),
    }


if __name__ == "__main__":
    key = jax.random.PRNGKey(0)
    pkey, xkey = jax.random.split(key)
    params = init_params(pkey)
    prep = prepare_params(params)

    # Input must be 3x32x32 so the 36*6*6 = 1296 flatten matches fc1; batch=2.
    x = jax.random.normal(xkey, (2, 3, 32, 32), jnp.float32)

    out = jax.block_until_ready(cnn_forward(prep, x))
    ref = jax.block_until_ready(jax.jit(reference_forward)(params, x))

    assert out.shape == (2, 10), out.shape
    assert bool(jnp.all(out >= 0.0))  # final ReLU
    assert np.allclose(np.asarray(out), np.asarray(ref), rtol=5e-2, atol=2e-2), (
        "max abs err = %g" % float(jnp.max(jnp.abs(out - ref))))
    print("KERNEL_OK")
</pallas_src>

<mosaic_0001>
module attributes {stable_mosaic.version = 11 : i64} {
  func.func @_cnn_kernel(%arg0: i32, %arg1: memref<1x32x96xbf16, #tpu.memory_space<vmem>>, %arg2: memref<5x96x448xbf16, #tpu.memory_space<vmem>>, %arg3: memref<1x448xf32, #tpu.memory_space<vmem>>, %arg4: memref<3x448x432xbf16, #tpu.memory_space<vmem>>, %arg5: memref<1x432xf32, #tpu.memory_space<vmem>>, %arg6: memref<6x432x128xbf16, #tpu.memory_space<vmem>>, %arg7: memref<1x128xf32, #tpu.memory_space<vmem>>, %arg8: memref<128x10xbf16, #tpu.memory_space<vmem>>, %arg9: memref<1x10xf32, #tpu.memory_space<vmem>>, %arg10: memref<1x1x10xf32, #tpu.memory_space<vmem>>, %arg11: memref<28x448xf32, #tpu.memory_space<vmem>>, %arg12: memref<14x448xbf16, #tpu.memory_space<vmem>>, %arg13: memref<12x432xf32, #tpu.memory_space<vmem>>, %arg14: memref<6x432xbf16, #tpu.memory_space<vmem>>) attributes {dimension_semantics = [#tpu.dimension_semantics<parallel>], iteration_bounds = array<i64: 2>, scalar_prefetch = 0 : i64, scratch_operands = 4 : i64, tpu.core_type = #tpu.core_type<tc>, window_params = [{transform_indices = @transform_0, window_bounds = array<i64: 1, 32, 96>}, {pipeline_mode = #tpu.pipeline_mode<synchronous>, transform_indices = @transform_1, window_bounds = array<i64: 5, 96, 448>}, {pipeline_mode = #tpu.pipeline_mode<synchronous>, transform_indices = @transform_2, window_bounds = array<i64: 1, 448>}, {pipeline_mode = #tpu.pipeline_mode<synchronous>, transform_indices = @transform_3, window_bounds = array<i64: 3, 448, 432>}, {pipeline_mode = #tpu.pipeline_mode<synchronous>, transform_indices = @transform_4, window_bounds = array<i64: 1, 432>}, {pipeline_mode = #tpu.pipeline_mode<synchronous>, transform_indices = @transform_5, window_bounds = array<i64: 6, 432, 128>}, {pipeline_mode = #tpu.pipeline_mode<synchronous>, transform_indices = @transform_6, window_bounds = array<i64: 1, 128>}, {pipeline_mode = #tpu.pipeline_mode<synchronous>, transform_indices = @transform_7, window_bounds = array<i64: 128, 10>}, {pipeline_mode = #tpu.pipeline_mode<synchronous>, transform_indices = @transform_8, window_bounds = array<i64: 1, 10>}, {transform_indices = @transform_9, window_bounds = array<i64: 1, 1, 10>}]} {
    %c0 = arith.constant 0 : index
    %c0_0 = arith.constant 0 : index
    %c0_1 = arith.constant 0 : index
    %0 = vector.load %arg1[%c0, %c0_0, %c0_1] : memref<1x32x96xbf16, #tpu.memory_space<vmem>>, vector<1x28x96xbf16>
    %1 = vector.shape_cast %0 : vector<1x28x96xbf16> to vector<28x96xbf16>
    %c0_2 = arith.constant 0 : index
    %c0_3 = arith.constant 0 : index
    %c0_4 = arith.constant 0 : index
    %2 = vector.load %arg2[%c0_2, %c0_3, %c0_4] : memref<5x96x448xbf16, #tpu.memory_space<vmem>>, vector<1x96x448xbf16>
    %3 = vector.shape_cast %2 : vector<1x96x448xbf16> to vector<96x448xbf16>
    %cst = arith.constant dense<0.000000e+00> : vector<28x448xf32>
    %4 = tpu.matmul %1, %3, %cst {dimension_numbers = #tpu.dot_dimension_numbers<[1], [0], [0], [1], [0, 0, 1, 1], [], []>} : vector<28x96xbf16>, vector<96x448xbf16>, vector<28x448xf32> -> vector<28x448xf32>
    %c0_5 = arith.constant 0 : index
    %c1 = arith.constant 1 : index
    %c0_6 = arith.constant 0 : index
    %5 = vector.load %arg1[%c0_5, %c1, %c0_6] : memref<1x32x96xbf16, #tpu.memory_space<vmem>>, vector<1x28x96xbf16>
    %6 = vector.shape_cast %5 : vector<1x28x96xbf16> to vector<28x96xbf16>
    %c1_7 = arith.constant 1 : index
    %c0_8 = arith.constant 0 : index
    %c0_9 = arith.constant 0 : index
    %7 = vector.load %arg2[%c1_7, %c0_8, %c0_9] : memref<5x96x448xbf16, #tpu.memory_space<vmem>>, vector<1x96x448xbf16>
    %8 = vector.shape_cast %7 : vector<1x96x448xbf16> to vector<96x448xbf16>
    %cst_10 = arith.constant dense<0.000000e+00> : vector<28x448xf32>
    %9 = tpu.matmul %6, %8, %cst_10 {dimension_numbers = #tpu.dot_dimension_numbers<[1], [0], [0], [1], [0, 0, 1, 1], [], []>} : vector<28x96xbf16>, vector<96x448xbf16>, vector<28x448xf32> -> vector<28x448xf32>
    %10 = arith.addf %4, %9 : vector<28x448xf32>
    %c0_11 = arith.constant 0 : index
    %c2 = arith.constant 2 : index
    %c0_12 = arith.constant 0 : index
    %11 = vector.load %arg1[%c0_11, %c2, %c0_12] : memref<1x32x96xbf16, #tpu.memory_space<vmem>>, vector<1x28x96xbf16>
    %12 = vector.shape_cast %11 : vector<1x28x96xbf16> to vector<28x96xbf16>
    %c2_13 = arith.constant 2 : index
    %c0_14 = arith.constant 0 : index
    %c0_15 = arith.constant 0 : index
    %13 = vector.load %arg2[%c2_13, %c0_14, %c0_15] : memref<5x96x448xbf16, #tpu.memory_space<vmem>>, vector<1x96x448xbf16>
    %14 = vector.shape_cast %13 : vector<1x96x448xbf16> to vector<96x448xbf16>
    %cst_16 = arith.constant dense<0.000000e+00> : vector<28x448xf32>
    %15 = tpu.matmul %12, %14, %cst_16 {dimension_numbers = #tpu.dot_dimension_numbers<[1], [0], [0], [1], [0, 0, 1, 1], [], []>} : vector<28x96xbf16>, vector<96x448xbf16>, vector<28x448xf32> -> vector<28x448xf32>
    %16 = arith.addf %10, %15 : vector<28x448xf32>
    %c0_17 = arith.constant 0 : index
    %c3 = arith.constant 3 : index
    %c0_18 = arith.constant 0 : index
    %17 = vector.load %arg1[%c0_17, %c3, %c0_18] : memref<1x32x96xbf16, #tpu.memory_space<vmem>>, vector<1x28x96xbf16>
    %18 = vector.shape_cast %17 : vector<1x28x96xbf16> to vector<28x96xbf16>
    %c3_19 = arith.constant 3 : index
    %c0_20 = arith.constant 0 : index
    %c0_21 = arith.constant 0 : index
    %19 = vector.load %arg2[%c3_19, %c0_20, %c0_21] : memref<5x96x448xbf16, #tpu.memory_space<vmem>>, vector<1x96x448xbf16>
    %20 = vector.shape_cast %19 : vector<1x96x448xbf16> to vector<96x448xbf16>
    %cst_22 = arith.constant dense<0.000000e+00> : vector<28x448xf32>
    %21 = tpu.matmul %18, %20, %cst_22 {dimension_numbers = #tpu.dot_dimension_numbers<[1], [0], [0], [1], [0, 0, 1, 1], [], []>} : vector<28x96xbf16>, vector<96x448xbf16>, vector<28x448xf32> -> vector<28x448xf32>
    %22 = arith.addf %16, %21 : vector<28x448xf32>
    %c0_23 = arith.constant 0 : index
    %c4 = arith.constant 4 : index
    %c0_24 = arith.constant 0 : index
    %23 = vector.load %arg1[%c0_23, %c4, %c0_24] : memref<1x32x96xbf16, #tpu.memory_space<vmem>>, vector<1x28x96xbf16>
    %24 = vector.shape_cast %23 : vector<1x28x96xbf16> to vector<28x96xbf16>
    %c4_25 = arith.constant 4 : index
    %c0_26 = arith.constant 0 : index
    %c0_27 = arith.constant 0 : index
    %25 = vector.load %arg2[%c4_25, %c0_26, %c0_27] : memref<5x96x448xbf16, #tpu.memory_space<vmem>>, vector<1x96x448xbf16>
    %26 = vector.shape_cast %25 : vector<1x96x448xbf16> to vector<96x448xbf16>
    %cst_28 = arith.constant dense<0.000000e+00> : vector<28x448xf32>
    %27 = tpu.matmul %24, %26, %cst_28 {dimension_numbers = #tpu.dot_dimension_numbers<[1], [0], [0], [1], [0, 0, 1, 1], [], []>} : vector<28x96xbf16>, vector<96x448xbf16>, vector<28x448xf32> -> vector<28x448xf32>
    %28 = arith.addf %22, %27 : vector<28x448xf32>
    %c0_29 = arith.constant 0 : index
    %c0_30 = arith.constant 0 : index
    %29 = vector.load %arg3[%c0_29, %c0_30] : memref<1x448xf32, #tpu.memory_space<vmem>>, vector<1x448xf32>
    %30 = vector.broadcast %29 : vector<1x448xf32> to vector<28x448xf32>
    %31 = arith.addf %28, %30 : vector<28x448xf32>
    %cst_31 = arith.constant 0.000000e+00 : f32
    %32 = vector.broadcast %cst_31 : f32 to vector<28x448xf32>
    %33 = arith.maximumf %31, %32 : vector<28x448xf32>
    %c0_32 = arith.constant 0 : index
    %c0_33 = arith.constant 0 : index
    %34 = vector.load %arg11[%c0_32, %c0_33] : memref<28x448xf32, #tpu.memory_space<vmem>>, vector<28x448xf32>
    tpu.vector_store %arg11[%c0_32, %c0_33], %33 {strides = array<i32>} : memref<28x448xf32, #tpu.memory_space<vmem>>, vector<28x448xf32>,
    %c0_34 = arith.constant 0 : index
    %c0_35 = arith.constant 0 : index
    %35 = vector.load %arg11[%c0_34, %c0_35] : memref<28x448xf32, #tpu.memory_space<vmem>>, vector<1x448xf32>
    %c1_36 = arith.constant 1 : index
    %c0_37 = arith.constant 0 : index
    %36 = vector.load %arg11[%c1_36, %c0_37] : memref<28x448xf32, #tpu.memory_space<vmem>>, vector<1x448xf32>
    %37 = arith.maximumf %35, %36 : vector<1x448xf32>
    %c2_38 = arith.constant 2 : index
    %c0_39 = arith.constant 0 : index
    %38 = vector.load %arg11[%c2_38, %c0_39] : memref<28x448xf32, #tpu.memory_space<vmem>>, vector<1x448xf32>
    %c3_40 = arith.constant 3 : index
    %c0_41 = arith.constant 0 : index
    %39 = vector.load %arg11[%c3_40, %c0_41] : memref<28x448xf32, #tpu.memory_space<vmem>>, vector<1x448xf32>
    %40 = arith.maximumf %38, %39 : vector<1x448xf32>
    %c4_42 = arith.constant 4 : index
    %c0_43 = arith.constant 0 : index
    %41 = vector.load %arg11[%c4_42, %c0_43] : memref<28x448xf32, #tpu.memory_space<vmem>>, vector<1x448xf32>
    %c5 = arith.constant 5 : index
    %c0_44 = arith.constant 0 : index
    %42 = vector.load %arg11[%c5, %c0_44] : memref<28x448xf32, #tpu.memory_space<vmem>>, vector<1x448xf32>
    %43 = arith.maximumf %41, %42 : vector<1x448xf32>
    %c6 = arith.constant 6 : index
    %c0_45 = arith.constant 0 : index
    %44 = vector.load %arg11[%c6, %c0_45] : memref<28x448xf32, #tpu.memory_space<vmem>>, vector<1x448xf32>
    %c7 = arith.constant 7 : index
    %c0_46 = arith.constant 0 : index
    %45 = vector.load %arg11[%c7, %c0_46] : memref<28x448xf32, #tpu.memory_space<vmem>>, vector<1x448xf32>
    %46 = arith.maximumf %44, %45 : vector<1x448xf32>
    %c8 = arith.constant 8 : index
    %c0_47 = arith.constant 0 : index
    %47 = vector.load %arg11[%c8, %c0_47] : memref<28x448xf32, #tpu.memory_space<vmem>>, vector<1x448xf32>
    %c9 = arith.constant 9 : index
    %c0_48 = arith.constant 0 : index
    %48 = vector.load %arg11[%c9, %c0_48] : memref<28x448xf32, #tpu.memory_space<vmem>>, vector<1x448xf32>
    %49 = arith.maximumf %47, %48 : vector<1x448xf32>
    %c10 = arith.constant 10 : index
    %c0_49 = arith.constant 0 : index
    %50 = vector.load %arg11[%c10, %c0_49] : memref<28x448xf32, #tpu.memory_space<vmem>>, vector<1x448xf32>
    %c11 = arith.constant 11 : index
    %c0_50 = arith.constant 0 : index
    %51 = vector.load %arg11[%c11, %c0_50] : memref<28x448xf32, #tpu.memory_space<vmem>>, vector<1x448xf32>
    %52 = arith.maximumf %50, %51 : vector<1x448xf32>
    %c12 = arith.constant 12 : index
    %c0_51 = arith.constant 0 : index
    %53 = vector.load %arg11[%c12, %c0_51] : memref<28x448xf32, #tpu.memory_space<vmem>>, vector<1x448xf32>
    %c13 = arith.constant 13 : index
    %c0_52 = arith.constant 0 : index
    %54 = vector.load %arg11[%c13, %c0_52] : memref<28x448xf32, #tpu.memory_space<vmem>>, vector<1x448xf32>
    %55 = arith.maximumf %53, %54 : vector<1x448xf32>
    %c14 = arith.constant 14 : index
    %c0_53 = arith.constant 0 : index
    %56 = vector.load %arg11[%c14, %c0_53] : memref<28x448xf32, #tpu.memory_space<vmem>>, vector<1x448xf32>
    %c15 = arith.constant 15 : index
    %c0_54 = arith.constant 0 : index
    %57 = vector.load %arg11[%c15, %c0_54] : memref<28x448xf32, #tpu.memory_space<vmem>>, vector<1x448xf32>
    %58 = arith.maximumf %56, %57 : vector<1x448xf32>
    %c16 = arith.constant 16 : index
    %c0_55 = arith.constant 0 : index
    %59 = vector.load %arg11[%c16, %c0_55] : memref<28x448xf32, #tpu.memory_space<vmem>>, vector<1x448xf32>
    %c17 = arith.constant 17 : index
    %c0_56 = arith.constant 0 : index
    %60 = vector.load %arg11[%c17, %c0_56] : memref<28x448xf32, #tpu.memory_space<vmem>>, vector<1x448xf32>
    %61 = arith.maximumf %59, %60 : vector<1x448xf32>
    %c18 = arith.constant 18 : index
    %c0_57 = arith.constant 0 : index
    %62 = vector.load %arg11[%c18, %c0_57] : memref<28x448xf32, #tpu.memory_space<vmem>>, vector<1x448xf32>
    %c19 = arith.constant 19 : index
    %c0_58 = arith.constant 0 : index
    %63 = vector.load %arg11[%c19, %c0_58] : memref<28x448xf32, #tpu.memory_space<vmem>>, vector<1x448xf32>
    %64 = arith.maximumf %62, %63 : vector<1x448xf32>
    %c20 = arith.constant 20 : index
    %c0_59 = arith.constant 0 : index
    %65 = vector.load %arg11[%c20, %c0_59] : memref<28x448xf32, #tpu.memory_space<vmem>>, vector<1x448xf32>
    %c21 = arith.constant 21 : index
    %c0_60 = arith.constant 0 : index
    %66 = vector.load %arg11[%c21, %c0_60] : memref<28x448xf32, #tpu.memory_space<vmem>>, vector<1x448xf32>
    %67 = arith.maximumf %65, %66 : vector<1x448xf32>
    %c22 = arith.constant 22 : index
    %c0_61 = arith.constant 0 : index
    %68 = vector.load %arg11[%c22, %c0_61] : memref<28x448xf32, #tpu.memory_space<vmem>>, vector<1x448xf32>
    %c23 = arith.constant 23 : index
    %c0_62 = arith.constant 0 : index
    %69 = vector.load %arg11[%c23, %c0_62] : memref<28x448xf32, #tpu.memory_space<vmem>>, vector<1x448xf32>
    %70 = arith.maximumf %68, %69 : vector<1x448xf32>
    %c24 = arith.constant 24 : index
    %c0_63 = arith.constant 0 : index
    %71 = vector.load %arg11[%c24, %c0_63] : memref<28x448xf32, #tpu.memory_space<vmem>>, vector<1x448xf32>
    %c25 = arith.constant 25 : index
    %c0_64 = arith.constant 0 : index
    %72 = vector.load %arg11[%c25, %c0_64] : memref<28x448xf32, #tpu.memory_space<vmem>>, vector<1x448xf32>
    %73 = arith.maximumf %71, %72 : vector<1x448xf32>
    %c26 = arith.constant 26 : index
    %c0_65 = arith.constant 0 : index
    %74 = vector.load %arg11[%c26, %c0_65] : memref<28x448xf32, #tpu.memory_space<vmem>>, vector<1x448xf32>
    %c27 = arith.constant 27 : index
    %c0_66 = arith.constant 0 : index
    %75 = vector.load %arg11[%c27, %c0_66] : memref<28x448xf32, #tpu.memory_space<vmem>>, vector<1x448xf32>
    %76 = arith.maximumf %74, %75 : vector<1x448xf32>
    %77 = tpu.concatenate %37, %40, %43, %46, %49, %52, %55, %58, %61, %64, %67, %70, %73, %76 in 0 : vector<1x448xf32>, vector<1x448xf32>, vector<1x448xf32>, vector<1x448xf32>, vector<1x448xf32>, vector<1x448xf32>, vector<1x448xf32>, vector<1x448xf32>, vector<1x448xf32>, vector<1x448xf32>, vector<1x448xf32>, vector<1x448xf32>, vector<1x448xf32>, vector<1x448xf32> -> vector<14x448xf32>
    %78 = vector.extract_strided_slice %77 {offsets = [0, 1], sizes = [14, 447], strides = [1, 1]} : vector<14x448xf32> to vector<14x447xf32>
    %79 = vector.extract_strided_slice %77 {offsets = [0, 0], sizes = [14, 1], strides = [1, 1]} : vector<14x448xf32> to vector<14x1xf32>
    %80 = tpu.concatenate %78, %79 in 1 : vector<14x447xf32>, vector<14x1xf32> -> vector<14x448xf32>
    %81 = arith.maximumf %77, %80 : vector<14x448xf32>
    %82 = arith.truncf %81 : vector<14x448xf32> to vector<14x448xbf16>
    %c0_67 = arith.constant 0 : index
    %c0_68 = arith.constant 0 : index
    %83 = vector.load %arg12[%c0_67, %c0_68] : memref<14x448xbf16, #tpu.memory_space<vmem>>, vector<14x448xbf16>
    tpu.vector_store %arg12[%c0_67, %c0_68], %82 {strides = array<i32>} : memref<14x448xbf16, #tpu.memory_space<vmem>>, vector<14x448xbf16>,
    %c0_69 = arith.constant 0 : index
    %c0_70 = arith.constant 0 : index
    %84 = vector.load %arg12[%c0_69, %c0_70] : memref<14x448xbf16, #tpu.memory_space<vmem>>, vector<12x448xbf16>
    %c0_71 = arith.constant 0 : index
    %c0_72 = arith.constant 0 : index
    %c0_73 = arith.constant 0 : index
    %85 = vector.load %arg4[%c0_71, %c0_72, %c0_73] : memref<3x448x432xbf16, #tpu.memory_space<vmem>>, vector<1x448x432xbf16>
    %86 = vector.shape_cast %85 : vector<1x448x432xbf16> to vector<448x432xbf16>
    %cst_74 = arith.constant dense<0.000000e+00> : vector<12x432xf32>
    %87 = tpu.matmul %84, %86, %cst_74 {dimension_numbers = #tpu.dot_dimension_numbers<[1], [0], [0], [1], [0, 0, 1, 1], [], []>} : vector<12x448xbf16>, vector<448x432xbf16>, vector<12x432xf32> -> vector<12x432xf32>
    %c1_75 = arith.constant 1 : index
    %c0_76 = arith.constant 0 : index
    %88 = vector.load %arg12[%c1_75, %c0_76] : memref<14x448xbf16, #tpu.memory_space<vmem>>, vector<12x448xbf16>
    %c1_77 = arith.constant 1 : index
    %c0_78 = arith.constant 0 : index
    %c0_79 = arith.constant 0 : index
    %89 = vector.load %arg4[%c1_77, %c0_78, %c0_79] : memref<3x448x432xbf16, #tpu.memory_space<vmem>>, vector<1x448x432xbf16>
    %90 = vector.shape_cast %89 : vector<1x448x432xbf16> to vector<448x432xbf16>
    %cst_80 = arith.constant dense<0.000000e+00> : vector<12x432xf32>
    %91 = tpu.matmul %88, %90, %cst_80 {dimension_numbers = #tpu.dot_dimension_numbers<[1], [0], [0], [1], [0, 0, 1, 1], [], []>} : vector<12x448xbf16>, vector<448x432xbf16>, vector<12x432xf32> -> vector<12x432xf32>
    %92 = arith.addf %87, %91 : vector<12x432xf32>
    %c2_81 = arith.constant 2 : index
    %c0_82 = arith.constant 0 : index
    %93 = vector.load %arg12[%c2_81, %c0_82] : memref<14x448xbf16, #tpu.memory_space<vmem>>, vector<12x448xbf16>
    %c2_83 = arith.constant 2 : index
    %c0_84 = arith.constant 0 : index
    %c0_85 = arith.constant 0 : index
    %94 = vector.load %arg4[%c2_83, %c0_84, %c0_85] : memref<3x448x432xbf16, #tpu.memory_space<vmem>>, vector<1x448x432xbf16>
    %95 = vector.shape_cast %94 : vector<1x448x432xbf16> to vector<448x432xbf16>
    %cst_86 = arith.constant dense<0.000000e+00> : vector<12x432xf32>
    %96 = tpu.matmul %93, %95, %cst_86 {dimension_numbers = #tpu.dot_dimension_numbers<[1], [0], [0], [1], [0, 0, 1, 1], [], []>} : vector<12x448xbf16>, vector<448x432xbf16>, vector<12x432xf32> -> vector<12x432xf32>
    %97 = arith.addf %92, %96 : vector<12x432xf32>
    %c0_87 = arith.constant 0 : index
    %c0_88 = arith.constant 0 : index
    %98 = vector.load %arg5[%c0_87, %c0_88] : memref<1x432xf32, #tpu.memory_space<vmem>>, vector<1x432xf32>
    %99 = vector.broadcast %98 : vector<1x432xf32> to vector<12x432xf32>
    %100 = arith.addf %97, %99 : vector<12x432xf32>
    %cst_89 = arith.constant 0.000000e+00 : f32
    %101 = vector.broadcast %cst_89 : f32 to vector<12x432xf32>
    %102 = arith.maximumf %100, %101 : vector<12x432xf32>
    %c0_90 = arith.constant 0 : index
    %c0_91 = arith.constant 0 : index
    %103 = vector.load %arg13[%c0_90, %c0_91] : memref<12x432xf32, #tpu.memory_space<vmem>>, vector<12x432xf32>
    tpu.vector_store %arg13[%c0_90, %c0_91], %102 {strides = array<i32>} : memref<12x432xf32, #tpu.memory_space<vmem>>, vector<12x432xf32>,
    %c0_92 = arith.constant 0 : index
    %c0_93 = arith.constant 0 : index
    %104 = vector.load %arg13[%c0_92, %c0_93] : memref<12x432xf32, #tpu.memory_space<vmem>>, vector<1x432xf32>
    %c1_94 = arith.constant 1 : index
    %c0_95 = arith.constant 0 : index
    %105 = vector.load %arg13[%c1_94, %c0_95] : memref<12x432xf32, #tpu.memory_space<vmem>>, vector<1x432xf32>
    %106 = arith.maximumf %104, %105 : vector<1x432xf32>
    %c2_96 = arith.constant 2 : index
    %c0_97 = arith.constant 0 : index
    %107 = vector.load %arg13[%c2_96, %c0_97] : memref<12x432xf32, #tpu.memory_space<vmem>>, vector<1x432xf32>
    %c3_98 = arith.constant 3 : index
    %c0_99 = arith.constant 0 : index
    %108 = vector.load %arg13[%c3_98, %c0_99] : memref<12x432xf32, #tpu.memory_space<vmem>>, vector<1x432xf32>
    %109 = arith.maximumf %107, %108 : vector<1x432xf32>
    %c4_100 = arith.constant 4 : index
    %c0_101 = arith.constant 0 : index
    %110 = vector.load %arg13[%c4_100, %c0_101] : memref<12x432xf32, #tpu.memory_space<vmem>>, vector<1x432xf32>
    %c5_102 = arith.constant 5 : index
    %c0_103 = arith.constant 0 : index
    %111 = vector.load %arg13[%c5_102, %c0_103] : memref<12x432xf32, #tpu.memory_space<vmem>>, vector<1x432xf32>
    %112 = arith.maximumf %110, %111 : vector<1x432xf32>
    %c6_104 = arith.constant 6 : index
    %c0_105 = arith.constant 0 : index
    %113 = vector.load %arg13[%c6_104, %c0_105] : memref<12x432xf32, #tpu.memory_space<vmem>>, vector<1x432xf32>
    %c7_106 = arith.constant 7 : index
    %c0_107 = arith.constant 0 : index
    %114 = vector.load %arg13[%c7_106, %c0_107] : memref<12x432xf32, #tpu.memory_space<vmem>>, vector<1x432xf32>
    %115 = arith.maximumf %113, %114 : vector<1x432xf32>
    %c8_108 = arith.constant 8 : index
    %c0_109 = arith.constant 0 : index
    %116 = vector.load %arg13[%c8_108, %c0_109] : memref<12x432xf32, #tpu.memory_space<vmem>>, vector<1x432xf32>
    %c9_110 = arith.constant 9 : index
    %c0_111 = arith.constant 0 : index
    %117 = vector.load %arg13[%c9_110, %c0_111] : memref<12x432xf32, #tpu.memory_space<vmem>>, vector<1x432xf32>
    %118 = arith.maximumf %116, %117 : vector<1x432xf32>
    %c10_112 = arith.constant 10 : index
    %c0_113 = arith.constant 0 : index
    %119 = vector.load %arg13[%c10_112, %c0_113] : memref<12x432xf32, #tpu.memory_space<vmem>>, vector<1x432xf32>
    %c11_114 = arith.constant 11 : index
    %c0_115 = arith.constant 0 : index
    %120 = vector.load %arg13[%c11_114, %c0_115] : memref<12x432xf32, #tpu.memory_space<vmem>>, vector<1x432xf32>
    %121 = arith.maximumf %119, %120 : vector<1x432xf32>
    %122 = tpu.concatenate %106, %109, %112, %115, %118, %121 in 0 : vector<1x432xf32>, vector<1x432xf32>, vector<1x432xf32>, vector<1x432xf32>, vector<1x432xf32>, vector<1x432xf32> -> vector<6x432xf32>
    %123 = vector.extract_strided_slice %122 {offsets = [0, 1], sizes = [6, 431], strides = [1, 1]} : vector<6x432xf32> to vector<6x431xf32>
    %124 = vector.extract_strided_slice %122 {offsets = [0, 0], sizes = [6, 1], strides = [1, 1]} : vector<6x432xf32> to vector<6x1xf32>
    %125 = tpu.concatenate %123, %124 in 1 : vector<6x431xf32>, vector<6x1xf32> -> vector<6x432xf32>
    %126 = arith.maximumf %122, %125 : vector<6x432xf32>
    %127 = arith.truncf %126 : vector<6x432xf32> to vector<6x432xbf16>
    %c0_116 = arith.constant 0 : index
    %c0_117 = arith.constant 0 : index
    %128 = vector.load %arg14[%c0_116, %c0_117] : memref<6x432xbf16, #tpu.memory_space<vmem>>, vector<6x432xbf16>
    tpu.vector_store %arg14[%c0_116, %c0_117], %127 {strides = array<i32>} : memref<6x432xbf16, #tpu.memory_space<vmem>>, vector<6x432xbf16>,
    %c0_118 = arith.constant 0 : index
    %c0_119 = arith.constant 0 : index
    %129 = vector.load %arg14[%c0_118, %c0_119] : memref<6x432xbf16, #tpu.memory_space<vmem>>, vector<1x432xbf16>
    %c0_120 = arith.constant 0 : index
    %c0_121 = arith.constant 0 : index
    %c0_122 = arith.constant 0 : index
    %130 = vector.load %arg6[%c0_120, %c0_121, %c0_122] : memref<6x432x128xbf16, #tpu.memory_space<vmem>>, vector<1x432x128xbf16>
    %131 = vector.shape_cast %130 : vector<1x432x128xbf16> to vector<432x128xbf16>
    %cst_123 = arith.constant dense<0.000000e+00> : vector<1x128xf32>
    %132 = tpu.matmul %129, %131, %cst_123 {dimension_numbers = #tpu.dot_dimension_numbers<[1], [0], [0], [1], [0, 0, 1, 1], [], []>} : vector<1x432xbf16>, vector<432x128xbf16>, vector<1x128xf32> -> vector<1x128xf32>
    %c1_124 = arith.constant 1 : index
    %c0_125 = arith.constant 0 : index
    %133 = vector.load %arg14[%c1_124, %c0_125] : memref<6x432xbf16, #tpu.memory_space<vmem>>, vector<1x432xbf16>
    %c1_126 = arith.constant 1 : index
    %c0_127 = arith.constant 0 : index
    %c0_128 = arith.constant 0 : index
    %134 = vector.load %arg6[%c1_126, %c0_127, %c0_128] : memref<6x432x128xbf16, #tpu.memory_space<vmem>>, vector<1x432x128xbf16>
    %135 = vector.shape_cast %134 : vector<1x432x128xbf16> to vector<432x128xbf16>
    %cst_129 = arith.constant dense<0.000000e+00> : vector<1x128xf32>
    %136 = tpu.matmul %133, %135, %cst_129 {dimension_numbers = #tpu.dot_dimension_numbers<[1], [0], [0], [1], [0, 0, 1, 1], [], []>} : vector<1x432xbf16>, vector<432x128xbf16>, vector<1x128xf32> -> vector<1x128xf32>
    %137 = arith.addf %132, %136 : vector<1x128xf32>
    %c2_130 = arith.constant 2 : index
    %c0_131 = arith.constant 0 : index
    %138 = vector.load %arg14[%c2_130, %c0_131] : memref<6x432xbf16, #tpu.memory_space<vmem>>, vector<1x432xbf16>
    %c2_132 = arith.constant 2 : index
    %c0_133 = arith.constant 0 : index
    %c0_134 = arith.constant 0 : index
    %139 = vector.load %arg6[%c2_132, %c0_133, %c0_134] : memref<6x432x128xbf16, #tpu.memory_space<vmem>>, vector<1x432x128xbf16>
    %140 = vector.shape_cast %139 : vector<1x432x128xbf16> to vector<432x128xbf16>
    %cst_135 = arith.constant dense<0.000000e+00> : vector<1x128xf32>
    %141 = tpu.matmul %138, %140, %cst_135 {dimension_numbers = #tpu.dot_dimension_numbers<[1], [0], [0], [1], [0, 0, 1, 1], [], []>} : vector<1x432xbf16>, vector<432x128xbf16>, vector<1x128xf32> -> vector<1x128xf32>
    %142 = arith.addf %137, %141 : vector<1x128xf32>
    %c3_136 = arith.constant 3 : index
    %c0_137 = arith.constant 0 : index
    %143 = vector.load %arg14[%c3_136, %c0_137] : memref<6x432xbf16, #tpu.memory_space<vmem>>, vector<1x432xbf16>
    %c3_138 = arith.constant 3 : index
    %c0_139 = arith.constant 0 : index
    %c0_140 = arith.constant 0 : index
    %144 = vector.load %arg6[%c3_138, %c0_139, %c0_140] : memref<6x432x128xbf16, #tpu.memory_space<vmem>>, vector<1x432x128xbf16>
    %145 = vector.shape_cast %144 : vector<1x432x128xbf16> to vector<432x128xbf16>
    %cst_141 = arith.constant dense<0.000000e+00> : vector<1x128xf32>
    %146 = tpu.matmul %143, %145, %cst_141 {dimension_numbers = #tpu.dot_dimension_numbers<[1], [0], [0], [1], [0, 0, 1, 1], [], []>} : vector<1x432xbf16>, vector<432x128xbf16>, vector<1x128xf32> -> vector<1x128xf32>
    %147 = arith.addf %142, %146 : vector<1x128xf32>
    %c4_142 = arith.constant 4 : index
    %c0_143 = arith.constant 0 : index
    %148 = vector.load %arg14[%c4_142, %c0_143] : memref<6x432xbf16, #tpu.memory_space<vmem>>, vector<1x432xbf16>
    %c4_144 = arith.constant 4 : index
    %c0_145 = arith.constant 0 : index
    %c0_146 = arith.constant 0 : index
    %149 = vector.load %arg6[%c4_144, %c0_145, %c0_146] : memref<6x432x128xbf16, #tpu.memory_space<vmem>>, vector<1x432x128xbf16>
    %150 = vector.shape_cast %149 : vector<1x432x128xbf16> to vector<432x128xbf16>
    %cst_147 = arith.constant dense<0.000000e+00> : vector<1x128xf32>
    %151 = tpu.matmul %148, %150, %cst_147 {dimension_numbers = #tpu.dot_dimension_numbers<[1], [0], [0], [1], [0, 0, 1, 1], [], []>} : vector<1x432xbf16>, vector<432x128xbf16>, vector<1x128xf32> -> vector<1x128xf32>
    %152 = arith.addf %147, %151 : vector<1x128xf32>
    %c5_148 = arith.constant 5 : index
    %c0_149 = arith.constant 0 : index
    %153 = vector.load %arg14[%c5_148, %c0_149] : memref<6x432xbf16, #tpu.memory_space<vmem>>, vector<1x432xbf16>
    %c5_150 = arith.constant 5 : index
    %c0_151 = arith.constant 0 : index
    %c0_152 = arith.constant 0 : index
    %154 = vector.load %arg6[%c5_150, %c0_151, %c0_152] : memref<6x432x128xbf16, #tpu.memory_space<vmem>>, vector<1x432x128xbf16>
    %155 = vector.shape_cast %154 : vector<1x432x128xbf16> to vector<432x128xbf16>
    %cst_153 = arith.constant dense<0.000000e+00> : vector<1x128xf32>
    %156 = tpu.matmul %153, %155, %cst_153 {dimension_numbers = #tpu.dot_dimension_numbers<[1], [0], [0], [1], [0, 0, 1, 1], [], []>} : vector<1x432xbf16>, vector<432x128xbf16>, vector<1x128xf32> -> vector<1x128xf32>
    %157 = arith.addf %152, %156 : vector<1x128xf32>
    %c0_154 = arith.constant 0 : index
    %c0_155 = arith.constant 0 : index
    %158 = vector.load %arg7[%c0_154, %c0_155] : memref<1x128xf32, #tpu.memory_space<vmem>>, vector<1x128xf32>
    %159 = arith.addf %157, %158 : vector<1x128xf32>
    %cst_156 = arith.constant 0.000000e+00 : f32
    %160 = vector.broadcast %cst_156 : f32 to vector<1x128xf32>
    %161 = arith.maximumf %159, %160 : vector<1x128xf32>
    %162 = arith.truncf %161 : vector<1x128xf32> to vector<1x128xbf16>
    %c0_157 = arith.constant 0 : index
    %c0_158 = arith.constant 0 : index
    %163 = vector.load %arg8[%c0_157, %c0_158] : memref<128x10xbf16, #tpu.memory_space<vmem>>, vector<128x10xbf16>
    %cst_159 = arith.constant dense<0.000000e+00> : vector<1x10xf32>
    %164 = tpu.matmul %162, %163, %cst_159 {dimension_numbers = #tpu.dot_dimension_numbers<[1], [0], [0], [1], [0, 0, 1, 1], [], []>} : vector<1x128xbf16>, vector<128x10xbf16>, vector<1x10xf32> -> vector<1x10xf32>
    %c0_160 = arith.constant 0 : index
    %c0_161 = arith.constant 0 : index
    %165 = vector.load %arg9[%c0_160, %c0_161] : memref<1x10xf32, #tpu.memory_space<vmem>>, vector<1x10xf32>
    %166 = arith.addf %164, %165 : vector<1x10xf32>
    %cst_162 = arith.constant 0.000000e+00 : f32
    %167 = vector.broadcast %cst_162 : f32 to vector<1x10xf32>
    %168 = arith.maximumf %166, %167 : vector<1x10xf32>
    %c0_163 = arith.constant 0 : index
    %c0_164 = arith.constant 0 : index
    %c0_165 = arith.constant 0 : index
    %169 = vector.load %arg10[%c0_163, %c0_164, %c0_165] : memref<1x1x10xf32, #tpu.memory_space<vmem>>, vector<1x1x10xf32>
    %170 = vector.shape_cast %169 : vector<1x1x10xf32> to vector<1x10xf32>
    %171 = vector.shape_cast %168 : vector<1x10xf32> to vector<1x1x10xf32>
    tpu.vector_store %arg10[%c0_163, %c0_164, %c0_165], %171 {strides = array<i32>} : memref<1x1x10xf32, #tpu.memory_space<vmem>>, vector<1x1x10xf32>,
    return
  }
  func.func @transform_0(%arg0: i32) -> (i32, i32, i32) {
    %c0_i32 = arith.constant 0 : i32
    %c0_i32_0 = arith.constant 0 : i32
    %c0_i32_1 = arith.constant 0 : i32
    return %arg0, %c0_i32, %c0_i32_0 : i32, i32, i32
  }
  func.func @transform_1(%arg0: i32) -> (i32, i32, i32) {
    %c0_i32 = arith.constant 0 : i32
    %c0_i32_0 = arith.constant 0 : i32
    %c0_i32_1 = arith.constant 0 : i32
    %c0_i32_2 = arith.constant 0 : i32
    return %c0_i32, %c0_i32_0, %c0_i32_1 : i32, i32, i32
  }
  func.func @transform_2(%arg0: i32) -> (i32, i32) {
    %c0_i32 = arith.constant 0 : i32
    %c0_i32_0 = arith.constant 0 : i32
    %c0_i32_1 = arith.constant 0 : i32
    return %c0_i32, %c0_i32_0 : i32, i32
  }
  func.func @transform_3(%arg0: i32) -> (i32, i32, i32) {
    %c0_i32 = arith.constant 0 : i32
    %c0_i32_0 = arith.constant 0 : i32
    %c0_i32_1 = arith.constant 0 : i32
    %c0_i32_2 = arith.constant 0 : i32
    return %c0_i32, %c0_i32_0, %c0_i32_1 : i32, i32, i32
  }
  func.func @transform_4(%arg0: i32) -> (i32, i32) {
    %c0_i32 = arith.constant 0 : i32
    %c0_i32_0 = arith.constant 0 : i32
    %c0_i32_1 = arith.constant 0 : i32
    return %c0_i32, %c0_i32_0 : i32, i32
  }
  func.func @transform_5(%arg0: i32) -> (i32, i32, i32) {
    %c0_i32 = arith.constant 0 : i32
    %c0_i32_0 = arith.constant 0 : i32
    %c0_i32_1 = arith.constant 0 : i32
    %c0_i32_2 = arith.constant 0 : i32
    return %c0_i32, %c0_i32_0, %c0_i32_1 : i32, i32, i32
  }
  func.func @transform_6(%arg0: i32) -> (i32, i32) {
    %c0_i32 = arith.constant 0 : i32
    %c0_i32_0 = arith.constant 0 : i32
    %c0_i32_1 = arith.constant 0 : i32
    return %c0_i32, %c0_i32_0 : i32, i32
  }
  func.func @transform_7(%arg0: i32) -> (i32, i32) {
    %c0_i32 = arith.constant 0 : i32
    %c0_i32_0 = arith.constant 0 : i32
    %c0_i32_1 = arith.constant 0 : i32
    return %c0_i32, %c0_i32_0 : i32, i32
  }
  func.func @transform_8(%arg0: i32) -> (i32, i32) {
    %c0_i32 = arith.constant 0 : i32
    %c0_i32_0 = arith.constant 0 : i32
    %c0_i32_1 = arith.constant 0 : i32
    return %c0_i32, %c0_i32_0 : i32, i32
  }
  func.func @transform_9(%arg0: i32) -> (i32, i32, i32) {
    %c0_i32 = arith.constant 0 : i32
    %c0_i32_0 = arith.constant 0 : i32
    %c0_i32_1 = arith.constant 0 : i32
    return %arg0, %c0_i32, %c0_i32_0 : i32, i32, i32
  }
}

</mosaic_0001>

<bundles_post_ra>
// kernel: cnn_forward.1
= control target key start
LH: loop header
LB: loop body
LE: loop exit
PB: predicated region body
PF: predicated region fallthrough
CT: control target
= control target key end

     0   :  { %14 = vsyncpa [#allocation7], 0  ;;  %s12654_s0 = inlined_call_operand.vmem [shape: bf16[2,32,96], index: 0, kind: input, shape index: {}]   ;;  %s12655_s1 = inlined_call_operand.vmem [shape: bf16[5,96,448], index: 1, kind: input, shape index: {}]   ;;  %s12656_s2 = inlined_call_operand.vmem [shape: f32[1,448], index: 2, kind: input, shape index: {}]   ;;  %s12657_s3 = inlined_call_operand.vmem [shape: bf16[3,448,432], index: 3, kind: input, shape index: {}]   ;;  %s12658_s4 = inlined_call_operand.vmem [shape: f32[1,432], index: 4, kind: input, shape index: {}]   ;;  %s12659_s5 = inlined_call_operand.vmem [shape: bf16[6,432,128], index: 5, kind: input, shape index: {}]   ;;  %s12660_s6 = inlined_call_operand.vmem [shape: f32[1,128], index: 6, kind: input, shape index: {}]   ;;  %s12661_s7 = inlined_call_operand.vmem [shape: bf16[128,10], index: 7, kind: input, shape index: {}]   ;;  %s12662_s8 = inlined_call_operand.vmem [shape: f32[1,10], index: 8, kind: input, shape index: {}]   ;;  %s12663_s9 = inlined_call_operand.hbm [shape: f32[2,1,10], index: 9, kind: output, shape index: {}]  }
   0x1   :  { %16 = vsyncpa [#allocation7 + $0x1], 0  ;;  %s9843_s30 = smov 0   ;;  %s9845_s10 = smov 0  }
   0x2   :  { %s9847_s11 = smov 0   ;;  %s9849_s12 = smov 0  }
   0x3 LB: > { %s9864_s13 = sadd.s32 4294967295, %s9784_s12   ;;  %s7308_s14 = sadd.s32 4294967294, %s9784_s12   ;;  %s9784_s12 = sphi %s9849_s12, %s12696_s12   ;;  %s9780_s11 = sphi %s9847_s11, %s12695_s11   ;;  %s9776_s10 = sphi %s9845_s10, %s12694_s10   ;;  %s9772_s30 = sphi %s9843_s30, %s12693_s30  }
   0x4   : > { %s9868_s15 = sadd.s32 1, %s9784_s12   ;;  %s223_s16 = sadd.s32 1, %s9780_s11 }
   0x5   : > { %s220_s17 = ssub.s32 %s9784_s12, %s9868_s15  ;;  %p233_p0 = scmp.ne.s32.totalorder %s9780_s11, %s9776_s10 }
   0x6   : > { %p221_p1 = scmp.eq.s32.totalorder %s220_s17, 0  ;;  %p234_p2 = scmp.eq.s32.totalorder %s9864_s13, 1 }
   0x7   : > { %p239_p3 = scmp.ne.s32.totalorder %s9776_s10, %s9772_s30  ;;  %p240_p4 = scmp.eq.s32.totalorder %s7308_s14, 1 }
   0x8   : > { %s9879_s18 = scalar_select %p221_p1, %s9780_s11, %s223_s16  }
   0x9   : > { %p9881_p5 = por %p234_p2, %p233_p0  ;;  %p9885_p6 = por %p240_p4, %p239_p3 }
   0xa   : > { %p7311_p7 = scmp.ge.s32.totalorder %s9784_s12, 1  ;;  %p290_p8 = scmp.lt.s32.totalorder %s9784_s12, 3 }
   0xc   : > { %p291_p9 = pnand %p7311_p7, %p290_p8 }
   0xe   : > { %294 = sbr.rel (%p291_p9) target bundleno = 1804 (0x70c), region = 56 }
  0x13   : > { %v8844_v0 = vld [vmem:[%s12655_s1 + $0x164] ss:$16 sps:$4 sm:$0xff]   ;;  %v8846_v1 = vld [vmem:[%s12655_s1 + $0x16c] ss:$16 sps:$4 sm:$0xff]   ;;  %v12664_v2 = vmov 0   ;;  %p325_p10 = scmp.lt.s32.totalorder %s9864_s13, 1 }
  0x14   : > { %570 = vmatprep.mubr.bf16.mxu0 %v12664_v2  ;;  %623 = vmatprep.mubr.bf16.mxu1 %v12664_v2  ;;  %v8848_v3 = vld [vmem:[%s12655_s1 + $0x160] ss:$16 sps:$4 sm:$0xff]   ;;  %v8849_v4 = vld [vmem:[%s12655_s1 + $0x168] ss:$16 sps:$4 sm:$0xff]   ;;  %v8850_v5 = vld [vmem:[%s12655_s1 + $0x144] ss:$16 sps:$4 sm:$0xff]  }
  0x15   : > { %542 = vmatprep.subr.bf16.mxu0 %v8844_v0  ;;  %595 = vmatprep.subr.bf16.mxu1 %v8846_v1  ;;  %v8852_v6 = vld [vmem:[%s12655_s1 + $0x14c] ss:$16 sps:$4 sm:$0xff]   ;;  %v8854_v7 = vld [vmem:[%s12655_s1 + $0x140] ss:$16 sps:$4 sm:$0xff]   ;;  %v8855_v8 = vld [vmem:[%s12655_s1 + $0x148] ss:$16 sps:$4 sm:$0xff]  }
  0x16   : > { %543 = vmatpush1.bf16.msra.mxu0 %v8848_v3  ;;  %596 = vmatpush1.bf16.msra.mxu1 %v8849_v4  ;;  %v8856_v9 = vld [vmem:[%s12655_s1 + $0x124] ss:$16 sps:$4 sm:$0xff]   ;;  %s326_s27 = scalar_select %p325_p10, %s9864_s13, 1  ;;  %v8858_v10 = vld [vmem:[%s12655_s1 + $0x12c] ss:$16 sps:$4 sm:$0xff]   ;;  %vm531_vm1 = vcmask 785408  }
  0x17   : > { %544 = vmatprep.subr.bf16.mxu0 %v8850_v5  ;;  %597 = vmatprep.subr.bf16.mxu1 %v8852_v6  ;;  %v8860_v11 = vld [vmem:[%s12655_s1 + $0x120] ss:$16 sps:$4 sm:$0xff]   ;;  %v8861_v12 = vld [vmem:[%s12655_s1 + $0x128] ss:$16 sps:$4 sm:$0xff]   ;;  %v8862_v13 = vld [vmem:[%s12655_s1 + $0x104] ss:$16 sps:$4 sm:$0xff]  }
  0x18   : > { %v8864_v14 = vld [vmem:[%s12655_s1 + $0x10c] ss:$16 sps:$4 sm:$0xff]   ;;  %s8601_s26 = sshll.u32 %s326_s27, 4  ;;  %v8866_v15 = vld [vmem:[%s12655_s1 + $0x100] ss:$16 sps:$4 sm:$0xff]   ;;  %vm907_vm2 = vcmask 1046528  }
  0x19   : > { %v8867_v16 = vld [vmem:[%s12655_s1 + $0x108] ss:$16 sps:$4 sm:$0xff]   ;;  %v8868_v17 = vld [vmem:[%s12655_s1 + $0xe4] ss:$16 sps:$4 sm:$0xff]   ;;  %v8870_v18 = vld [vmem:[%s12655_s1 + $0xec] ss:$16 sps:$4 sm:$0xff]   ;;  %s9952_s25 = scalar_lea.vmem %s12654_s0, %s8601_s26 }
  0x1a   : > { %545 = vmatpush1.bf16.msra.mxu0 %v8854_v7  ;;  %598 = vmatpush1.bf16.msra.mxu1 %v8855_v8  ;;  %v8872_v19 = vld [vmem:[%s12655_s1 + $0xe0] ss:$16 sps:$4 sm:$0xff]   ;;  %v8873_v20 = vld [vmem:[%s12655_s1 + $0xe8] ss:$16 sps:$4 sm:$0xff]   ;;  %v8874_v21 = vld [vmem:[%s12655_s1 + $0xc4] ss:$16 sps:$4 sm:$0xff]  }
  0x1b   : > { %546 = vmatprep.subr.bf16.mxu0 %v8856_v9  ;;  %599 = vmatprep.subr.bf16.mxu1 %v8858_v10  ;;  %v331_v22 = vld [vmem:[%s9952_s25] sm:$0xf]  ;;  %v9965_v23 = vld [vmem:[%s9952_s25 + $0x4] sm:$0xf]  ;;  %v9968_v24 = vld [vmem:[%s9952_s25 + $0x8] sm:$0xf] }
  0x1c   : > { %v8876_v25 = vld [vmem:[%s12655_s1 + $0xcc] ss:$16 sps:$4 sm:$0xff]   ;;  %v9975_v27 = vcombine.low %v331_v22, %v9965_v23  ;;  %v8878_v29 = vld [vmem:[%s12655_s1 + $0xc0] ss:$16 sps:$4 sm:$0xff]   ;;  %v8879_v32 = vld [vmem:[%s12655_s1 + $0xc8] ss:$16 sps:$4 sm:$0xff]  }
  0x1d   : > { %v359_v26 = vld [vmem:[%s9952_s25 + $0xc] sm:$0x7]  ;;  %v8885_v35 = vld [vmem:[%s12655_s1 + $0xa4] ss:$16 sps:$4 sm:$0xff]   ;;  %vm395_vm0 = vsmask.f32 7424 }
  0x1e   : > { %547 = vmatpush1.bf16.msra.mxu0 %v8860_v11  ;;  %600 = vmatpush1.bf16.msra.mxu1 %v8861_v12  ;;  %v9978_v28 = vcombine.low %v9968_v24, %v359_v26  ;;  %v397_v30 = vshrl.u32 %v9975_v27, 16  ;;  %v399_v31 = vshll.u32 %v9975_v27, 16  ;;  %v8888_v36 = vld [vmem:[%s12655_s1 + $0xac] ss:$16 sps:$4 sm:$0xff]   ;;  %v8883_v39 = vld [vmem:[%s12655_s1 + $0xa0] ss:$16 sps:$4 sm:$0xff]  }
  0x1f   : > { %548 = vmatprep.subr.bf16.mxu0 %v8862_v13  ;;  %601 = vmatprep.subr.bf16.mxu1 %v8864_v14  ;;  %v8886_v40 = vld [vmem:[%s12655_s1 + $0xa8] ss:$16 sps:$4 sm:$0xff]   ;;  %v8891_v42 = vld [vmem:[%s12655_s1 + $0x84] ss:$16 sps:$4 sm:$0xff]   ;;  %v8894_v43 = vld [vmem:[%s12655_s1 + $0x8c] ss:$16 sps:$4 sm:$0xff]  }
  0x20   : > { %v404_v33 = vshll.u32 %v9978_v28, 16  ;;  %v401_v34 = vrot.slane %v399_v31, 1  ;;  %v8889_v44 = vld [vmem:[%s12655_s1 + $0x80] ss:$16 sps:$4 sm:$0xff]   ;;  %v408_v45 = vshrl.u32 %v9978_v28, 16  ;;  %v909_v31 = vrot.slane %v9978_v28, 1 }
  0x21   : > { %v8892_v46 = vld [vmem:[%s12655_s1 + $0x88] ss:$16 sps:$4 sm:$0xff]   ;;  %v8897_v47 = vld [vmem:[%s12655_s1 + $0x64] ss:$16 sps:$4 sm:$0xff]   ;;  %v8900_v48 = vld [vmem:[%s12655_s1 + $0x6c] ss:$16 sps:$4 sm:$0xff]  }
  0x22   : > { %549 = vmatpush1.bf16.msra.mxu0 %v8866_v15  ;;  %602 = vmatpush1.bf16.msra.mxu1 %v8867_v16  ;;  %v406_v37 = vrot.slane %v404_v33, 1  ;;  %v402_v38 = vor.u32 %v401_v34, %v397_v30  ;;  %v8895_v49 = vld [vmem:[%s12655_s1 + $0x60] ss:$16 sps:$4 sm:$0xff]   ;;  %v8898_v51 = vld [vmem:[%s12655_s1 + $0x68] ss:$16 sps:$4 sm:$0xff]   ;;  %vm1483_vm4 = vcmask 1045504  }
  0x23   : > { %550 = vmatprep.subr.bf16.mxu0 %v8868_v17  ;;  %603 = vmatprep.subr.bf16.mxu1 %v8870_v18  ;;  %v8903_v52 = vld [vmem:[%s12655_s1 + $0x44] ss:$16 sps:$4 sm:$0xff]   ;;  %v8906_v53 = vld [vmem:[%s12655_s1 + $0x4c] ss:$16 sps:$4 sm:$0xff]   ;;  %v8901_v54 = vld [vmem:[%s12655_s1 + $0x40] ss:$16 sps:$4 sm:$0xff]  }
  0x24   : > { %v407_v41 = vsel %vm395_vm0, %v402_v38, %v406_v37  ;;  %v410_v50 = vor.u32 %v408_v45, %v406_v37  ;;  %v8904_v55 = vld [vmem:[%s12655_s1 + $0x48] ss:$16 sps:$4 sm:$0xff]   ;;  %v8909_v56 = vld [vmem:[%s12655_s1 + $0x24] ss:$16 sps:$4 sm:$0xff]   ;;  %v8912_v57 = vld [vmem:[%s12655_s1 + $0x2c] ss:$16 sps:$4 sm:$0xff]  }
  0x25   : > { %v8907_v58 = vld [vmem:[%s12655_s1 + $0x20] ss:$16 sps:$4 sm:$0xff]   ;;  %v8910_v59 = vld [vmem:[%s12655_s1 + $0x28] ss:$16 sps:$4 sm:$0xff]   ;;  %v8915_v60 = vld [vmem:[%s12655_s1 + $0x4] ss:$16 sps:$4 sm:$0xff]  }
  0x26   : > { %551 = vmatpush1.bf16.msra.mxu0 %v8872_v19  ;;  %604 = vmatpush1.bf16.msra.mxu1 %v8873_v20  ;;  %v8918_v61 = vld [vmem:[%s12655_s1 + $0xc] ss:$16 sps:$4 sm:$0xff]   ;;  %v8913_v62 = vld [vmem:[%s12655_s1] ss:$16 sps:$4 sm:$0xff]   ;;  %v8916_v63 = vld [vmem:[%s12655_s1 + $0x8] ss:$16 sps:$4 sm:$0xff]  }
  0x27   : > { %552 = vmatprep.subr.bf16.mxu0 %v8874_v21  ;;  %605 = vmatprep.subr.bf16.mxu1 %v8876_v25  ;;  %v8921_v0 = vld [vmem:[%s12655_s1 + $0x224] ss:$16 sps:$4 sm:$0xff]   ;;  %v8924_v1 = vld [vmem:[%s12655_s1 + $0x22c] ss:$16 sps:$4 sm:$0xff]   ;;  %v8919_v3 = vld [vmem:[%s12655_s1 + $0x220] ss:$16 sps:$4 sm:$0xff]  }
  0x28   : > { %v8922_v4 = vld [vmem:[%s12655_s1 + $0x228] ss:$16 sps:$4 sm:$0xff]   ;;  %v8927_v5 = vld [vmem:[%s12655_s1 + $0x204] ss:$16 sps:$4 sm:$0xff]   ;;  %v8930_v6 = vld [vmem:[%s12655_s1 + $0x20c] ss:$16 sps:$4 sm:$0xff]  }
  0x29   : > { %v8925_v7 = vld [vmem:[%s12655_s1 + $0x200] ss:$16 sps:$4 sm:$0xff]   ;;  %v8928_v8 = vld [vmem:[%s12655_s1 + $0x208] ss:$16 sps:$4 sm:$0xff]   ;;  %v334_v9 = vld [vmem:[%s9952_s25 + $0xc] sm:$0x3] }
  0x2a   : > { %553 = vmatpush1.bf16.msra.mxu0 %v8878_v29  ;;  %606 = vmatpush1.bf16.msra.mxu1 %v8879_v32  ;;  %v8934_v10 = vld [vmem:[%s12655_s1 + $0x1e4] ss:$16 sps:$4 sm:$0xff]   ;;  %v8937_v11 = vld [vmem:[%s12655_s1 + $0x1ec] ss:$16 sps:$4 sm:$0xff]   ;;  %v7368_v12 = vcombine.low %v9968_v24, %v334_v9  ;;  %v8932_v13 = vld [vmem:[%s12655_s1 + $0x1e0] ss:$16 sps:$4 sm:$0xff]  }
  0x2b   : > { %776 = vmatprep.subr.bf16.mxu0 %v8885_v35  ;;  %829 = vmatprep.subr.bf16.mxu1 %v8888_v36  ;;  %v8935_v14 = vld [vmem:[%s12655_s1 + $0x1e8] ss:$16 sps:$4 sm:$0xff]   ;;  %v8940_v15 = vld [vmem:[%s12655_s1 + $0x1c4] ss:$16 sps:$4 sm:$0xff]   ;;  %v8943_v16 = vld [vmem:[%s12655_s1 + $0x1cc] ss:$16 sps:$4 sm:$0xff]  }
  0x2c   : > { %v8938_v17 = vld [vmem:[%s12655_s1 + $0x1c0] ss:$16 sps:$4 sm:$0xff]   ;;  %v8941_v18 = vld [vmem:[%s12655_s1 + $0x1c8] ss:$16 sps:$4 sm:$0xff]   ;;  %v8946_v19 = vld [vmem:[%s12655_s1 + $0x1a4] ss:$16 sps:$4 sm:$0xff]  }
  0x2d   : > { %7364 = vmatmul.mubr.msk.bf16.vlgmr.msra.gmra.mxu0 %vm531_vm1, %v407_v41  ;;  %7366 = vmatmul.mubr.msk.bf16.vlgmr.msra.gmra.mxu1 %vm531_vm1, %v407_v41  ;;  %v8949_v20 = vld [vmem:[%s12655_s1 + $0x1ac] ss:$16 sps:$4 sm:$0xff]   ;;  %v878_v21 = vld [vmem:[%s9952_s25] sm:$0xe]  ;;  %v8947_v25 = vld [vmem:[%s12655_s1 + $0x1a8] ss:$16 sps:$4 sm:$0xff]  }
  0x2e   : > { %777 = vmatpush1.bf16.msra.mxu0 %v8883_v39  ;;  %830 = vmatpush1.bf16.msra.mxu1 %v8886_v40  ;;  %v8944_v22 = vld [vmem:[%s12655_s1 + $0x1a0] ss:$16 sps:$4 sm:$0xff]   ;;  %v8952_v26 = vld [vmem:[%s12655_s1 + $0x184] ss:$16 sps:$4 sm:$0xff]   ;;  %v8955_v29 = vld [vmem:[%s12655_s1 + $0x18c] ss:$16 sps:$4 sm:$0xff]  }
  0x2f   : > { %778 = vmatprep.subr.bf16.mxu0 %v8891_v42  ;;  %831 = vmatprep.subr.bf16.mxu1 %v8894_v43  ;;  %v8950_v30 = vld [vmem:[%s12655_s1 + $0x180] ss:$16 sps:$4 sm:$0xff]   ;;  %v8953_v32 = vld [vmem:[%s12655_s1 + $0x188] ss:$16 sps:$4 sm:$0xff]   ;;  %v8959_v34 = vld [vmem:[%s12655_s1 + $0x2e4] ss:$16 sps:$4 sm:$0xff]  }
  0x30   : > { %580 = vmatprep.mubr.bf16.mxu0 %v12664_v2  ;;  %633 = vmatprep.mubr.bf16.mxu1 %v12664_v2  ;;  %v8962_v28 = vld [vmem:[%s12655_s1 + $0x2ec] ss:$16 sps:$4 sm:$0xff]   ;;  %v8957_v35 = vld [vmem:[%s12655_s1 + $0x2e0] ss:$16 sps:$4 sm:$0xff]   ;;  %v8960_v37 = vld [vmem:[%s12655_s1 + $0x2e8] ss:$16 sps:$4 sm:$0xff]  }
  0x31   : > { %v8965_v38 = vld [vmem:[%s12655_s1 + $0x2c4] ss:$16 sps:$4 sm:$0xff]   ;;  %v8968_v39 = vld [vmem:[%s12655_s1 + $0x2cc] ss:$16 sps:$4 sm:$0xff]   ;;  %v8963_v41 = vld [vmem:[%s12655_s1 + $0x2c0] ss:$16 sps:$4 sm:$0xff]  }
  0x32   : > { %779 = vmatpush1.bf16.msra.mxu0 %v8889_v44  ;;  %832 = vmatpush1.bf16.msra.mxu1 %v8892_v46  ;;  %v1159_v40 = vld [vmem:[%s9952_s25 + $0xc] sm:$0xf]  ;;  %v8966_v42 = vld [vmem:[%s12655_s1 + $0x2c8] ss:$16 sps:$4 sm:$0xff]   ;;  %v8971_v43 = vld [vmem:[%s12655_s1 + $0x2a4] ss:$16 sps:$4 sm:$0xff]  }
  0x33   : > { %780 = vmatprep.subr.bf16.mxu0 %v8897_v47  ;;  %833 = vmatprep.subr.bf16.mxu1 %v8900_v48  ;;  %v8974_v44 = vld [vmem:[%s12655_s1 + $0x2ac] ss:$16 sps:$4 sm:$0xff]   ;;  %v10197_v45 = vcombine.low %v9968_v24, %v1159_v40  ;;  %v8969_v46 = vld [vmem:[%s12655_s1 + $0x2a0] ss:$16 sps:$4 sm:$0xff]   ;;  %v8972_v47 = vld [vmem:[%s12655_s1 + $0x2a8] ss:$16 sps:$4 sm:$0xff]  }
  0x34   : > { %v8977_v48 = vld [vmem:[%s12655_s1 + $0x284] ss:$16 sps:$4 sm:$0xff]   ;;  %v8980_v24 = vld [vmem:[%s12655_s1 + $0x28c] ss:$16 sps:$4 sm:$0xff]   ;;  %vm1188_vm3 = vsmask.f32 6400 }
  0x35   : > { %7365 = vmatmul.mubr.msk.bf16.gmra.mxu0 %vm531_vm1, %v410_v50  ;;  %7367 = vmatmul.mubr.msk.bf16.gmra.mxu1 %vm531_vm1, %v410_v50  ;;  %v8978_v50 = vld [vmem:[%s12655_s1 + $0x288] ss:$16 sps:$4 sm:$0xff]   ;;  %vm1792_vm5 = vcmask 523264   ;;  %vm1805_vm6 = vcmask 519168   ;;  %vm2170_vm7 = vcmask 1040384   ;;  %vm2175_vm8 = vcmask 1041408  }
  0x36   : > { %781 = vmatpush1.bf16.msra.mxu0 %v8895_v49  ;;  %834 = vmatpush1.bf16.msra.mxu1 %v8898_v51  ;;  %v8975_v49 = vld [vmem:[%s12655_s1 + $0x280] ss:$16 sps:$4 sm:$0xff]   ;;  %v8983_v51 = vld [vmem:[%s12655_s1 + $0x264] ss:$16 sps:$4 sm:$0xff]   ;;  %v8996_v9 = vld [vmem:[%s12655_s1 + $0x3a8] ss:$16 sps:$4 sm:$0xff]  }
  0x37   : > { %782 = vmatprep.subr.bf16.mxu0 %v8903_v52  ;;  %835 = vmatprep.subr.bf16.mxu1 %v8906_v53  ;;  %v8986_v52 = vld [vmem:[%s12655_s1 + $0x26c] ss:$16 sps:$4 sm:$0xff]   ;;  %v1198_v53 = vshrl.u32 %v10197_v45, 16  ;;  %vm2180_vm9 = vcmask 1042432   ;;  %vm2185_vm10 = vcmask 1043456   ;;  %vm2190_vm11 = vcmask 1044480  }
  0x38   : > { %804 = vmatprep.mubr.bf16.mxu0 %v12664_v2  ;;  %857 = vmatprep.mubr.bf16.mxu1 %v12664_v2  ;;  %s9787_s21 = smov 127   ;;  %s9788_s29 = smov 63   ;;  %vm2249_vm12 = vcmask 1039360   ;;  %vm2270_vm13 = vcmask 515072   ;;  %vm2306_vm14 = vcmask 523268   ;;  %vm2310_vm15 = vcmask 522244  }
  0x39   : > { %vm2307_vm0 = vmor %vm2306_vm14, %vm2185_vm10  ;;  %s9789_s28 = smov 47   ;;  %s323_s26 = sand.u32 1, %s9776_s10  }
  0x3a   : > { %783 = vmatpush1.bf16.msra.mxu0 %v8901_v54  ;;  %836 = vmatpush1.bf16.msra.mxu1 %v8904_v55  ;;  %s8598_s27 = sshll.u32 %s9864_s13, 4  ;;  %s324_s24 = scalar_lea.vmem [#allocation6], %s323_s26 }
  0x3b   : > { %784 = vmatprep.subr.bf16.mxu0 %v8909_v56  ;;  %837 = vmatprep.subr.bf16.mxu1 %v8912_v57  ;;  %v1201_v56 = vshll.u32 %v10197_v45, 16  ;;  %v8981_v57 = vld [vmem:[%s12655_s1 + $0x260] ss:$16 sps:$4 sm:$0xff]   ;;  %s12613_s14 = scalar_lea.hbm %s12663_s9, %s8598_s27  ;;  %s7241_s13 = scalar_lea.sflag [#allocation7], %s323_s26 }
  0x3c   : > { %s9792_s16 = smov [#allocation6]  }
  0x3d   : > { %s9728_s17 = sshll.u32 %s9792_s16, 4  ;;  %s9729_s17 = int_to_ptr.vmem [resolvable:$false] %s9728_s17 }
  0x3e   : > { %785 = vmatpush1.bf16.msra.mxu0 %v8907_v58  ;;  %838 = vmatpush1.bf16.msra.mxu1 %v8910_v59  ;;  %v8984_v58 = vld [vmem:[%s12655_s1 + $0x268] ss:$16 sps:$4 sm:$0xff]   ;;  %v8989_v59 = vld [vmem:[%s12655_s1 + $0x244] ss:$16 sps:$4 sm:$0xff]   ;;  %s9730_s22 = scalar_lea.vmem %s9729_s17, 32 }
  0x3f   : > { %786 = vmatprep.subr.bf16.mxu0 %v8915_v60  ;;  %839 = vmatprep.subr.bf16.mxu1 %v8918_v61  ;;  %v8992_v60 = vld [vmem:[%s12655_s1 + $0x24c] ss:$16 sps:$4 sm:$0xff]   ;;  %v1200_v61 = vrot.slane %v1198_v53, 1 }
  0x42   : > { %787 = vmatpush1.bf16.msra.mxu0 %v8913_v62  ;;  %840 = vmatpush1.bf16.msra.mxu1 %v8916_v63 }
  0x43   : > { %1041 = vmatprep.subr.bf16.mxu0 %v8921_v0  ;;  %1094 = vmatprep.subr.bf16.mxu1 %v8924_v1  ;;  %v1203_v0 = vrot.slane %v1201_v56, 2  ;;  %v8987_v1 = vld [vmem:[%s12655_s1 + $0x240] ss:$16 sps:$4 sm:$0xff]   ;;  %v9032_v56 = vld [vmem:[%s12657_s3 + $0x464] ss:$16 sps:$4 sm:$0xff]  }
  0x45   : > { %7393 = vmatmul.mubr.msk.bf16.vlgmr.msra.gmra.mxu0 %vm531_vm1, %v9975_v27  ;;  %7395 = vmatmul.mubr.msk.bf16.vlgmr.msra.gmra.mxu1 %vm531_vm1, %v9975_v27  ;;  %v10147_v27 = vcombine.low %v878_v21, %v9965_v23  ;;  %v9011_v21 = vld [vmem:[%s12655_s1 + $0x340] ss:$16 sps:$4 sm:$0xff]  }
  0x46   : > { %1042 = vmatpush1.bf16.msra.mxu0 %v8919_v3  ;;  %1095 = vmatpush1.bf16.msra.mxu1 %v8922_v4  ;;  %v8990_v3 = vld [vmem:[%s12655_s1 + $0x248] ss:$16 sps:$4 sm:$0xff]   ;;  %v8995_v4 = vld [vmem:[%s12655_s1 + $0x3a4] ss:$16 sps:$4 sm:$0xff]  }
  0x47   : > { %1043 = vmatprep.subr.bf16.mxu0 %v8927_v5  ;;  %1096 = vmatprep.subr.bf16.mxu1 %v8930_v6  ;;  %v908_v33 = vrot.slane %v10147_v27, 1  ;;  %v1190_v54 = vshrl.u32 %v10147_v27, 16  ;;  %v1193_v55 = vshll.u32 %v10147_v27, 16  ;;  %v8998_v5 = vld [vmem:[%s12655_s1 + $0x3ac] ss:$16 sps:$4 sm:$0xff]  }
  0x48   : > { %814 = vmatprep.mubr.bf16.mxu0 %v12664_v2  ;;  %867 = vmatprep.mubr.bf16.mxu1 %v12664_v2  ;;  %v1454_v27 = vld [vmem:[%s9952_s25] sm:$0xc]  ;;  %s7253_s25 = sshll.u32 %s324_s24, 4  ;;  %s12615_s25 = int_to_ptr.vmem [resolvable:$true] %s7253_s25 }
  0x49   : > { %v910_v36 = vsel %vm907_vm2, %v908_v33, %v909_v31  ;;  %v1192_v62 = vrot.slane %v1190_v54, 1  ;;  %v1195_v63 = vrot.slane %v1193_v55, 2  ;;  %v7527_v33 = vcombine.low %v1454_v27, %v9965_v23  ;;  %v9030_v55 = vld [vmem:[%s12657_s3 + $0x460] ss:$16 sps:$4 sm:$0xff]   ;;  %v9068_v27 = vld [vmem:[%s12657_s3 + $0x5e4] ss:$16 sps:$4 sm:$0xff]   ;;  %p9731_p0 = scmp.lt.s32.totalorder %s12615_s25, %s9729_s17 }
  0x4a   : > { %1044 = vmatpush1.bf16.msra.mxu0 %v8925_v7  ;;  %1097 = vmatpush1.bf16.msra.mxu1 %v8928_v8  ;;  %v1204_v7 = vor.u32 %v1203_v0, %v1200_v61  ;;  %v8993_v8 = vld [vmem:[%s12655_s1 + $0x3a0] ss:$16 sps:$4 sm:$0xff]   ;;  %v1737_v54 = vlaneseq }
  0x4b   : > { %1045 = vmatprep.subr.bf16.mxu0 %v8934_v10  ;;  %1098 = vmatprep.subr.bf16.mxu1 %v8937_v11  ;;  %v1196_v6 = vor.u32 %v1195_v63, %v1192_v62  ;;  %v9001_v10 = vld [vmem:[%s12655_s1 + $0x384] ss:$16 sps:$4 sm:$0xff]   ;;  %v9004_v11 = vld [vmem:[%s12655_s1 + $0x38c] ss:$16 sps:$4 sm:$0xff]   ;;  %v9033_v0 = vld [vmem:[%s12657_s3 + $0x440] ss:$16 sps:$4 sm:$0xff]  }
  0x4c   : > { %v1738_v63 = vshrl.u32 %v1737_v54, 7 }
  0x4d   : > { %7394 = vmatmul.mubr.msk.bf16.gmra.mxu0 %vm531_vm1, %v7368_v12  ;;  %7396 = vmatmul.mubr.msk.bf16.gmra.mxu1 %vm531_vm1, %v7368_v12  ;;  %v1205_v12 = vsel %vm1188_vm3, %v1196_v6, %v1204_v7  ;;  %vm4995_vm3 = vcmask 388096  }
  0x4e   : > { %1046 = vmatpush1.bf16.msra.mxu0 %v8932_v13  ;;  %1099 = vmatpush1.bf16.msra.mxu1 %v8935_v14  ;;  %v8999_v13 = vld [vmem:[%s12655_s1 + $0x380] ss:$16 sps:$4 sm:$0xff]   ;;  %v9002_v14 = vld [vmem:[%s12655_s1 + $0x388] ss:$16 sps:$4 sm:$0xff]  }
  0x4f   : > { %1047 = vmatprep.subr.bf16.mxu0 %v8940_v15  ;;  %1100 = vmatprep.subr.bf16.mxu1 %v8943_v16  ;;  %v9007_v15 = vld [vmem:[%s12655_s1 + $0x364] ss:$16 sps:$4 sm:$0xff]   ;;  %v9010_v16 = vld [vmem:[%s12655_s1 + $0x36c] ss:$16 sps:$4 sm:$0xff]  }
  0x50   : > { %1069 = vmatprep.mubr.bf16.mxu0 %v12664_v2  ;;  %1122 = vmatprep.mubr.bf16.mxu1 %v12664_v2 }
  0x52   : > { %1048 = vmatpush1.bf16.msra.mxu0 %v8938_v17  ;;  %1101 = vmatpush1.bf16.msra.mxu1 %v8941_v18  ;;  %v9005_v17 = vld [vmem:[%s12655_s1 + $0x360] ss:$16 sps:$4 sm:$0xff]   ;;  %v9008_v18 = vld [vmem:[%s12655_s1 + $0x368] ss:$16 sps:$4 sm:$0xff]  }
  0x53   : > { %1049 = vmatprep.subr.bf16.mxu0 %v8946_v19  ;;  %1102 = vmatprep.subr.bf16.mxu1 %v8949_v20  ;;  %v9013_v19 = vld [vmem:[%s12655_s1 + $0x344] ss:$16 sps:$4 sm:$0xff]   ;;  %v9016_v20 = vld [vmem:[%s12655_s1 + $0x34c] ss:$16 sps:$4 sm:$0xff]  }
  0x56   : > { %1050 = vmatpush1.bf16.msra.mxu0 %v8944_v22  ;;  %1103 = vmatpush1.bf16.msra.mxu1 %v8947_v25  ;;  %v9014_v22 = vld [vmem:[%s12655_s1 + $0x348] ss:$16 sps:$4 sm:$0xff]   ;;  %v9019_v25 = vld [vmem:[%s12655_s1 + $0x324] ss:$16 sps:$4 sm:$0xff]  }
  0x57   : > { %1051 = vmatprep.subr.bf16.mxu0 %v8952_v26  ;;  %1104 = vmatprep.subr.bf16.mxu1 %v8955_v29  ;;  %v9022_v26 = vld [vmem:[%s12655_s1 + $0x32c] ss:$16 sps:$4 sm:$0xff]   ;;  %v9017_v29 = vld [vmem:[%s12655_s1 + $0x320] ss:$16 sps:$4 sm:$0xff]  }
  0x5a   : > { %1052 = vmatpush1.bf16.msra.mxu0 %v8950_v30  ;;  %1105 = vmatpush1.bf16.msra.mxu1 %v8953_v32  ;;  %v9020_v30 = vld [vmem:[%s12655_s1 + $0x328] ss:$16 sps:$4 sm:$0xff]   ;;  %v9028_v32 = vld [vmem:[%s12655_s1 + $0x30c] ss:$16 sps:$4 sm:$0xff]  }
  0x5b   : > { %1336 = vmatprep.subr.bf16.mxu0 %v8959_v34  ;;  %1389 = vmatprep.subr.bf16.mxu1 %v8962_v28  ;;  %v9023_v34 = vld [vmem:[%s12655_s1 + $0x300] ss:$16 sps:$4 sm:$0xff]   ;;  %v9026_v28 = vld [vmem:[%s12655_s1 + $0x308] ss:$16 sps:$4 sm:$0xff]  }
  0x5d   : > { %7446 = vmatmul.mubr.msk.bf16.vlgmr.msra.gmra.mxu0 %vm531_vm1, %v910_v36  ;;  %7448 = vmatmul.mubr.msk.bf16.vlgmr.msra.gmra.mxu1 %vm531_vm1, %v910_v36  ;;  %v1485_v36 = vrot.slane %v10197_v45, 2 }
  0x5e   : > { %1337 = vmatpush1.bf16.msra.mxu0 %v8957_v35  ;;  %1390 = vmatpush1.bf16.msra.mxu1 %v8960_v37  ;;  %v1484_v35 = vrot.slane %v7527_v33, 2  ;;  %v9051_v33 = vld [vmem:[%s12657_s3 + $0x3c0] ss:$16 sps:$4 sm:$0xff]  }
  0x5f   : > { %1338 = vmatprep.subr.bf16.mxu0 %v8965_v38  ;;  %1391 = vmatprep.subr.bf16.mxu1 %v8968_v39 }
  0x60   : > { %1079 = vmatprep.mubr.bf16.mxu0 %v12664_v2  ;;  %1132 = vmatprep.mubr.bf16.mxu1 %v12664_v2  ;;  %v1486_v23 = vsel %vm1483_vm4, %v1484_v35, %v1485_v36 }
  0x62   : > { %1339 = vmatpush1.bf16.msra.mxu0 %v8963_v41  ;;  %1392 = vmatpush1.bf16.msra.mxu1 %v8966_v42 }
  0x63   : > { %1340 = vmatprep.subr.bf16.mxu0 %v8971_v43  ;;  %1393 = vmatprep.subr.bf16.mxu1 %v8974_v44 }
  0x65   : > { %7447 = vmatmul.mubr.msk.bf16.gmra.mxu0 %vm531_vm1, %v909_v31  ;;  %7449 = vmatmul.mubr.msk.bf16.gmra.mxu1 %vm531_vm1, %v909_v31  ;;  %v9025_v31 = vld [vmem:[%s12655_s1 + $0x304] ss:$16 sps:$4 sm:$0xff]  }
  0x66   : > { %1341 = vmatpush1.bf16.msra.mxu0 %v8969_v46  ;;  %1394 = vmatpush1.bf16.msra.mxu1 %v8972_v47 }
  0x67   : > { %1342 = vmatprep.subr.bf16.mxu0 %v8977_v48  ;;  %1395 = vmatprep.subr.bf16.mxu1 %v8980_v24 }
  0x68   : > { %1364 = vmatprep.mubr.bf16.mxu0 %v12664_v2  ;;  %1417 = vmatprep.mubr.bf16.mxu1 %v12664_v2 }
  0x6a   : > { %1343 = vmatpush1.bf16.msra.mxu0 %v8975_v49  ;;  %1396 = vmatpush1.bf16.msra.mxu1 %v8978_v50 }
  0x6b   : > { %1344 = vmatprep.subr.bf16.mxu0 %v8983_v51  ;;  %1397 = vmatprep.subr.bf16.mxu1 %v8986_v52 }
  0x6e   : > { %1345 = vmatpush1.bf16.msra.mxu0 %v8981_v57  ;;  %1398 = vmatpush1.bf16.msra.mxu1 %v8984_v58 }
  0x6f   : > { %1346 = vmatprep.subr.bf16.mxu0 %v8989_v59  ;;  %1399 = vmatprep.subr.bf16.mxu1 %v8992_v60  ;;  %v9035_v59 = vld [vmem:[%s12657_s3 + $0x444] ss:$16 sps:$4 sm:$0xff]   ;;  %v9042_v60 = vld [vmem:[%s12657_s3 + $0x660] ss:$16 sps:$4 sm:$0xff]  }
  0x72   : > { %1347 = vmatpush1.bf16.msra.mxu0 %v8987_v1  ;;  %1400 = vmatpush1.bf16.msra.mxu1 %v8990_v3  ;;  %v9044_v1 = vld [vmem:[%s12657_s3 + $0x664] ss:$16 sps:$4 sm:$0xff]  }
  0x73   : > { %1617 = vmatprep.subr.bf16.mxu0 %v8995_v4  ;;  %1670 = vmatprep.subr.bf16.mxu1 %v8998_v5  ;;  %v9038_v3 = vld [vmem:[%s12657_s3 + $0x424] ss:$16 sps:$4 sm:$0xff]  }
  0x74   : > { %v9050_v4 = vld [vmem:[%s12657_s3 + $0x644] ss:$16 sps:$4 sm:$0xff]  }
  0x75   : > { %7499 = vmatmul.mubr.msk.bf16.vlgmr.msra.gmra.mxu0 %vm531_vm1, %v1205_v12  ;;  %7501 = vmatmul.mubr.msk.bf16.vlgmr.msra.gmra.mxu1 %vm531_vm1, %v1205_v12  ;;  %v10424_v12 = vsub.s32 1, %v1738_v63 }
  0x76   : > { %1618 = vmatpush1.bf16.msra.mxu0 %v8993_v8  ;;  %1671 = vmatpush1.bf16.msra.mxu1 %v8996_v9  ;;  %v10414_v8 = vsub.s32 0, %v1738_v63  ;;  %v10416_v9 = vsub.s32 2, %v1738_v63 }
  0x77   : > { %1619 = vmatprep.subr.bf16.mxu0 %v9001_v10  ;;  %1672 = vmatprep.subr.bf16.mxu1 %v9004_v11  ;;  %v9036_v10 = vld [vmem:[%s12657_s3 + $0x420] ss:$16 sps:$4 sm:$0xff]   ;;  %v9056_v11 = vld [vmem:[%s12657_s3 + $0x624] ss:$16 sps:$4 sm:$0xff]  }
  0x78   : > { %1374 = vmatprep.mubr.bf16.mxu0 %v12664_v2  ;;  %1427 = vmatprep.mubr.bf16.mxu1 %v12664_v2  ;;  %12673 = vst [vmem:[#allocation10_spill] sm:$0xff] %v10414_v8  ;;  %12674 = vst [vmem:[#allocation11_spill] sm:$0xff] %v10416_v9 }
  0x7a   : > { %1620 = vmatpush1.bf16.msra.mxu0 %v8999_v13  ;;  %1673 = vmatpush1.bf16.msra.mxu1 %v9002_v14  ;;  %v10426_v13 = vsub.s32 3, %v1738_v63  ;;  %v9041_v14 = vld [vmem:[%s12657_s3 + $0x404] ss:$16 sps:$4 sm:$0xff]  }
  0x7b   : > { %1621 = vmatprep.subr.bf16.mxu0 %v9007_v15  ;;  %1674 = vmatprep.subr.bf16.mxu1 %v9010_v16  ;;  %v9054_v15 = vld [vmem:[%s12657_s3 + $0x620] ss:$16 sps:$4 sm:$0xff]  }
  0x7d   : > { %7500 = vmatmul.mubr.msk.bf16.gmra.mxu0 %vm531_vm1, %v1204_v7  ;;  %7502 = vmatmul.mubr.msk.bf16.gmra.mxu1 %vm531_vm1, %v1204_v7  ;;  %v9048_v7 = vld [vmem:[%s12657_s3 + $0x640] ss:$16 sps:$4 sm:$0xff]  }
  0x7e   : > { %1622 = vmatpush1.bf16.msra.mxu0 %v9005_v17  ;;  %1675 = vmatpush1.bf16.msra.mxu1 %v9008_v18  ;;  %v9039_v18 = vld [vmem:[%s12657_s3 + $0x400] ss:$16 sps:$4 sm:$0xff]  }
  0x7f   : > { %1623 = vmatprep.subr.bf16.mxu0 %v9013_v19  ;;  %1676 = vmatprep.subr.bf16.mxu1 %v9016_v20  ;;  %v9062_v19 = vld [vmem:[%s12657_s3 + $0x604] ss:$16 sps:$4 sm:$0xff]  }
  0x80   : > { %1645 = vmatprep.mubr.bf16.mxu0 %v12664_v2  ;;  %1698 = vmatprep.mubr.bf16.mxu1 %v12664_v2  ;;  %v9047_v20 = vld [vmem:[%s12657_s3 + $0x3e4] ss:$16 sps:$4 sm:$0xff]  }
  0x82   : > { %1624 = vmatpush1.bf16.msra.mxu0 %v9011_v21  ;;  %1677 = vmatpush1.bf16.msra.mxu1 %v9014_v22  ;;  %v9060_v21 = vld [vmem:[%s12657_s3 + $0x600] ss:$16 sps:$4 sm:$0xff]  }
  0x83   : > { %1625 = vmatprep.subr.bf16.mxu0 %v9019_v25  ;;  %1678 = vmatprep.subr.bf16.mxu1 %v9022_v26  ;;  %v9045_v26 = vld [vmem:[%s12657_s3 + $0x3e0] ss:$16 sps:$4 sm:$0xff]  }
  0x86   : > { %1626 = vmatpush1.bf16.msra.mxu0 %v9017_v29  ;;  %1679 = vmatpush1.bf16.msra.mxu1 %v9020_v30  ;;  %v9053_v29 = vld [vmem:[%s12657_s3 + $0x3c4] ss:$16 sps:$4 sm:$0xff]   ;;  %v9066_v30 = vld [vmem:[%s12657_s3 + $0x5e0] ss:$16 sps:$4 sm:$0xff]  }
  0x87   : > { %1627 = vmatprep.subr.bf16.mxu0 %v9025_v31  ;;  %1680 = vmatprep.subr.bf16.mxu1 %v9028_v32 }
  0x8a   : > { %1628 = vmatpush1.bf16.msra.mxu0 %v9023_v34  ;;  %1681 = vmatpush1.bf16.msra.mxu1 %v9026_v28  ;;  %v9059_v34 = vld [vmem:[%s12657_s3 + $0x3a4] ss:$16 sps:$4 sm:$0xff]  }
  0x8b   : > { %3154 = vmatprep.subr.bf16.mxu0 %v9032_v56  ;;  %3197 = vmatprep.subr.bf16.mxu1 %v9044_v1 }
  0x8d   : > { %7552 = vmatmul.mubr.msk.bf16.vlgmr.msra.gmra.mxu0 %vm531_vm1, %v1486_v23  ;;  %7554 = vmatmul.mubr.msk.bf16.vlgmr.msra.gmra.mxu1 %vm531_vm1, %v1486_v23  ;;  %v9065_v23 = vld [vmem:[%s12657_s3 + $0x384] ss:$16 sps:$4 sm:$0xff]  }
  0x8e   : > { %1655 = vmatprep.mubr.bf16.mxu0 %v12664_v2  ;;  %1708 = vmatprep.mubr.bf16.mxu1 %v12664_v2 }
  0x8f   : > { %3155 = vmatpush1.bf16.msra.mxu0 %v9030_v55  ;;  %3198 = vmatpush1.bf16.msra.mxu1 %v9042_v60  ;;  %v9063_v60 = vld [vmem:[%s12657_s3 + $0x380] ss:$16 sps:$4 sm:$0xff]  }
  0x90   : > { %3156 = vmatprep.subr.bf16.mxu0 %v9035_v59  ;;  %3199 = vmatprep.subr.bf16.mxu1 %v9050_v4 }
  0x93   : > { %3157 = vmatpush1.bf16.msra.mxu0 %v9033_v0  ;;  %3200 = vmatpush1.bf16.msra.mxu1 %v9048_v7 }
  0x94   : > { %3158 = vmatprep.subr.bf16.mxu0 %v9038_v3  ;;  %3201 = vmatprep.subr.bf16.mxu1 %v9056_v11 }
  0x95   : > { %7553 = vmatmul.mubr.msk.bf16.gmra.mxu0 %vm531_vm1, %v1485_v36  ;;  %7555 = vmatmul.mubr.msk.bf16.gmra.mxu1 %vm531_vm1, %v1485_v36  ;;  %v9057_v36 = vld [vmem:[%s12657_s3 + $0x3a0] ss:$16 sps:$4 sm:$0xff]   ;;  %vm2311_vm1 = vmor %vm2310_vm15, %vm2180_vm9 }
  0x97   : > { %3159 = vmatpush1.bf16.msra.mxu0 %v9036_v10  ;;  %3202 = vmatpush1.bf16.msra.mxu1 %v9054_v15 }
  0x98   : > { %3160 = vmatprep.subr.bf16.mxu0 %v9041_v14  ;;  %3203 = vmatprep.subr.bf16.mxu1 %v9062_v19 }
  0x9b   : > { %3161 = vmatpush1.bf16.msra.mxu0 %v9039_v18  ;;  %3204 = vmatpush1.bf16.msra.mxu1 %v9060_v21 }
  0x9c   : > { %3162 = vmatprep.subr.bf16.mxu0 %v9047_v20  ;;  %3205 = vmatprep.subr.bf16.mxu1 %v9068_v27 }
  0x9f   : > { %3163 = vmatpush1.bf16.msra.mxu0 %v9045_v26  ;;  %3206 = vmatpush1.bf16.msra.mxu1 %v9066_v30 }
  0xa0   : > { %3164 = vmatprep.subr.bf16.mxu0 %v9053_v29 }
  0xa3   : > { %3165 = vmatpush1.bf16.msra.mxu0 %v9051_v33 }
  0xa4   : > { %3166 = vmatprep.subr.bf16.mxu0 %v9059_v34 }
  0xa7   : > { %3167 = vmatpush1.bf16.msra.mxu0 %v9057_v36 }
  0xa8   : > { %3168 = vmatprep.subr.bf16.mxu0 %v9065_v23 }
  0xab   : > { %3169 = vmatpush1.bf16.msra.mxu0 %v9063_v60  ;;  %v1735_v60 = vld [vmem:[%s12656_s2] sm:$0xf] }
  0xed   : > { %v10339_v37 = vpop.f32.mrf.mxu0  ;;  %v10341_v38 = vpop.f32.mrf.mxu1 }
  0xef   : > { %v10343_v39 = vpop.f32.mrf.mxu0  ;;  %v10345_v40 = vpop.f32.mrf.mxu1 }
  0xf1   : > { %v10347_v41 = vpop.f32.mrf.mxu0  ;;  %v10349_v42 = vpop.f32.mrf.mxu1 }
  0xf3   : > { %v10351_v43 = vpop.f32.mrf.mxu0  ;;  %v10353_v44 = vpop.f32.mrf.mxu1 }
  0xf5   : > { %v10355_v45 = vpop.f32.mrf.mxu0  ;;  %v10357_v46 = vpop.f32.mrf.mxu1 }
  0xf7   : > { %v10359_v47 = vpop.f32.mrf.mxu0  ;;  %v10361_v48 = vpop.f32.mrf.mxu1 }
  0xf9   : > { %v10363_v24 = vpop.f32.mrf.mxu0  ;;  %v10365_v49 = vpop.f32.mrf.mxu1 }
  0xfb   : > { %v10367_v50 = vpop.f32.mrf.mxu0  ;;  %v10369_v51 = vpop.f32.mrf.mxu1 }
  0xfc   : > { %12672 = vst [vmem:[#allocation9_spill] sm:$0xff] %v10369_v51 }
 0x105   : > { %v10371_v52 = vpop.f32.mrf.mxu0  ;;  %v10373_v53 = vpop.f32.mrf.mxu1 }
 0x107   : > { %v10381_v57 = vpop.f32.mrf.mxu0  ;;  %v10383_v58 = vpop.f32.mrf.mxu1 }
 0x109   : > { %v10391_v61 = vpop.f32.mrf.mxu0  ;;  %v10393_v62 = vpop.f32.mrf.mxu1 }
 0x10b   : > { %v10407_v5 = vpop.f32.mrf.mxu0  ;;  %v10409_v6 = vpop.f32.mrf.mxu1 }
 0x10d   : > { %v10434_v16 = vpop.f32.mrf.mxu0  ;;  %v10436_v17 = vpop.f32.mrf.mxu1 }
 0x10f   : > { %v10450_v22 = vpop.f32.mrf.mxu0  ;;  %v10452_v25 = vpop.f32.mrf.mxu1 }
 0x111   : > { %v10466_v31 = vpop.f32.mrf.mxu0  ;;  %v10468_v32 = vpop.f32.mrf.mxu1 }
 0x113   : > { %v822_v28 = vpop.f32.mrf.mxu0  ;;  %v875_v35 = vpop.f32.mrf.mxu1 }
 0x11d   : > { %v1071_v54 = vpop.f32.mrf.mxu0  ;;  %v1124_v55 = vpop.f32.mrf.mxu1 }
 0x11f   : > { %v1073_v56 = vpop.f32.mrf.mxu0  ;;  %v1126_v59 = vpop.f32.mrf.mxu1 }
 0x121   : > { %v1075_v63 = vpop.f32.mrf.mxu0  ;;  %v1128_v0 = vpop.f32.mrf.mxu1 }
 0x123   : > { %v1077_v1 = vpop.f32.mrf.mxu0  ;;  %v1130_v3 = vpop.f32.mrf.mxu1 }
 0x125   : > { %v1081_v4 = vpop.f32.mrf.mxu0  ;;  %v1134_v7 = vpop.f32.mrf.mxu1 }
 0x127   : > { %v1083_v10 = vpop.f32.mrf.mxu0  ;;  %v1136_v11 = vpop.f32.mrf.mxu1 }
 0x129   : > { %v1085_v14 = vpop.f32.mrf.mxu0  ;;  %v1138_v15 = vpop.f32.mrf.mxu1 }
 0x12b   : > { %v1087_v18 = vpop.f32.mrf.mxu0  ;;  %v1140_v19 = vpop.f32.mrf.mxu1 }
 0x135   : > { %v1366_v20 = vpop.f32.mrf.mxu0  ;;  %v1419_v21 = vpop.f32.mrf.mxu1 }
 0x137   : > { %v1368_v26 = vpop.f32.mrf.mxu0  ;;  %v1421_v27 = vpop.f32.mrf.mxu1 }
 0x139   : > { %v10485_v29 = vpop.f32.mrf.mxu0  ;;  %v10487_v30 = vpop.f32.mrf.mxu1 }
 0x13a   : > { %12675 = vst [vmem:[#allocation12_spill] sm:$0xff] %v10485_v29  ;;  %12676 = vst [vmem:[#allocation13_spill] sm:$0xff] %v10487_v30  ;;  %v10505_v29 = vrot.slane %v1735_v60, %v10414_v8  ;;  %v10508_v30 = vrot.slane %v1735_v60, %v10416_v9  ;;  %v862_v8 = vadd.f32 %v10383_v58, %v10345_v40  ;;  %v12682_v58 = vld [vmem:[#allocation9_spill] sm:$0xff] }
 0x13b   : > { %v10489_v33 = vpop.f32.mrf.mxu0  ;;  %v10491_v34 = vpop.f32.mrf.mxu1  ;;  %v811_v9 = vadd.f32 %v10391_v61, %v10347_v41  ;;  %v870_v40 = vadd.f32 %v10436_v17, %v10357_v46  ;;  %v819_v41 = vadd.f32 %v10450_v22, %v10359_v47  ;;  %v876_v61 = vadd.f32 %v875_v35, %v12682_v58 }
 0x13c   : > { %12677 = vst [vmem:[#allocation14_spill] sm:$0xff] %v10489_v33  ;;  %12678 = vst [vmem:[#allocation15_spill] sm:$0xff] %v10491_v34  ;;  %v807_v34 = vadd.f32 %v10371_v52, %v10339_v37  ;;  %v10518_v33 = vrot.slane %v1735_v60, %v10426_v13  ;;  %v864_v37 = vadd.f32 %v10393_v62, %v10349_v42 }
 0x13d   : > { %v10493_v36 = vpop.f32.mrf.mxu0  ;;  %v10495_v23 = vpop.f32.mrf.mxu1  ;;  %v872_v42 = vadd.f32 %v10452_v25, %v10361_v48  ;;  %v1146_v46 = vadd.f32 %v1126_v59, %v862_v8 }
 0x13e   : > { %12679 = vst [vmem:[#allocation16_spill] sm:$0xff] %v10493_v36  ;;  %12680 = vst [vmem:[#allocation17_spill] sm:$0xff] %v10495_v23  ;;  %v860_v23 = vadd.f32 %v10373_v53, %v10341_v38  ;;  %v10515_v36 = vrot.slane %v1735_v60, %v10424_v12  ;;  %v813_v53 = vadd.f32 %v10407_v5, %v10351_v43 }
 0x13f   : > { %v10500_v2 = vpop.f32.mrf.mxu0  ;;  %v10502_v51 = vpop.f32.mrf.mxu1  ;;  %v866_v60 = vadd.f32 %v10409_v6, %v10353_v44  ;;  %v874_v43 = vadd.f32 %v10468_v32, %v10365_v49  ;;  %v823_v44 = vadd.f32 %v822_v28, %v10367_v50  ;;  %v1147_v6 = vadd.f32 %v1075_v63, %v811_v9 }
 0x140   : > { %12681 = vst [vmem:[#allocation18_spill] sm:$0xff] %v10502_v51  ;;  %v809_v51 = vadd.f32 %v10381_v57, %v10343_v39  ;;  %v817_v39 = vadd.f32 %v10434_v16, %v10355_v45  ;;  %v821_v57 = vadd.f32 %v10466_v31, %v10363_v24  ;;  %v1143_v45 = vadd.f32 %v1071_v54, %v807_v34 }
 0x141   : > { %v10528_v52 = vpop.f32.mrf.mxu0  ;;  %v10530_v38 = vpop.f32.mrf.mxu1  ;;  %v1145_v62 = vadd.f32 %v1124_v55, %v860_v23  ;;  %v1149_v16 = vadd.f32 %v1128_v0, %v864_v37  ;;  %v1148_v48 = vadd.f32 %v1077_v1, %v813_v53  ;;  %v1150_v24 = vadd.f32 %v1130_v3, %v866_v60 }
 0x142   : > { %v1144_v5 = vadd.f32 %v1073_v56, %v809_v51  ;;  %v1438_v22 = vadd.f32 %v1366_v20, %v1143_v45  ;;  %v1151_v49 = vadd.f32 %v1081_v4, %v817_v39  ;;  %v1153_v31 = vadd.f32 %v1134_v7, %v870_v40  ;;  %v12684_v20 = vld [vmem:[#allocation13_spill] sm:$0xff] }
 0x143   : > { %v10550_v47 = vpop.f32.mrf.mxu0  ;;  %v10552_v17 = vpop.f32.mrf.mxu1  ;;  %v1440_v25 = vadd.f32 %v1419_v21, %v1145_v62  ;;  %v1152_v50 = vadd.f32 %v1083_v10, %v819_v41  ;;  %v1154_v32 = vadd.f32 %v1136_v11, %v872_v42  ;;  %v1441_v51 = vadd.f32 %v1421_v27, %v1146_v46  ;;  %v12683_v10 = vld [vmem:[#allocation12_spill] sm:$0xff]  ;;  %v12686_v23 = vld [vmem:[#allocation15_spill] sm:$0xff] }
 0x144   : > { %v1439_v54 = vadd.f32 %v1368_v26, %v1144_v5  ;;  %v1155_v55 = vadd.f32 %v1085_v14, %v821_v57  ;;  %v1157_v56 = vadd.f32 %v1138_v15, %v874_v43  ;;  %v1156_v59 = vadd.f32 %v1087_v18, %v823_v44  ;;  %v12685_v26 = vld [vmem:[#allocation14_spill] sm:$0xff] }
 0x145   : > { %v1158_v63 = vadd.f32 %v1140_v19, %v876_v61  ;;  %v1442_v11 = vadd.f32 %v12683_v10, %v1147_v6  ;;  %v1444_v21 = vadd.f32 %v12684_v20, %v1149_v16  ;;  %v1443_v27 = vadd.f32 %v12685_v26, %v1148_v48  ;;  %v12687_v39 = vld [vmem:[#allocation16_spill] sm:$0xff]  ;;  %v12688_v41 = vld [vmem:[#allocation17_spill] sm:$0xff] }
 0x146   : > { %v1445_v37 = vadd.f32 %v12686_v23, %v1150_v24  ;;  %v1446_v40 = vadd.f32 %v12687_v39, %v1151_v49  ;;  %v1448_v42 = vadd.f32 %v12688_v41, %v1153_v31  ;;  %v1447_v46 = vadd.f32 %v10500_v2, %v1152_v50 }
 0x147   : > { %v12689_v6 = vld [vmem:[#allocation18_spill] sm:$0xff]  ;;  %v1452_v2 = vadd.f32 %v10530_v38, %v1157_v56 }
 0x148   : > { %v1449_v16 = vadd.f32 %v12689_v6, %v1154_v32 }
 0x14d   : > { %v1647_v28 = vpop.f32.mrf.mxu0  ;;  %v1700_v35 = vpop.f32.mrf.mxu1 }
 0x14e   : > { %v1719_v8 = vadd.f32 %v1647_v28, %v1438_v22  ;;  %v1721_v9 = vadd.f32 %v1700_v35, %v1440_v25 }
 0x14f   : > { %v1649_v0 = vpop.f32.mrf.mxu0  ;;  %v1702_v34 = vpop.f32.mrf.mxu1 }
 0x150   : > { %v1757_v1 = vadd.f32 %v10505_v29, %v1719_v8  ;;  %v1759_v3 = vadd.f32 %v10508_v30, %v1721_v9  ;;  %v1720_v4 = vadd.f32 %v1649_v0, %v1439_v54  ;;  %v1722_v7 = vadd.f32 %v1702_v34, %v1441_v51 }
 0x151   : > { %v1651_v14 = vpop.f32.mrf.mxu0  ;;  %v1704_v15 = vpop.f32.mrf.mxu1  ;;  %v1450_v54 = vadd.f32 %v10528_v52, %v1155_v55 }
 0x152   : > { %v1773_v18 = vmax.f32 %v1757_v1, 0.0  ;;  %v1775_v19 = vmax.f32 %v1759_v3, 0.0  ;;  %v1758_v53 = vadd.f32 %v10515_v36, %v1720_v4  ;;  %v1760_v60 = vadd.f32 %v10518_v33, %v1722_v7 }
 0x153   : > { %v1723_v57 = vadd.f32 %v1651_v14, %v1442_v11  ;;  %v1725_v43 = vadd.f32 %v1704_v15, %v1444_v21  ;;  %v1653_v44 = vpop.f32.mrf.mxu0  ;;  %v1706_v58 = vpop.f32.mrf.mxu1  ;;  %v1451_v3 = vadd.f32 %v10550_v47, %v1156_v59  ;;  %v1453_v4 = vadd.f32 %v10552_v17, %v1158_v63 }
 0x154   : > { %1789 = vst [vmem:[#allocation2] sm:$0xff] %v1773_v18  ;;  %1791 = vst [vmem:[#allocation2 + $0x10] sm:$0xff] %v1775_v19  ;;  %v1774_v61 = vmax.f32 %v1758_v53, 0.0  ;;  %v1776_v45 = vmax.f32 %v1760_v60, 0.0  ;;  %v1724_v62 = vadd.f32 %v1653_v44, %v1443_v27  ;;  %v1726_v5 = vadd.f32 %v1706_v58, %v1445_v37 }
 0x155   : > { %v1761_v48 = vadd.f32 %v10505_v29, %v1723_v57  ;;  %v1763_v24 = vadd.f32 %v10508_v30, %v1725_v43  ;;  %v1657_v22 = vpop.f32.mrf.mxu0  ;;  %v1710_v25 = vpop.f32.mrf.mxu1 }
 0x156   : > { %1790 = vst [vmem:[#allocation2 + $0x8] sm:$0xff] %v1774_v61  ;;  %1793 = vst.msk [vmem:[#allocation2 + $0x18] sm:$0xff] %vm1792_vm5, %v1776_v45  ;;  %v1762_v49 = vadd.f32 %v10515_v36, %v1724_v62  ;;  %v1764_v31 = vadd.f32 %v10518_v33, %v1726_v5  ;;  %v1727_v28 = vadd.f32 %v1657_v22, %v1446_v40  ;;  %v12691_v22 = vld [vmem:[#allocation10_spill] sm:$0xff] }
 0x157   : > { %v1729_v35 = vadd.f32 %v1710_v25, %v1448_v42  ;;  %v1777_v50 = vmax.f32 %v1761_v48, 0.0  ;;  %v1779_v32 = vmax.f32 %v1763_v24, 0.0  ;;  %v1659_v51 = vpop.f32.mrf.mxu0  ;;  %v1712_v8 = vpop.f32.mrf.mxu1 }
 0x158   : > { %v1778_v9 = vmax.f32 %v1762_v49, 0.0  ;;  %v1780_v0 = vmax.f32 %v1764_v31, 0.0  ;;  %v1765_v34 = vadd.f32 %v10505_v29, %v1727_v28  ;;  %v1728_v52 = vadd.f32 %v1659_v51, %v1447_v46 }
 0x159   : > { %v1767_v1 = vadd.f32 %v10508_v30, %v1729_v35  ;;  %1794 = vst [vmem:[#allocation2 + $0x20] sm:$0xff] %v1777_v50  ;;  %1796 = vst [vmem:[#allocation2 + $0x30] sm:$0xff] %v1779_v32  ;;  %v1730_v55 = vadd.f32 %v1712_v8, %v1449_v16  ;;  %v1661_v38 = vpop.f32.mrf.mxu0  ;;  %v1714_v56 = vpop.f32.mrf.mxu1 }
 0x15a   : > { %1795 = vst [vmem:[#allocation2 + $0x28] sm:$0xff] %v1778_v9  ;;  %1797 = vst.msk [vmem:[#allocation2 + $0x38] sm:$0xff] %vm1792_vm5, %v1780_v0  ;;  %v1781_v7 = vmax.f32 %v1765_v34, 0.0  ;;  %v1731_v11 = vadd.f32 %v1661_v38, %v1450_v54  ;;  %v1733_v20 = vadd.f32 %v1714_v56, %v1452_v2  ;;  %v1766_v21 = vadd.f32 %v10515_v36, %v1728_v52 }
 0x15b   : > { %v1783_v10 = vmax.f32 %v1767_v1, 0.0  ;;  %v1768_v26 = vadd.f32 %v10518_v33, %v1730_v55  ;;  %v1663_v47 = vpop.f32.mrf.mxu0  ;;  %v1716_v59 = vpop.f32.mrf.mxu1 }
 0x15c   : > { %1798 = vst [vmem:[#allocation2 + $0x40] sm:$0xff] %v1781_v7  ;;  %v1769_v17 = vadd.f32 %v10505_v29, %v1731_v11  ;;  %v1771_v63 = vadd.f32 %v10508_v30, %v1733_v20  ;;  %v1732_v27 = vadd.f32 %v1663_v47, %v1451_v3  ;;  %v1734_v23 = vadd.f32 %v1716_v59, %v1453_v4 }
 0x15d   : > { %1800 = vst [vmem:[#allocation2 + $0x50] sm:$0xff] %v1783_v10  ;;  %v1782_v37 = vmax.f32 %v1766_v21, 0.0  ;;  %v1784_v14 = vmax.f32 %v1768_v26, 0.0  ;;  %v1807_v15 = vld [vmem:[#allocation2] ss:$8 sm:$0xf] }
 0x15e   : > { %v1785_v18 = vmax.f32 %v1769_v17, 0.0  ;;  %v1787_v19 = vmax.f32 %v1771_v63, 0.0  ;;  %v1770_v53 = vadd.f32 %v10515_v36, %v1732_v27  ;;  %v1772_v60 = vadd.f32 %v10518_v33, %v1734_v23  ;;  %v1809_v39 = vld [vmem:[#allocation2 + $0x1] ss:$8 sm:$0xf] }
 0x15f   : > { %1799 = vst [vmem:[#allocation2 + $0x48] sm:$0xff] %v1782_v37  ;;  %1801 = vst.msk [vmem:[#allocation2 + $0x58] sm:$0xff] %vm1792_vm5, %v1784_v14  ;;  %v10585_v29 = vmax.f32 %v1807_v15, %v1809_v39  ;;  %v1812_v30 = vld [vmem:[#allocation2 + $0x2] ss:$8 sm:$0xf] }
 0x160   : > { %v1814_v40 = vld [vmem:[#allocation2 + $0x3] ss:$8 sm:$0xf]  ;;  %1802 = vst [vmem:[#allocation2 + $0x60] sm:$0xf] %v1785_v18  ;;  %v1786_v41 = vmax.f32 %v1770_v53, 0.0 }
 0x161   : > { %1804 = vst [vmem:[#allocation2 + $0x70] sm:$0xf] %v1787_v19  ;;  %v1788_v42 = vmax.f32 %v1772_v60, 0.0  ;;  %v10587_v57 = vmax.f32 %v1812_v30, %v1814_v40  ;;  %v1817_v43 = vld [vmem:[#allocation2 + $0x4] ss:$8 sm:$0xf]  ;;  %v1892_v61 = vrot.slane %v10585_v29, %v10426_v13  ;;  %v1880_v25 = vrot.slane %v10585_v29, %v12691_v22 }
 0x162   : > { %v1819_v36 = vld [vmem:[#allocation2 + $0x5] ss:$8 sm:$0xf]  ;;  %v1822_v44 = vld [vmem:[#allocation2 + $0x6] ss:$8 sm:$0xf]  ;;  %v1884_v31 = vrot.slane %v10585_v29, %v10424_v12 }
 0x163   : > { %v12690_v33 = vld [vmem:[#allocation11_spill] sm:$0xff]  ;;  %1803 = vst [vmem:[#allocation2 + $0x68] sm:$0xf] %v1786_v41  ;;  %1806 = vst.msk [vmem:[#allocation2 + $0x78] sm:$0xf] %vm1805_vm6, %v1788_v42  ;;  %v10594_v45 = vmax.f32 %v1817_v43, %v1819_v36  ;;  %v1913_v6 = vrot.slane %v10587_v57, %v10426_v13  ;;  %v1901_v49 = vrot.slane %v10587_v57, %v12691_v22 }
 0x164   : > { %v1888_v58 = vrot.slane %v10585_v29, %v12690_v33  ;;  %v1824_v62 = vld [vmem:[#allocation2 + $0x7] ss:$8 sm:$0xf]  ;;  %v1827_v5 = vld [vmem:[#allocation2 + $0x20] ss:$8 sm:$0xf]  ;;  %v1909_v46 = vrot.slane %v10587_v57, %v12690_v33 }
 0x165   : > { %v10600_v16 = vmax.f32 %v1822_v44, %v1824_v62  ;;  %v1829_v48 = vld [vmem:[#allocation2 + $0x21] ss:$8 sm:$0xf]  ;;  %v1832_v24 = vld [vmem:[#allocation2 + $0x22] ss:$8 sm:$0xf]  ;;  %v1930_v2 = vrot.slane %v10594_v45, %v12690_v33  ;;  %v1934_v50 = vrot.slane %v10594_v45, %v10426_v13  ;;  %v2174_v1 = vsel %vm2170_vm7, %v1892_v61, %v1913_v6 }
 0x166   : > { %v10608_v28 = vmax.f32 %v1827_v5, %v1829_v48  ;;  %v1834_v35 = vld [vmem:[#allocation2 + $0x23] ss:$8 sm:$0xf]  ;;  %v1837_v54 = vld [vmem:[#allocation2 + $0x24] ss:$8 sm:$0xf]  ;;  %v2173_v32 = vsel %vm2170_vm7, %v1888_v58, %v1909_v46 }
 0x167   : > { %v10615_v51 = vmax.f32 %v1832_v24, %v1834_v35  ;;  %v1839_v8 = vld [vmem:[#allocation2 + $0x25] ss:$8 sm:$0xf]  ;;  %v1842_v9 = vld [vmem:[#allocation2 + $0x26] ss:$8 sm:$0xf]  ;;  %v1951_v0 = vrot.slane %v10600_v16, %v12690_v33  ;;  %v1955_v34 = vrot.slane %v10600_v16, %v10426_v13  ;;  %v2178_v38 = vsel %vm2175_vm8, %v2173_v32, %v1930_v2 }
 0x168   : > { %v10622_v3 = vmax.f32 %v1837_v54, %v1839_v8  ;;  %v1844_v4 = vld [vmem:[#allocation2 + $0x27] ss:$8 sm:$0xf]  ;;  %v1972_v52 = vrot.slane %v10608_v28, %v12690_v33  ;;  %v1976_v55 = vrot.slane %v10608_v28, %v10426_v13  ;;  %v1847_v56 = vld [vmem:[#allocation2 + $0x40] ss:$8 sm:$0xf]  ;;  %v2179_v20 = vsel %vm2175_vm8, %v2174_v1, %v1934_v50 }
 0x169   : > { %v10629_v7 = vmax.f32 %v1842_v9, %v1844_v4  ;;  %v1993_v10 = vrot.slane %v10615_v51, %v12690_v33  ;;  %v1997_v11 = vrot.slane %v10615_v51, %v10426_v13  ;;  %v1849_v21 = vld [vmem:[#allocation2 + $0x41] ss:$8 sm:$0xf]  ;;  %v1852_v26 = vld [vmem:[#allocation2 + $0x42] ss:$8 sm:$0xf]  ;;  %v2183_v17 = vsel %vm2180_vm9, %v2178_v38, %v1951_v0 }
 0x16a   : > { %v2014_v47 = vrot.slane %v10622_v3, %v12690_v33  ;;  %v2018_v59 = vrot.slane %v10622_v3, %v10426_v13  ;;  %v2184_v63 = vsel %vm2180_vm9, %v2179_v20, %v1955_v34  ;;  %v1854_v27 = vld [vmem:[#allocation2 + $0x43] ss:$8 sm:$0xf]  ;;  %v1857_v23 = vld [vmem:[#allocation2 + $0x44] ss:$8 sm:$0xf]  ;;  %v2188_v15 = vsel %vm2185_vm10, %v2183_v17, %v1972_v52 }
 0x16b   : > { %v2035_v37 = vrot.slane %v10629_v7, %v12690_v33  ;;  %v2039_v14 = vrot.slane %v10629_v7, %v10426_v13  ;;  %v2189_v18 = vsel %vm2185_vm10, %v2184_v63, %v1976_v55  ;;  %v1859_v19 = vld [vmem:[#allocation2 + $0x45] ss:$8 sm:$0xf]  ;;  %v1862_v53 = vld [vmem:[#allocation2 + $0x46] ss:$8 sm:$0xf]  ;;  %v2193_v60 = vsel %vm2190_vm11, %v2188_v15, %v1993_v10 }
 0x16c   : > { %v2194_v39 = vsel %vm2190_vm11, %v2189_v18, %v1997_v11  ;;  %v10650_v30 = vmax.f32 %v1847_v56, %v1849_v21  ;;  %v10652_v40 = vmax.f32 %v1852_v26, %v1854_v27  ;;  %v1864_v41 = vld [vmem:[#allocation2 + $0x47] ss:$8 sm:$0xf]  ;;  %v1867_v42 = vld [vmem:[#allocation2 + $0x60] ss:$8 sm:$0xf]  ;;  %v2198_v43 = vsel %vm1483_vm4, %v2193_v60, %v2014_v47 }
 0x16d   : > { %v2199_v36 = vsel %vm1483_vm4, %v2194_v39, %v2018_v59  ;;  %v10656_v44 = vmax.f32 %v1857_v23, %v1859_v19  ;;  %v10658_v58 = vmax.f32 %v1862_v53, %v1864_v41  ;;  %v1869_v61 = vld [vmem:[#allocation2 + $0x61] ss:$8 sm:$0xf]  ;;  %v1872_v62 = vld [vmem:[#allocation2 + $0x62] ss:$8 sm:$0xf]  ;;  %v10661_v5 = vsel %vm907_vm2, %v2198_v43, %v2035_v37 }
 0x16e   : > { %v10664_v46 = vsel %vm907_vm2, %v2199_v36, %v2039_v14  ;;  %v10666_v6 = vmax.f32 %v1867_v42, %v1869_v61  ;;  %v1874_v48 = vld [vmem:[#allocation2 + $0x63] ss:$8 sm:$0xf]  ;;  %v2056_v24 = vrot.slane %v10650_v30, %v12690_v33  ;;  %v2060_v2 = vrot.slane %v10650_v30, %v10426_v13  ;;  %v9071_v32 = vld [vmem:[%s12657_s3 + $0x564] ss:$16 sps:$4 sm:$0xff]  }
 0x16f   : > { %v8814_v35 = vpack.i.bf16 %v10664_v46, %v10661_v5  ;;  %v10672_v54 = vmax.f32 %v1872_v62, %v1874_v48  ;;  %v2077_v50 = vrot.slane %v10652_v40, %v12690_v33  ;;  %v9074_v8 = vld [vmem:[%s12657_s3 + $0x5c4] ss:$16 sps:$4 sm:$0xff]   ;;  %v2081_v9 = vrot.slane %v10652_v40, %v10426_v13  ;;  %v9069_v4 = vld [vmem:[%s12657_s3 + $0x560] ss:$16 sps:$4 sm:$0xff]   ;;  %3170 = vmatprep.subr.bf16.mxu0 %v9071_v32 }
 0x170   : > { %v2098_v0 = vrot.slane %v10656_v44, %v12690_v33  ;;  %v2102_v34 = vrot.slane %v10656_v44, %v10426_v13  ;;  %v1905_v1 = vrot.slane %v10587_v57, %v10424_v12  ;;  %v2119_v52 = vrot.slane %v10658_v58, %v12690_v33  ;;  %v9072_v10 = vld [vmem:[%s12657_s3 + $0x5c0] ss:$16 sps:$4 sm:$0xff]   ;;  %v9077_v47 = vld [vmem:[%s12657_s3 + $0x544] ss:$16 sps:$4 sm:$0xff]   ;;  %3207 = vmatprep.subr.bf16.mxu1 %v9074_v8 }
 0x171   : > { %8815 = vrot.lane.b32.xlu0 %v8814_v35, %s9787_s21  ;;  %v2123_v55 = vrot.slane %v10658_v58, %v10426_v13  ;;  %v2140_v38 = vrot.slane %v10666_v6, %v12690_v33  ;;  %v2144_v56 = vrot.slane %v10666_v6, %v10426_v13  ;;  %v2161_v11 = vrot.slane %v10672_v54, %v12690_v33  ;;  %v9080_v23 = vld [vmem:[%s12657_s3 + $0x5a4] ss:$16 sps:$4 sm:$0xff]   ;;  %v9075_v19 = vld [vmem:[%s12657_s3 + $0x540] ss:$16 sps:$4 sm:$0xff]  }
 0x172   : > { %v2165_v20 = vrot.slane %v10672_v54, %v10426_v13  ;;  %v2207_v21 = vsel %vm2170_vm7, %v2056_v24, %v2077_v50  ;;  %v2208_v26 = vsel %vm2170_vm7, %v2060_v2, %v2081_v9  ;;  %v1922_v63 = vrot.slane %v10594_v45, %v12691_v22  ;;  %3171 = vmatpush2.bf16.msra.mxu0 %v9069_v4  ;;  %v9078_v62 = vld [vmem:[%s12657_s3 + $0x5a0] ss:$16 sps:$4 sm:$0xff]  }
 0x173   : > { %v2211_v59 = vsel %vm2175_vm8, %v2207_v21, %v2098_v0  ;;  %v2212_v17 = vsel %vm2175_vm8, %v2208_v26, %v2102_v34  ;;  %v1943_v27 = vrot.slane %v10600_v16, %v12691_v22  ;;  %v1964_v15 = vrot.slane %v10608_v28, %v12691_v22  ;;  %3208 = vmatpush1.bf16.msra.mxu1 %v9072_v10  ;;  %v9081_v10 = vld [vmem:[%s12657_s3 + $0x520] ss:$16 sps:$4 sm:$0xff]   ;;  %v9086_v26 = vld [vmem:[%s12657_s3 + $0x584] ss:$16 sps:$4 sm:$0xff]  }
 0x174   : > { %v2215_v37 = vsel %vm2180_vm9, %v2211_v59, %v2119_v52  ;;  %v2216_v14 = vsel %vm2180_vm9, %v2212_v17, %v2123_v55  ;;  %v1985_v18 = vrot.slane %v10615_v51, %v12691_v22  ;;  %v2006_v39 = vrot.slane %v10622_v3, %v12691_v22  ;;  %3172 = vmatprep.subr.bf16.mxu0 %v9077_v47 }
 0x175   : > { %v2219_v53 = vsel %vm2185_vm10, %v2215_v37, %v2140_v38  ;;  %v2220_v60 = vsel %vm2185_vm10, %v2216_v14, %v2144_v56  ;;  %v2048_v41 = vrot.slane %v10650_v30, %v12691_v22  ;;  %v2069_v36 = vrot.slane %v10652_v40, %v12691_v22  ;;  %3209 = vmatprep.subr.bf16.mxu1 %v9080_v23 }
 0x176   : > { %v10741_v42 = vsel %vm2190_vm11, %v2219_v53, %v2161_v11  ;;  %v10744_v43 = vsel %vm2190_vm11, %v2220_v60, %v2165_v20  ;;  %v2090_v61 = vrot.slane %v10656_v44, %v12691_v22  ;;  %v2111_v24 = vrot.slane %v10658_v58, %v12691_v22  ;;  %3173 = vmatpush2.bf16.msra.mxu0 %v9075_v19  ;;  %v9090_v53 = vld [vmem:[%s12657_s3 + $0x6e0] ss:$16 sps:$4 sm:$0xff]  }
 0x177   : > { %v8819_v48 = vpack.i.bf16 %v10744_v43, %v10741_v42  ;;  %v2132_v35 = vrot.slane %v10666_v6, %v12691_v22  ;;  %v2153_v2 = vrot.slane %v10672_v54, %v12691_v22  ;;  %v2171_v50 = vsel %vm2170_vm7, %v1880_v25, %v1901_v49  ;;  %3210 = vmatpush1.bf16.msra.mxu1 %v9078_v62  ;;  %v9096_v62 = vld [vmem:[%s12657_s3 + $0x6c0] ss:$16 sps:$4 sm:$0xff]  }
 0x178   : > { %v2205_v32 = vsel %vm2170_vm7, %v2048_v41, %v2069_v36  ;;  %v2052_v8 = vrot.slane %v10650_v30, %v10424_v12  ;;  %v2073_v9 = vrot.slane %v10652_v40, %v10424_v12  ;;  %v2027_v0 = vrot.slane %v10629_v7, %v12691_v22  ;;  %3211 = vmatprep.subr.bf16.mxu1 %v9086_v26  ;;  %v9093_v36 = vld [vmem:[%s12657_s3 + $0x4e0] ss:$16 sps:$4 sm:$0xff]  }
 0x179   : > { %8820 = vrot.lane.b32.xlu0 %v8819_v48, %s9787_s21  ;;  %v2176_v34 = vsel %vm2175_vm8, %v2171_v50, %v1922_v63  ;;  %v2209_v4 = vsel %vm2175_vm8, %v2205_v32, %v2090_v61  ;;  %v2094_v25 = vrot.slane %v10656_v44, %v10424_v12  ;;  %v2115_v40 = vrot.slane %v10658_v58, %v10424_v12  ;;  %v9083_v58 = vld [vmem:[%s12657_s3 + $0x524] ss:$16 sps:$4 sm:$0xff]  }
 0x17a   : > { %v2181_v49 = vsel %vm2180_vm9, %v2176_v34, %v1943_v27  ;;  %v2213_v30 = vsel %vm2180_vm9, %v2209_v4, %v2111_v24  ;;  %v2136_v52 = vrot.slane %v10666_v6, %v10424_v12  ;;  %v2157_v56 = vrot.slane %v10672_v54, %v10424_v12  ;;  %v9084_v6 = vld [vmem:[%s12657_s3 + $0x580] ss:$16 sps:$4 sm:$0xff]   ;;  %3174 = vmatprep.subr.bf16.mxu0 %v9083_v58  ;;  %v9101_v48 = vld [vmem:[%s12657_s3 + $0x4c4] ss:$16 sps:$4 sm:$0xff]   ;;  %v9117_v34 = vld [vmem:[%s12657_s3 + $0x46c] ss:$16 sps:$4 sm:$0xff]  }
 0x17b   : > { %v2186_v55 = vsel %vm2185_vm10, %v2181_v49, %v1964_v15  ;;  %v2217_v38 = vsel %vm2185_vm10, %v2213_v30, %v2132_v35  ;;  %v2206_v44 = vsel %vm2170_vm7, %v2052_v8, %v2073_v9  ;;  %v1926_v21 = vrot.slane %v10594_v45, %v10424_v12  ;;  %3175 = vmatpush2.bf16.msra.mxu0 %v9081_v10  ;;  %v9104_v24 = vld [vmem:[%s12657_s3 + $0x6a4] ss:$16 sps:$4 sm:$0xff]   ;;  %v9099_v35 = vld [vmem:[%s12657_s3 + $0x4c0] ss:$16 sps:$4 sm:$0xff]  }
 0x17c   : > { %v2191_v11 = vsel %vm2190_vm11, %v2186_v55, %v1985_v18  ;;  %v10802_v20 = vsel %vm2190_vm11, %v2217_v38, %v2153_v2  ;;  %v2210_v54 = vsel %vm2175_vm8, %v2206_v44, %v2094_v25  ;;  %v1947_v17 = vrot.slane %v10600_v16, %v10424_v12  ;;  %3212 = vmatpush1.bf16.msra.mxu1 %v9084_v6  ;;  %v9102_v2 = vld [vmem:[%s12657_s3 + $0x6a0] ss:$16 sps:$4 sm:$0xff]   ;;  %v9107_v50 = vld [vmem:[%s12657_s3 + $0x4a4] ss:$16 sps:$4 sm:$0xff]   ;;  %v9124_v25 = vld [vmem:[%s12657_s3 + $0x66c] ss:$16 sps:$4 sm:$0xff]  }
 0x17d   : > { %v2196_v47 = vsel %vm1483_vm4, %v2191_v11, %v2006_v39  ;;  %v2214_v59 = vsel %vm2180_vm9, %v2210_v54, %v2115_v40  ;;  %v1968_v45 = vrot.slane %v10608_v28, %v10424_v12  ;;  %v1989_v23 = vrot.slane %v10615_v51, %v10424_v12  ;;  %v9095_v39 = vld [vmem:[%s12657_s3 + $0x4e4] ss:$16 sps:$4 sm:$0xff]   ;;  %v9105_v8 = vld [vmem:[%s12657_s3 + $0x4a0] ss:$16 sps:$4 sm:$0xff]  }
 0x17e   : > { %v10815_v63 = vsel %vm907_vm2, %v2196_v47, %v2027_v0  ;;  %v2218_v27 = vsel %vm2185_vm10, %v2214_v59, %v2136_v52  ;;  %v2172_v16 = vsel %vm2170_vm7, %v1884_v31, %v1905_v1  ;;  %v2010_v57 = vrot.slane %v10622_v3, %v10424_v12  ;;  %v9087_v31 = vld [vmem:[%s12657_s3 + $0x500] ss:$16 sps:$4 sm:$0xff]   ;;  %v9089_v1 = vld [vmem:[%s12657_s3 + $0x504] ss:$16 sps:$4 sm:$0xff]  }
 0x17f   : > { %v8824_v37 = vpack.i.bf16 %v10802_v20, %v10815_v63  ;;  %v10825_v14 = vsel %vm2190_vm11, %v2218_v27, %v2157_v56  ;;  %v2177_v51 = vsel %vm2175_vm8, %v2172_v16, %v1926_v21  ;;  %v2031_v18 = vrot.slane %v10629_v7, %v10424_v12  ;;  %v9092_v3 = vld [vmem:[%s12657_s3 + $0x6e4] ss:$16 sps:$4 sm:$0xff]   ;;  %3176 = vmatprep.subr.bf16.mxu0 %v9089_v1  ;;  %v9108_v9 = vld [vmem:[%s12657_s3 + $0x680] ss:$16 sps:$4 sm:$0xff]  }
 0x180   : > { %v8834_v28 = vpack.i.bf16 %v10825_v14, %v10802_v20  ;;  %v2182_v15 = vsel %vm2180_vm9, %v2177_v51, %v1947_v17  ;;  %v9098_v7 = vld [vmem:[%s12657_s3 + $0x6c4] ss:$16 sps:$4 sm:$0xff]   ;;  %3221 = vmatprep.subr.bf16.mxu1 %v9092_v3  ;;  %3177 = vmatpush2.bf16.msra.mxu0 %v9087_v31  ;;  %v9111_v4 = vld [vmem:[%s12657_s3 + $0x480] ss:$16 sps:$4 sm:$0xff]  }
 0x181   : > { %8825 = vrot.lane.b32.xlu1 %v8824_v37, %s9788_s29  ;;  %v2187_v29 = vsel %vm2185_vm10, %v2182_v15, %v1968_v45  ;;  %3222 = vmatpush2.bf16.msra.mxu1 %v9090_v53  ;;  %v9110_v32 = vld [vmem:[%s12657_s3 + $0x684] ss:$16 sps:$4 sm:$0xff]  }
 0x182   : > { %8835 = vrot.lane.b32.xlu0 %v8834_v28, %s9787_s21  ;;  %v2192_v19 = vsel %vm2190_vm11, %v2187_v29, %v1989_v23  ;;  %3178 = vmatprep.subr.bf16.mxu0 %v9095_v39  ;;  %v9113_v0 = vld [vmem:[%s12657_s3 + $0x484] ss:$16 sps:$4 sm:$0xff]  }
 0x183   : > { %v2197_v60 = vsel %vm1483_vm4, %v2192_v19, %v2010_v57  ;;  %3223 = vmatprep.subr.bf16.mxu1 %v9098_v7  ;;  %vm5194_vm4 = vcmask 384000  }
 0x184   : > { %v10865_v41 = vsel %vm907_vm2, %v2197_v60, %v2031_v18  ;;  %3179 = vmatpush2.bf16.msra.mxu0 %v9093_v36  ;;  %vm4990_vm2 = vcmask 392192  }
 0x185   : > { %v8829_v61 = vpack.i.bf16 %v10865_v41, %v10815_v63  ;;  %3224 = vmatpush2.bf16.msra.mxu1 %v9096_v62  ;;  %3180 = vmatprep.subr.bf16.mxu0 %v9101_v48 }
 0x186   : > { %3225 = vmatprep.subr.bf16.mxu1 %v9104_v24 }
 0x187   : > { %8830 = vrot.lane.b32.xlu1 %v8829_v61, %s9787_s21 }
 0x188   : > { %3181 = vmatpush2.bf16.msra.mxu0 %v9099_v35 }
 0x189   : > { %3226 = vmatpush2.bf16.msra.mxu1 %v9102_v2  ;;  %3182 = vmatprep.subr.bf16.mxu0 %v9107_v50 }
 0x18a   : > { %3227 = vmatprep.subr.bf16.mxu1 %v9110_v32 }
 0x18c   : > { %3183 = vmatpush2.bf16.msra.mxu0 %v9105_v8 }
 0x18d   : > { %3228 = vmatpush2.bf16.msra.mxu1 %v9108_v9  ;;  %3184 = vmatprep.subr.bf16.mxu0 %v9113_v0  ;;  %v9115_v9 = vld [vmem:[%s12657_s3 + $0x468] ss:$16 sps:$4 sm:$0xff]  }
 0x18e   : > { %3240 = vmatprep.subr.bf16.mxu1 %v9117_v34 }
 0x190   : > { %3185 = vmatpush2.bf16.msra.mxu0 %v9111_v4  ;;  %v9121_v4 = vld [vmem:[%s12657_s3 + $0x44c] ss:$16 sps:$4 sm:$0xff]  }
 0x191   : > { %3283 = vmatprep.subr.bf16.mxu0 %v9124_v25 }
 0x1e3   : > { %v8816_v49 = vpop.permute.xlu0 %8815 }
 0x1e4   : > { %v8818_v55 = vunpack.i.h.bf16 %v8816_v49  ;;  %v8817_v38 = vunpack.i.l.bf16 %v8816_v49  ;;  %v9122_v49 = vld [vmem:[%s12657_s3 + $0x668] ss:$16 sps:$4 sm:$0xff]  }
 0x1e6   : > { %v2252_v44 = vsel %vm2249_vm12, %v8817_v38, %v8818_v55 }
 0x1e7   : > { %v2275_v47 = vmax.f32 %v10661_v5, %v2252_v44  ;;  %v9133_v44 = vld [vmem:[%s12657_s3 + $0x40c] ss:$16 sps:$4 sm:$0xff]  }
 0x1eb   : > { %v8821_v30 = vpop.permute.xlu0 %8820 }
 0x1ec   : > { %v8823_v40 = vunpack.i.h.bf16 %v8821_v30  ;;  %v8822_v52 = vunpack.i.l.bf16 %v8821_v30  ;;  %v9130_v30 = vld [vmem:[%s12657_s3 + $0x64c] ss:$16 sps:$4 sm:$0xff]  }
 0x1ee   : > { %v2255_v56 = vsel %vm2249_vm12, %v8822_v52, %v8823_v40 }
 0x1ef   : > { %v2279_v54 = vmax.f32 %v10741_v42, %v2255_v56  ;;  %v9125_v56 = vld [vmem:[%s12657_s3 + $0x428] ss:$16 sps:$4 sm:$0xff]  }
 0x1f3   : > { %v8826_v10 = vpop.permute.xlu1 %8825 }
 0x1f4   : > { %v8828_v58 = vunpack.i.h.bf16 %v8826_v10  ;;  %v8827_v6 = vunpack.i.l.bf16 %v8826_v10  ;;  %v8836_v11 = vpop.permute.xlu0 %8835  ;;  %v9134_v10 = vld [vmem:[%s12657_s3 + $0x628] ss:$16 sps:$4 sm:$0xff]  }
 0x1f5   : > { %v8838_v21 = vunpack.i.h.bf16 %v8836_v11  ;;  %v8837_v26 = vunpack.i.l.bf16 %v8836_v11  ;;  %v9139_v11 = vld [vmem:[%s12657_s3 + $0x3ec] ss:$16 sps:$4 sm:$0xff]  }
 0x1f6   : > { %v2272_v59 = vsel %vm2270_vm13, %v8823_v40, %v8828_v58  ;;  %v2271_v17 = vsel %vm2270_vm13, %v8818_v55, %v8827_v6  ;;  %v9119_v40 = vld [vmem:[%s12657_s3 + $0x448] ss:$16 sps:$4 sm:$0xff]   ;;  %v9142_v58 = vld [vmem:[%s12657_s3 + $0x60c] ss:$16 sps:$4 sm:$0xff]  }
 0x1f7   : > { %v2280_v27 = vmax.f32 %v10744_v43, %v2272_v59  ;;  %v2276_v45 = vmax.f32 %v10664_v46, %v2271_v17  ;;  %v2253_v23 = vsel %vm2249_vm12, %v8837_v26, %v8838_v21  ;;  %v2254_v37 = vsel %vm2249_vm12, %v8838_v21, %v8822_v52  ;;  %v9127_v52 = vld [vmem:[%s12657_s3 + $0x42c] ss:$16 sps:$4 sm:$0xff]   ;;  %v9128_v55 = vld [vmem:[%s12657_s3 + $0x648] ss:$16 sps:$4 sm:$0xff]  }
 0x1f8   : > { %v2277_v42 = vmax.f32 %v10802_v20, %v2253_v23  ;;  %v2278_v16 = vmax.f32 %v10825_v14, %v2254_v37  ;;  %v9131_v6 = vld [vmem:[%s12657_s3 + $0x408] ss:$16 sps:$4 sm:$0xff]   ;;  %v9148_v21 = vld [vmem:[%s12657_s3 + $0x5ec] ss:$16 sps:$4 sm:$0xff]  }
 0x1f9   : > { %v8605_v28 = vpack.c.bf16 %v2280_v27, %v2279_v54  ;;  %v8603_v5 = vpack.c.bf16 %v2276_v45, %v2275_v47  ;;  %v8831_v15 = vpop.permute.xlu1 %8830  ;;  %v9140_v54 = vld [vmem:[%s12657_s3 + $0x608] ss:$16 sps:$4 sm:$0xff]   ;;  %v9145_v47 = vld [vmem:[%s12657_s3 + $0x3cc] ss:$16 sps:$4 sm:$0xff]  }
 0x1fa   : > { %v8604_v51 = vpack.c.bf16 %v2278_v16, %v2277_v42  ;;  %v8833_v57 = vunpack.i.h.bf16 %v8831_v15  ;;  %v8832_v43 = vunpack.i.l.bf16 %v8831_v15  ;;  %v9137_v26 = vld [vmem:[%s12657_s3 + $0x3e8] ss:$16 sps:$4 sm:$0xff]   ;;  %v9154_v17 = vld [vmem:[%s12657_s3 + $0x5cc] ss:$16 sps:$4 sm:$0xff]  }
 0x1fb   : > { %2312 = vst.msk [vmem:[#allocation3 + $0x18] sm:$0x77] %vm2311_vm1, %v8605_v28  ;;  %v9146_v59 = vld [vmem:[%s12657_s3 + $0x5e8] ss:$16 sps:$4 sm:$0xff]   ;;  %v9151_v45 = vld [vmem:[%s12657_s3 + $0x3ac] ss:$16 sps:$4 sm:$0xff]  }
 0x1fc   : > { %2308 = vst.msk [vmem:[#allocation3 + $0x8] sm:$0xff] %vm2307_vm0, %v8603_v5  ;;  %2309 = vst [vmem:[#allocation3 + $0x10] sm:$0x77] %v8604_v51  ;;  %v2251_v46 = vsel %vm2249_vm12, %v8833_v57, %v8817_v38  ;;  %v2250_v29 = vsel %vm2249_vm12, %v8832_v43, %v8833_v57  ;;  %v9136_v38 = vld [vmem:[%s12657_s3 + $0x62c] ss:$16 sps:$4 sm:$0xff]  }
 0x1fd   : > { %v2274_v31 = vmax.f32 %v10865_v41, %v2251_v46  ;;  %v2273_v1 = vmax.f32 %v10815_v63, %v2250_v29  ;;  %v9143_v27 = vld [vmem:[%s12657_s3 + $0x3c8] ss:$16 sps:$4 sm:$0xff]   ;;  %v9160_v37 = vld [vmem:[%s12657_s3 + $0x5ac] ss:$16 sps:$4 sm:$0xff]  }
 0x1fe   : > { %v9152_v23 = vld [vmem:[%s12657_s3 + $0x5c8] ss:$16 sps:$4 sm:$0xff]   ;;  %v9157_v16 = vld [vmem:[%s12657_s3 + $0x38c] ss:$16 sps:$4 sm:$0xff]  }
 0x1ff   : > { %v10928_v20 = vpack.c.bf16 %v2274_v31, %v2273_v1  ;;  %v9149_v42 = vld [vmem:[%s12657_s3 + $0x3a8] ss:$16 sps:$4 sm:$0xff]   ;;  %v9166_v5 = vld [vmem:[%s12657_s3 + $0x58c] ss:$16 sps:$4 sm:$0xff]  }
 0x200   : > { %v9158_v28 = vld [vmem:[%s12657_s3 + $0x5a8] ss:$16 sps:$4 sm:$0xff]   ;;  %v9163_v15 = vld [vmem:[%s12657_s3 + $0x56c] ss:$16 sps:$4 sm:$0xff]  }
 0x201   : > { %2305 = vst [vmem:[#allocation3] sm:$0xff] %v10928_v20  ;;  %v9155_v51 = vld [vmem:[%s12657_s3 + $0x388] ss:$16 sps:$4 sm:$0xff]   ;;  %v9172_v43 = vld [vmem:[%s12657_s3 + $0x6ec] ss:$16 sps:$4 sm:$0xff]  }
 0x202   : > { %v10933_v18 = vld [vmem:[#allocation3 + $0x18] sm:$0x77] }
 0x203   : > { %v10931_v14 = vld [vmem:[#allocation3 + $0x8] sm:$0xff]  ;;  %v10939_v3 = vld [vmem:[#allocation3 + $0x10] sm:$0x77] }
 0x204   : > { %v7675_v19 = vcombine.high %v10931_v14, %v10933_v18  ;;  %v7674_v53 = vcombine.low %v10931_v14, %v10933_v18  ;;  %v7673_v60 = vcombine.high %v10928_v20, %v10939_v3  ;;  %v7672_v63 = vcombine.low %v10928_v20, %v10939_v3  ;;  %v9164_v57 = vld [vmem:[%s12657_s3 + $0x588] ss:$16 sps:$4 sm:$0xff]   ;;  %v9169_v29 = vld [vmem:[%s12657_s3 + $0x54c] ss:$16 sps:$4 sm:$0xff]  }
 0x205   : > { %v9161_v46 = vld [vmem:[%s12657_s3 + $0x568] ss:$16 sps:$4 sm:$0xff]   ;;  %v9178_v1 = vld [vmem:[%s12657_s3 + $0x6cc] ss:$16 sps:$4 sm:$0xff]  }
 0x206   : > { %v2584_v39 = vshll.u32 %v7675_v19, 16  ;;  %v2577_v7 = vshll.u32 %v7674_v53, 16  ;;  %v2570_v41 = vshll.u32 %v7673_v60, 16  ;;  %v2563_v36 = vshll.u32 %v7672_v63, 16  ;;  %v9170_v31 = vld [vmem:[%s12657_s3 + $0x6e8] ss:$16 sps:$4 sm:$0xff]  }
 0x207   : > { %v2582_v61 = vshrl.u32 %v7675_v19, 16  ;;  %v2575_v48 = vshrl.u32 %v7674_v53, 16  ;;  %v2568_v35 = vshrl.u32 %v7673_v60, 16  ;;  %v2561_v50 = vshrl.u32 %v7672_v63, 16  ;;  %v9167_v19 = vld [vmem:[%s12657_s3 + $0x548] ss:$16 sps:$4 sm:$0xff]  }
 0x208   : > { %v2586_v62 = vrot.slane %v2584_v39, 1  ;;  %v2579_v24 = vrot.slane %v2577_v7, 1  ;;  %v2572_v2 = vrot.slane %v2570_v41, 1  ;;  %v2565_v32 = vrot.slane %v2563_v36, 1  ;;  %v9175_v53 = vld [vmem:[%s12657_s3 + $0x52c] ss:$16 sps:$4 sm:$0xff]  }
 0x209   : > { %v9176_v60 = vld [vmem:[%s12657_s3 + $0x6c8] ss:$16 sps:$4 sm:$0xff]   ;;  %v9184_v63 = vld [vmem:[%s12657_s3 + $0x6ac] ss:$16 sps:$4 sm:$0xff]  }
 0x20a   : > { %v2587_v8 = vor.u32 %v2586_v62, %v2582_v61  ;;  %v10948_v0 = vor.u32 %v2579_v24, %v2575_v48  ;;  %v2573_v34 = vor.u32 %v2572_v2, %v2568_v35  ;;  %v10953_v25 = vor.u32 %v2565_v32, %v2561_v50  ;;  %v9173_v39 = vld [vmem:[%s12657_s3 + $0x528] ss:$16 sps:$4 sm:$0xff]   ;;  %v9181_v7 = vld [vmem:[%s12657_s3 + $0x50c] ss:$16 sps:$4 sm:$0xff]   ;;  %v9196_v24 = vld [vmem:[%s12657_s3 + $0xe4] ss:$16 sps:$4 sm:$0xff]  }
 0x20b   : > { %v9182_v41 = vld [vmem:[%s12657_s3 + $0x6a8] ss:$16 sps:$4 sm:$0xff]   ;;  %v9190_v36 = vld [vmem:[%s12657_s3 + $0x68c] ss:$16 sps:$4 sm:$0xff]   ;;  %v11103_v50 = vld [vmem:[#allocation3 + $0x10] sm:$0x33] }
 0x20c   : > { %7788 = vmatprep.mubr.msk.bf16.mxu1 %vm1792_vm5, %v2587_v8  ;;  %3186 = vmatprep.mubr.bf16.mxu0 %v2573_v34  ;;  %v9179_v61 = vld [vmem:[%s12657_s3 + $0x508] ss:$16 sps:$4 sm:$0xff]   ;;  %v9187_v62 = vld [vmem:[%s12657_s3 + $0x4ec] ss:$16 sps:$4 sm:$0xff]   ;;  %v9194_v32 = vld [vmem:[%s12657_s3 + $0xe0] ss:$16 sps:$4 sm:$0xff]  }
 0x20d   : > { %3230 = vmatmul.mubr.bf16.vlgmr.msra.gmra.mxu1 %v10948_v0  ;;  %3187 = vmatmul.mubr.bf16.vlgmr.msra.gmra.mxu0 %v10953_v25  ;;  %v9188_v48 = vld [vmem:[%s12657_s3 + $0x688] ss:$16 sps:$4 sm:$0xff]   ;;  %v9193_v2 = vld [vmem:[%s12657_s3 + $0x4cc] ss:$16 sps:$4 sm:$0xff]  }
 0x20e   : > { %3241 = vmatpush1.bf16.msra.mxu1 %v9115_v9  ;;  %3272 = vmatprep.mubr.bf16.mxu1 %v2573_v34  ;;  %v9185_v35 = vld [vmem:[%s12657_s3 + $0x4e8] ss:$16 sps:$4 sm:$0xff]   ;;  %v11116_v34 = vcombine.high %v10928_v20, %v11103_v50 }
 0x20f   : > { %3242 = vmatprep.subr.bf16.mxu1 %v9121_v4  ;;  %3284 = vmatpush1.bf16.msra.mxu0 %v9122_v49  ;;  %v9191_v9 = vld [vmem:[%s12657_s3 + $0x4c8] ss:$16 sps:$4 sm:$0xff]   ;;  %v9199_v4 = vld [vmem:[%s12657_s3 + $0x4ac] ss:$16 sps:$4 sm:$0xff]   ;;  %v9200_v49 = vld [vmem:[%s12657_s3 + $0xc0] ss:$16 sps:$4 sm:$0xff]  }
 0x210   : > { %7789 = vmatprep.mubr.msk.bf16.mxu0 %vm1792_vm5, %v2587_v8  ;;  %3285 = vmatprep.subr.bf16.mxu0 %v9130_v30  ;;  %v9202_v8 = vld [vmem:[%s12657_s3 + $0xc4] ss:$16 sps:$4 sm:$0xff]  }
 0x211   : > { %v9208_v30 = vld [vmem:[%s12657_s3 + $0xa4] ss:$16 sps:$4 sm:$0xff]  }
 0x212   : > { %3243 = vmatpush1.bf16.msra.mxu1 %v9119_v40  ;;  %v9205_v40 = vld [vmem:[%s12657_s3 + $0x48c] ss:$16 sps:$4 sm:$0xff]  }
 0x213   : > { %3244 = vmatprep.subr.bf16.mxu1 %v9127_v52  ;;  %3286 = vmatpush1.bf16.msra.mxu0 %v9128_v55  ;;  %v9206_v52 = vld [vmem:[%s12657_s3 + $0xa0] ss:$16 sps:$4 sm:$0xff]   ;;  %v9211_v55 = vld [vmem:[%s12657_s3 + $0x84] ss:$16 sps:$4 sm:$0xff]  }
 0x214   : > { %3287 = vmatprep.subr.bf16.mxu0 %v9136_v38  ;;  %v9203_v38 = vld [vmem:[%s12657_s3 + $0x488] ss:$16 sps:$4 sm:$0xff]  }
 0x216   : > { %3245 = vmatpush1.bf16.msra.mxu1 %v9125_v56  ;;  %v9214_v56 = vld [vmem:[%s12657_s3 + $0x2e4] ss:$16 sps:$4 sm:$0xff]  }
 0x217   : > { %3246 = vmatprep.subr.bf16.mxu1 %v9133_v44  ;;  %3288 = vmatpush1.bf16.msra.mxu0 %v9134_v10  ;;  %v9209_v44 = vld [vmem:[%s12657_s3 + $0x80] ss:$16 sps:$4 sm:$0xff]   ;;  %v11150_v10 = vld [vmem:[#allocation3 + $0x18] sm:$0x33] }
 0x218   : > { %3289 = vmatprep.subr.bf16.mxu0 %v9142_v58  ;;  %v9218_v58 = vld [vmem:[%s12657_s3 + $0x64] ss:$16 sps:$4 sm:$0xff]  }
 0x21a   : > { %3247 = vmatpush1.bf16.msra.mxu1 %v9131_v6  ;;  %v9212_v6 = vld [vmem:[%s12657_s3 + $0x2e0] ss:$16 sps:$4 sm:$0xff]  }
 0x21b   : > { %3248 = vmatprep.subr.bf16.mxu1 %v9139_v11  ;;  %3290 = vmatpush1.bf16.msra.mxu0 %v9140_v54  ;;  %v9221_v11 = vld [vmem:[%s12657_s3 + $0x2c4] ss:$16 sps:$4 sm:$0xff]   ;;  %v11163_v54 = vcombine.high %v10931_v14, %v11150_v10 }
 0x21c   : > { %3291 = vmatprep.subr.bf16.mxu0 %v9148_v21  ;;  %v9216_v21 = vld [vmem:[%s12657_s3 + $0x60] ss:$16 sps:$4 sm:$0xff]  }
 0x21e   : > { %3249 = vmatpush1.bf16.msra.mxu1 %v9137_v26  ;;  %v9224_v26 = vld [vmem:[%s12657_s3 + $0x44] ss:$16 sps:$4 sm:$0xff]  }
 0x21f   : > { %3250 = vmatprep.subr.bf16.mxu1 %v9145_v47  ;;  %3292 = vmatpush1.bf16.msra.mxu0 %v9146_v59  ;;  %v9219_v47 = vld [vmem:[%s12657_s3 + $0x2c0] ss:$16 sps:$4 sm:$0xff]   ;;  %v9227_v59 = vld [vmem:[%s12657_s3 + $0x2a4] ss:$16 sps:$4 sm:$0xff]  }
 0x220   : > { %3293 = vmatprep.subr.bf16.mxu0 %v9154_v17  ;;  %v9230_v17 = vld [vmem:[%s12657_s3 + $0x24] ss:$16 sps:$4 sm:$0xff]  }
 0x222   : > { %3251 = vmatpush1.bf16.msra.mxu1 %v9143_v27  ;;  %v9225_v27 = vld [vmem:[%s12657_s3 + $0x2a0] ss:$16 sps:$4 sm:$0xff]  }
 0x223   : > { %3252 = vmatprep.subr.bf16.mxu1 %v9151_v45  ;;  %3294 = vmatpush1.bf16.msra.mxu0 %v9152_v23  ;;  %v9233_v45 = vld [vmem:[%s12657_s3 + $0x284] ss:$16 sps:$4 sm:$0xff]   ;;  %v9228_v23 = vld [vmem:[%s12657_s3 + $0x20] ss:$16 sps:$4 sm:$0xff]  }
 0x224   : > { %3295 = vmatprep.subr.bf16.mxu0 %v9160_v37  ;;  %v9236_v37 = vld [vmem:[%s12657_s3 + $0x4] ss:$16 sps:$4 sm:$0xff]  }
 0x226   : > { %3253 = vmatpush1.bf16.msra.mxu1 %v9149_v42  ;;  %v9231_v42 = vld [vmem:[%s12657_s3 + $0x280] ss:$16 sps:$4 sm:$0xff]  }
 0x227   : > { %3254 = vmatprep.subr.bf16.mxu1 %v9157_v16  ;;  %3296 = vmatpush1.bf16.msra.mxu0 %v9158_v28  ;;  %v9239_v16 = vld [vmem:[%s12657_s3 + $0x264] ss:$16 sps:$4 sm:$0xff]   ;;  %v9234_v28 = vld [vmem:[%s12657_s3] ss:$16 sps:$4 sm:$0xff]  }
 0x228   : > { %3297 = vmatprep.subr.bf16.mxu0 %v9166_v5  ;;  %v9242_v5 = vld [vmem:[%s12657_s3 + $0x1e4] ss:$16 sps:$4 sm:$0xff]  }
 0x22a   : > { %3255 = vmatpush1.bf16.msra.mxu1 %v9155_v51  ;;  %v9237_v51 = vld [vmem:[%s12657_s3 + $0x260] ss:$16 sps:$4 sm:$0xff]  }
 0x22b   : > { %3256 = vmatprep.subr.bf16.mxu1 %v9163_v15  ;;  %3298 = vmatpush1.bf16.msra.mxu0 %v9164_v57  ;;  %v9245_v15 = vld [vmem:[%s12657_s3 + $0x244] ss:$16 sps:$4 sm:$0xff]   ;;  %v9240_v57 = vld [vmem:[%s12657_s3 + $0x1e0] ss:$16 sps:$4 sm:$0xff]  }
 0x22c   : > { %3307 = vmatprep.subr.bf16.mxu0 %v9172_v43  ;;  %v9248_v43 = vld [vmem:[%s12657_s3 + $0x1c4] ss:$16 sps:$4 sm:$0xff]  }
 0x22e   : > { %3257 = vmatpush2.bf16.msra.mxu1 %v9161_v46  ;;  %v9243_v46 = vld [vmem:[%s12657_s3 + $0x240] ss:$16 sps:$4 sm:$0xff]  }
 0x22f   : > { %3258 = vmatprep.subr.bf16.mxu1 %v9169_v29  ;;  %3308 = vmatpush2.bf16.msra.mxu0 %v9170_v31  ;;  %v9251_v29 = vld [vmem:[%s12657_s3 + $0x224] ss:$16 sps:$4 sm:$0xff]   ;;  %v9246_v31 = vld [vmem:[%s12657_s3 + $0x1c0] ss:$16 sps:$4 sm:$0xff]  }
 0x230   : > { %3309 = vmatprep.subr.bf16.mxu0 %v9178_v1  ;;  %v9254_v1 = vld [vmem:[%s12657_s3 + $0x1a4] ss:$16 sps:$4 sm:$0xff]  }
 0x232   : > { %3259 = vmatpush2.bf16.msra.mxu1 %v9167_v19  ;;  %v9249_v19 = vld [vmem:[%s12657_s3 + $0x220] ss:$16 sps:$4 sm:$0xff]  }
 0x233   : > { %3260 = vmatprep.subr.bf16.mxu1 %v9175_v53  ;;  %3310 = vmatpush2.bf16.msra.mxu0 %v9176_v60  ;;  %v9257_v53 = vld [vmem:[%s12657_s3 + $0x204] ss:$16 sps:$4 sm:$0xff]   ;;  %v9252_v60 = vld [vmem:[%s12657_s3 + $0x1a0] ss:$16 sps:$4 sm:$0xff]  }
 0x234   : > { %3311 = vmatprep.subr.bf16.mxu0 %v9184_v63  ;;  %v9260_v63 = vld [vmem:[%s12657_s3 + $0x184] ss:$16 sps:$4 sm:$0xff]  }
 0x236   : > { %3261 = vmatpush2.bf16.msra.mxu1 %v9173_v39  ;;  %v9255_v39 = vld [vmem:[%s12657_s3 + $0x200] ss:$16 sps:$4 sm:$0xff]  }
 0x237   : > { %3262 = vmatprep.subr.bf16.mxu1 %v9181_v7  ;;  %3312 = vmatpush2.bf16.msra.mxu0 %v9182_v41  ;;  %v9263_v7 = vld [vmem:[%s12657_s3 + $0x364] ss:$16 sps:$4 sm:$0xff]   ;;  %v9258_v41 = vld [vmem:[%s12657_s3 + $0x180] ss:$16 sps:$4 sm:$0xff]  }
 0x238   : > { %3313 = vmatprep.subr.bf16.mxu0 %v9190_v36  ;;  %v9266_v36 = vld [vmem:[%s12657_s3 + $0x164] ss:$16 sps:$4 sm:$0xff]  }
 0x23a   : > { %3263 = vmatpush2.bf16.msra.mxu1 %v9179_v61  ;;  %v9261_v61 = vld [vmem:[%s12657_s3 + $0x360] ss:$16 sps:$4 sm:$0xff]  }
 0x23b   : > { %3264 = vmatprep.subr.bf16.mxu1 %v9187_v62  ;;  %3314 = vmatpush2.bf16.msra.mxu0 %v9188_v48  ;;  %v9269_v62 = vld [vmem:[%s12657_s3 + $0x344] ss:$16 sps:$4 sm:$0xff]   ;;  %v9264_v48 = vld [vmem:[%s12657_s3 + $0x160] ss:$16 sps:$4 sm:$0xff]  }
 0x23c   : > { %3902 = vmatprep.subr.bf16.mxu0 %v9196_v24  ;;  %v9272_v24 = vld [vmem:[%s12657_s3 + $0x144] ss:$16 sps:$4 sm:$0xff]  }
 0x23e   : > { %3265 = vmatpush2.bf16.msra.mxu1 %v9185_v35  ;;  %3316 = vmatmul.mubr.bf16.vlgmr.msra.gmra.mxu0 %v10948_v0  ;;  %v9197_v0 = vld [vmem:[%s12657_s3 + $0x4a8] ss:$16 sps:$4 sm:$0xff]   ;;  %v9267_v35 = vld [vmem:[%s12657_s3 + $0x340] ss:$16 sps:$4 sm:$0xff]  }
 0x23f   : > { %3266 = vmatprep.subr.bf16.mxu1 %v9193_v2  ;;  %3903 = vmatpush1.bf16.msra.mxu0 %v9194_v32  ;;  %v9275_v2 = vld [vmem:[%s12657_s3 + $0x324] ss:$16 sps:$4 sm:$0xff]   ;;  %v9270_v32 = vld [vmem:[%s12657_s3 + $0x140] ss:$16 sps:$4 sm:$0xff]  }
 0x240   : > { %3934 = vmatprep.mubr.bf16.mxu0 %v11116_v34  ;;  %3904 = vmatprep.subr.bf16.mxu0 %v9202_v8  ;;  %v9278_v8 = vld [vmem:[%s12657_s3 + $0x124] ss:$16 sps:$4 sm:$0xff]  }
 0x242   : > { %3267 = vmatpush2.bf16.msra.mxu1 %v9191_v9  ;;  %v9273_v9 = vld [vmem:[%s12657_s3 + $0x320] ss:$16 sps:$4 sm:$0xff]  }
 0x243   : > { %3268 = vmatprep.subr.bf16.mxu1 %v9199_v4  ;;  %3905 = vmatpush1.bf16.msra.mxu0 %v9200_v49  ;;  %v9281_v4 = vld [vmem:[%s12657_s3 + $0x304] ss:$16 sps:$4 sm:$0xff]   ;;  %v9276_v49 = vld [vmem:[%s12657_s3 + $0x120] ss:$16 sps:$4 sm:$0xff]  }
 0x244   : > { %3906 = vmatprep.subr.bf16.mxu0 %v9208_v30  ;;  %v9284_v30 = vld [vmem:[%s12657_s3 + $0x104] ss:$16 sps:$4 sm:$0xff]  }
 0x246   : > { %3269 = vmatpush2.bf16.msra.mxu1 %v9197_v0  ;;  %v9279_v0 = vld [vmem:[%s12657_s3 + $0x300] ss:$16 sps:$4 sm:$0xff]  }
 0x247   : > { %3270 = vmatprep.subr.bf16.mxu1 %v9205_v40  ;;  %3907 = vmatpush1.bf16.msra.mxu0 %v9206_v52  ;;  %v9288_v40 = vld [vmem:[%s12657_s3 + $0xec] ss:$16 sps:$4 sm:$0xff]   ;;  %v9282_v52 = vld [vmem:[%s12657_s3 + $0x100] ss:$16 sps:$4 sm:$0xff]  }
 0x248   : > { %3908 = vmatprep.subr.bf16.mxu0 %v9211_v55  ;;  %v9294_v55 = vld [vmem:[%s12657_s3 + $0x2ec] ss:$16 sps:$4 sm:$0xff]  }
 0x24a   : > { %3271 = vmatpush2.bf16.msra.mxu1 %v9203_v38  ;;  %v9286_v38 = vld [vmem:[%s12657_s3 + $0xe8] ss:$16 sps:$4 sm:$0xff]  }
 0x24b   : > { %3945 = vmatprep.subr.bf16.mxu1 %v9214_v56  ;;  %3909 = vmatpush1.bf16.msra.mxu0 %v9209_v44  ;;  %v11311_v56 = vcombine.low %v10931_v14, %v11150_v10  ;;  %v9291_v44 = vld [vmem:[%s12657_s3 + $0xcc] ss:$16 sps:$4 sm:$0xff]   ;;  %v9289_v10 = vld [vmem:[%s12657_s3 + $0xc8] ss:$16 sps:$4 sm:$0xff]  }
 0x24c   : > { %3910 = vmatprep.subr.bf16.mxu0 %v9218_v58  ;;  %v9292_v58 = vld [vmem:[%s12657_s3 + $0x2e8] ss:$16 sps:$4 sm:$0xff]   ;;  %v9300_v14 = vld [vmem:[%s12657_s3 + $0x2cc] ss:$16 sps:$4 sm:$0xff]  }
 0x24d   : > { %3273 = vmatmul.mubr.bf16.vlgmr.msra.gmra.mxu1 %v10953_v25  ;;  %v9222_v25 = vld [vmem:[%s12657_s3 + $0x40] ss:$16 sps:$4 sm:$0xff]  }
 0x24e   : > { %3946 = vmatpush1.bf16.msra.mxu1 %v9212_v6  ;;  %7906 = vmatprep.mubr.msk.bf16.mxu1 %vm1792_vm5, %v11163_v54  ;;  %v11321_v6 = vcombine.low %v10928_v20, %v11103_v50  ;;  %v9297_v20 = vld [vmem:[%s12657_s3 + $0xac] ss:$16 sps:$4 sm:$0xff]   ;;  %v9298_v50 = vld [vmem:[%s12657_s3 + $0x2c8] ss:$16 sps:$4 sm:$0xff]  }
 0x24f   : > { %3947 = vmatprep.subr.bf16.mxu1 %v9221_v11  ;;  %3911 = vmatpush1.bf16.msra.mxu0 %v9216_v21  ;;  %v9295_v11 = vld [vmem:[%s12657_s3 + $0xa8] ss:$16 sps:$4 sm:$0xff]   ;;  %v9303_v21 = vld [vmem:[%s12657_s3 + $0x8c] ss:$16 sps:$4 sm:$0xff]  }
 0x250   : > { %3912 = vmatprep.subr.bf16.mxu0 %v9224_v26  ;;  %v9312_v26 = vld [vmem:[%s12657_s3 + $0x28c] ss:$16 sps:$4 sm:$0xff]  }
 0x252   : > { %3948 = vmatpush1.bf16.msra.mxu1 %v9219_v47  ;;  %v9301_v47 = vld [vmem:[%s12657_s3 + $0x88] ss:$16 sps:$4 sm:$0xff]  }
 0x253   : > { %3949 = vmatprep.subr.bf16.mxu1 %v9227_v59  ;;  %3913 = vmatpush1.bf16.msra.mxu0 %v9222_v25  ;;  %v9309_v59 = vld [vmem:[%s12657_s3 + $0x6c] ss:$16 sps:$4 sm:$0xff]   ;;  %v9310_v25 = vld [vmem:[%s12657_s3 + $0x288] ss:$16 sps:$4 sm:$0xff]  }
 0x254   : > { %3914 = vmatprep.subr.bf16.mxu0 %v9230_v17  ;;  %v9318_v17 = vld [vmem:[%s12657_s3 + $0x26c] ss:$16 sps:$4 sm:$0xff]  }
 0x256   : > { %3950 = vmatpush1.bf16.msra.mxu1 %v9225_v27  ;;  %v9307_v27 = vld [vmem:[%s12657_s3 + $0x68] ss:$16 sps:$4 sm:$0xff]  }
 0x257   : > { %3951 = vmatprep.subr.bf16.mxu1 %v9233_v45  ;;  %3915 = vmatpush1.bf16.msra.mxu0 %v9228_v23  ;;  %v9315_v45 = vld [vmem:[%s12657_s3 + $0x4c] ss:$16 sps:$4 sm:$0xff]   ;;  %v9316_v23 = vld [vmem:[%s12657_s3 + $0x268] ss:$16 sps:$4 sm:$0xff]  }
 0x258   : > { %3916 = vmatprep.subr.bf16.mxu0 %v9236_v37  ;;  %v9324_v37 = vld [vmem:[%s12657_s3 + $0x24c] ss:$16 sps:$4 sm:$0xff]  }
 0x25a   : > { %3952 = vmatpush1.bf16.msra.mxu1 %v9231_v42  ;;  %v9313_v42 = vld [vmem:[%s12657_s3 + $0x48] ss:$16 sps:$4 sm:$0xff]  }
 0x25b   : > { %3953 = vmatprep.subr.bf16.mxu1 %v9239_v16  ;;  %3917 = vmatpush1.bf16.msra.mxu0 %v9234_v28  ;;  %v9321_v16 = vld [vmem:[%s12657_s3 + $0x2c] ss:$16 sps:$4 sm:$0xff]   ;;  %v9322_v28 = vld [vmem:[%s12657_s3 + $0x248] ss:$16 sps:$4 sm:$0xff]  }
 0x25c   : > { %3918 = vmatprep.subr.bf16.mxu0 %v9242_v5  ;;  %v9330_v5 = vld [vmem:[%s12657_s3 + $0x22c] ss:$16 sps:$4 sm:$0xff]  }
 0x25e   : > { %3954 = vmatpush1.bf16.msra.mxu1 %v9237_v51  ;;  %v9319_v51 = vld [vmem:[%s12657_s3 + $0x28] ss:$16 sps:$4 sm:$0xff]  }
 0x25f   : > { %3955 = vmatprep.subr.bf16.mxu1 %v9245_v15  ;;  %3919 = vmatpush2.bf16.msra.mxu0 %v9240_v57  ;;  %v9327_v15 = vld [vmem:[%s12657_s3 + $0xc] ss:$16 sps:$4 sm:$0xff]   ;;  %v9328_v57 = vld [vmem:[%s12657_s3 + $0x228] ss:$16 sps:$4 sm:$0xff]  }
 0x260   : > { %3920 = vmatprep.subr.bf16.mxu0 %v9248_v43  ;;  %v9336_v43 = vld [vmem:[%s12657_s3 + $0x20c] ss:$16 sps:$4 sm:$0xff]  }
 0x262   : > { %3956 = vmatpush1.bf16.msra.mxu1 %v9243_v46  ;;  %v9325_v46 = vld [vmem:[%s12657_s3 + $0x8] ss:$16 sps:$4 sm:$0xff]  }
 0x263   : > { %3957 = vmatprep.subr.bf16.mxu1 %v9251_v29  ;;  %3921 = vmatpush2.bf16.msra.mxu0 %v9246_v31  ;;  %v9333_v29 = vld [vmem:[%s12657_s3 + $0x1ec] ss:$16 sps:$4 sm:$0xff]   ;;  %v9334_v31 = vld [vmem:[%s12657_s3 + $0x208] ss:$16 sps:$4 sm:$0xff]  }
 0x264   : > { %3922 = vmatprep.subr.bf16.mxu0 %v9254_v1  ;;  %v9342_v1 = vld [vmem:[%s12657_s3 + $0x36c] ss:$16 sps:$4 sm:$0xff]  }
 0x266   : > { %3958 = vmatpush1.bf16.msra.mxu1 %v9249_v19  ;;  %v9331_v19 = vld [vmem:[%s12657_s3 + $0x1e8] ss:$16 sps:$4 sm:$0xff]  }
 0x267   : > { %3959 = vmatprep.subr.bf16.mxu1 %v9257_v53  ;;  %3923 = vmatpush2.bf16.msra.mxu0 %v9252_v60  ;;  %v9339_v53 = vld [vmem:[%s12657_s3 + $0x1cc] ss:$16 sps:$4 sm:$0xff]   ;;  %v9340_v60 = vld [vmem:[%s12657_s3 + $0x368] ss:$16 sps:$4 sm:$0xff]  }
 0x268   : > { %3924 = vmatprep.subr.bf16.mxu0 %v9260_v63  ;;  %v9348_v63 = vld [vmem:[%s12657_s3 + $0x34c] ss:$16 sps:$4 sm:$0xff]  }
 0x26a   : > { %3960 = vmatpush1.bf16.msra.mxu1 %v9255_v39  ;;  %v9337_v39 = vld [vmem:[%s12657_s3 + $0x1c8] ss:$16 sps:$4 sm:$0xff]  }
 0x26b   : > { %3969 = vmatprep.subr.bf16.mxu1 %v9263_v7  ;;  %3925 = vmatpush2.bf16.msra.mxu0 %v9258_v41  ;;  %v9345_v7 = vld [vmem:[%s12657_s3 + $0x1ac] ss:$16 sps:$4 sm:$0xff]   ;;  %v9346_v41 = vld [vmem:[%s12657_s3 + $0x348] ss:$16 sps:$4 sm:$0xff]  }
 0x26c   : > { %3926 = vmatprep.subr.bf16.mxu0 %v9266_v36  ;;  %v9354_v36 = vld [vmem:[%s12657_s3 + $0x32c] ss:$16 sps:$4 sm:$0xff]  }
 0x26e   : > { %3970 = vmatpush2.bf16.msra.mxu1 %v9261_v61  ;;  %v9343_v61 = vld [vmem:[%s12657_s3 + $0x1a8] ss:$16 sps:$4 sm:$0xff]  }
 0x26f   : > { %3971 = vmatprep.subr.bf16.mxu1 %v9269_v62  ;;  %3927 = vmatpush2.bf16.msra.mxu0 %v9264_v48  ;;  %v9351_v62 = vld [vmem:[%s12657_s3 + $0x18c] ss:$16 sps:$4 sm:$0xff]   ;;  %v9352_v48 = vld [vmem:[%s12657_s3 + $0x328] ss:$16 sps:$4 sm:$0xff]  }
 0x270   : > { %3928 = vmatprep.subr.bf16.mxu0 %v9272_v24  ;;  %v9360_v24 = vld [vmem:[%s12657_s3 + $0x30c] ss:$16 sps:$4 sm:$0xff]  }
 0x272   : > { %3972 = vmatpush2.bf16.msra.mxu1 %v9267_v35  ;;  %v9349_v35 = vld [vmem:[%s12657_s3 + $0x188] ss:$16 sps:$4 sm:$0xff]  }
 0x273   : > { %3973 = vmatprep.subr.bf16.mxu1 %v9275_v2  ;;  %3929 = vmatpush2.bf16.msra.mxu0 %v9270_v32  ;;  %v9357_v2 = vld [vmem:[%s12657_s3 + $0x16c] ss:$16 sps:$4 sm:$0xff]   ;;  %v11457_v32 = vld [vmem:[#allocation3] sm:$0xee] }
 0x274   : > { %3930 = vmatprep.subr.bf16.mxu0 %v9278_v8  ;;  %v9358_v8 = vld [vmem:[%s12657_s3 + $0x308] ss:$16 sps:$4 sm:$0xff]  }
 0x276   : > { %3974 = vmatpush2.bf16.msra.mxu1 %v9273_v9  ;;  %v9366_v9 = vld [vmem:[%s12657_s3 + $0x7e4] ss:$16 sps:$4 sm:$0xff]  }
 0x277   : > { %3975 = vmatprep.subr.bf16.mxu1 %v9281_v4  ;;  %3931 = vmatpush2.bf16.msra.mxu0 %v9276_v49  ;;  %v9355_v4 = vld [vmem:[%s12657_s3 + $0x168] ss:$16 sps:$4 sm:$0xff]   ;;  %v8021_v49 = vcombine.high %v11457_v32, %v10939_v3 }
 0x278   : > { %3932 = vmatprep.subr.bf16.mxu0 %v9284_v30  ;;  %v9363_v30 = vld [vmem:[%s12657_s3 + $0x14c] ss:$16 sps:$4 sm:$0xff]  }
 0x27a   : > { %3976 = vmatpush2.bf16.msra.mxu1 %v9279_v0  ;;  %v9364_v0 = vld [vmem:[%s12657_s3 + $0x7e0] ss:$16 sps:$4 sm:$0xff]  }
 0x27b   : > { %3988 = vmatprep.subr.bf16.mxu1 %v9288_v40  ;;  %3933 = vmatpush2.bf16.msra.mxu0 %v9282_v52  ;;  %v9374_v40 = vld [vmem:[%s12657_s3 + $0x7c4] ss:$16 sps:$4 sm:$0xff]   ;;  %v9361_v52 = vld [vmem:[%s12657_s3 + $0x148] ss:$16 sps:$4 sm:$0xff]  }
 0x27c   : > { %4031 = vmatprep.subr.bf16.mxu0 %v9294_v55  ;;  %v11482_v55 = vrot.slane %v8021_v49, 1  ;;  %v9447_v49 = vld [vmem:[%s12657_s3 + $0xa24] ss:$16 sps:$4 sm:$0xff]  }
 0x27d   : > { %3978 = vmatmul.mubr.bf16.vlgmr.msra.gmra.mxu1 %v11311_v56 }
 0x27e   : > { %3989 = vmatpush1.bf16.msra.mxu1 %v9286_v38  ;;  %4020 = vmatprep.mubr.bf16.mxu1 %v11116_v34  ;;  %v9306_v34 = vld [vmem:[%s12657_s3 + $0x2ac] ss:$16 sps:$4 sm:$0xff]  }
 0x27f   : > { %3935 = vmatmul.mubr.bf16.vlgmr.msra.gmra.mxu0 %v11321_v6  ;;  %3990 = vmatprep.subr.bf16.mxu1 %v9291_v44  ;;  %v9371_v38 = vld [vmem:[%s12657_s3 + $0x12c] ss:$16 sps:$4 sm:$0xff]   ;;  %v9372_v44 = vld [vmem:[%s12657_s3 + $0x7c0] ss:$16 sps:$4 sm:$0xff]  }
 0x280   : > { %4032 = vmatpush1.bf16.msra.mxu0 %v9292_v58  ;;  %7907 = vmatprep.mubr.msk.bf16.mxu0 %vm1792_vm5, %v11163_v54  ;;  %v9304_v54 = vld [vmem:[%s12657_s3 + $0x2a8] ss:$16 sps:$4 sm:$0xff]   ;;  %v9380_v58 = vld [vmem:[%s12657_s3 + $0x7a4] ss:$16 sps:$4 sm:$0xff]  }
 0x281   : > { %4033 = vmatprep.subr.bf16.mxu0 %v9300_v14  ;;  %v9377_v14 = vld [vmem:[%s12657_s3 + $0x10c] ss:$16 sps:$4 sm:$0xff]  }
 0x282   : > { %3991 = vmatpush1.bf16.msra.mxu1 %v9289_v10  ;;  %v9378_v10 = vld [vmem:[%s12657_s3 + $0x7a0] ss:$16 sps:$4 sm:$0xff]  }
 0x283   : > { %3992 = vmatprep.subr.bf16.mxu1 %v9297_v20  ;;  %v9383_v20 = vld [vmem:[%s12657_s3 + $0x784] ss:$16 sps:$4 sm:$0xff]  }
 0x284   : > { %4034 = vmatpush1.bf16.msra.mxu0 %v9298_v50  ;;  %v11507_v50 = vld [vmem:[#allocation3 + $0x8] sm:$0xee] }
 0x285   : > { %4035 = vmatprep.subr.bf16.mxu0 %v9306_v34  ;;  %v9375_v34 = vld [vmem:[%s12657_s3 + $0x108] ss:$16 sps:$4 sm:$0xff]  }
 0x286   : > { %3993 = vmatpush1.bf16.msra.mxu1 %v9295_v11  ;;  %v9386_v11 = vld [vmem:[%s12657_s3 + $0x9e4] ss:$16 sps:$4 sm:$0xff]  }
 0x287   : > { %3994 = vmatprep.subr.bf16.mxu1 %v9303_v21  ;;  %v9381_v21 = vld [vmem:[%s12657_s3 + $0x780] ss:$16 sps:$4 sm:$0xff]  }
 0x288   : > { %4036 = vmatpush1.bf16.msra.mxu0 %v9304_v54  ;;  %v8023_v54 = vcombine.high %v11507_v50, %v10933_v18 }
 0x289   : > { %4037 = vmatprep.subr.bf16.mxu0 %v9312_v26  ;;  %v9390_v26 = vld [vmem:[%s12657_s3 + $0x764] ss:$16 sps:$4 sm:$0xff]  }
 0x28a   : > { %3995 = vmatpush1.bf16.msra.mxu1 %v9301_v47  ;;  %v9384_v47 = vld [vmem:[%s12657_s3 + $0x9e0] ss:$16 sps:$4 sm:$0xff]  }
 0x28b   : > { %3996 = vmatprep.subr.bf16.mxu1 %v9309_v59  ;;  %v9393_v59 = vld [vmem:[%s12657_s3 + $0x9c4] ss:$16 sps:$4 sm:$0xff]  }
 0x28c   : > { %4038 = vmatpush1.bf16.msra.mxu0 %v9310_v25  ;;  %v11529_v25 = vrot.slane %v8023_v54, 1  ;;  %v9461_v54 = vld [vmem:[%s12657_s3 + $0x7c8] ss:$16 sps:$4 sm:$0xff]  }
 0x28d   : > { %4039 = vmatprep.subr.bf16.mxu0 %v9318_v17  ;;  %v9388_v17 = vld [vmem:[%s12657_s3 + $0x760] ss:$16 sps:$4 sm:$0xff]  }
 0x28e   : > { %3997 = vmatpush1.bf16.msra.mxu1 %v9307_v27  ;;  %v9396_v27 = vld [vmem:[%s12657_s3 + $0x744] ss:$16 sps:$4 sm:$0xff]  }
 0x28f   : > { %3998 = vmatprep.subr.bf16.mxu1 %v9315_v45  ;;  %v9391_v45 = vld [vmem:[%s12657_s3 + $0x9c0] ss:$16 sps:$4 sm:$0xff]  }
 0x290   : > { %4040 = vmatpush1.bf16.msra.mxu0 %v9316_v23  ;;  %v9399_v23 = vld [vmem:[%s12657_s3 + $0x9a4] ss:$16 sps:$4 sm:$0xff]  }
 0x291   : > { %4041 = vmatprep.subr.bf16.mxu0 %v9324_v37  ;;  %v9402_v37 = vld [vmem:[%s12657_s3 + $0x724] ss:$16 sps:$4 sm:$0xff]  }
 0x292   : > { %3999 = vmatpush1.bf16.msra.mxu1 %v9313_v42  ;;  %v9397_v42 = vld [vmem:[%s12657_s3 + $0x9a0] ss:$16 sps:$4 sm:$0xff]  }
 0x293   : > { %4000 = vmatprep.subr.bf16.mxu1 %v9321_v16  ;;  %v9405_v16 = vld [vmem:[%s12657_s3 + $0x984] ss:$16 sps:$4 sm:$0xff]  }
 0x294   : > { %4042 = vmatpush1.bf16.msra.mxu0 %v9322_v28  ;;  %v9400_v28 = vld [vmem:[%s12657_s3 + $0x720] ss:$16 sps:$4 sm:$0xff]  }
 0x295   : > { %4043 = vmatprep.subr.bf16.mxu0 %v9330_v5  ;;  %v9408_v5 = vld [vmem:[%s12657_s3 + $0x704] ss:$16 sps:$4 sm:$0xff]  }
 0x296   : > { %4001 = vmatpush1.bf16.msra.mxu1 %v9319_v51  ;;  %v9403_v51 = vld [vmem:[%s12657_s3 + $0x980] ss:$16 sps:$4 sm:$0xff]  }
 0x297   : > { %4002 = vmatprep.subr.bf16.mxu1 %v9327_v15  ;;  %v9411_v15 = vld [vmem:[%s12657_s3 + $0x964] ss:$16 sps:$4 sm:$0xff]  }
 0x298   : > { %4044 = vmatpush1.bf16.msra.mxu0 %v9328_v57  ;;  %v9406_v57 = vld [vmem:[%s12657_s3 + $0x700] ss:$16 sps:$4 sm:$0xff]  }
 0x299   : > { %4045 = vmatprep.subr.bf16.mxu0 %v9336_v43  ;;  %v9414_v43 = vld [vmem:[%s12657_s3 + $0x8e4] ss:$16 sps:$4 sm:$0xff]  }
 0x29a   : > { %4003 = vmatpush1.bf16.msra.mxu1 %v9325_v46  ;;  %v9409_v46 = vld [vmem:[%s12657_s3 + $0x960] ss:$16 sps:$4 sm:$0xff]  }
 0x29b   : > { %4004 = vmatprep.subr.bf16.mxu1 %v9333_v29  ;;  %v9417_v29 = vld [vmem:[%s12657_s3 + $0x944] ss:$16 sps:$4 sm:$0xff]  }
 0x29c   : > { %4046 = vmatpush1.bf16.msra.mxu0 %v9334_v31  ;;  %v9412_v31 = vld [vmem:[%s12657_s3 + $0x8e0] ss:$16 sps:$4 sm:$0xff]  }
 0x29d   : > { %4055 = vmatprep.subr.bf16.mxu0 %v9342_v1  ;;  %v9420_v1 = vld [vmem:[%s12657_s3 + $0x8c4] ss:$16 sps:$4 sm:$0xff]  }
 0x29e   : > { %4005 = vmatpush2.bf16.msra.mxu1 %v9331_v19  ;;  %v9415_v19 = vld [vmem:[%s12657_s3 + $0x940] ss:$16 sps:$4 sm:$0xff]  }
 0x29f   : > { %4006 = vmatprep.subr.bf16.mxu1 %v9339_v53  ;;  %v9423_v53 = vld [vmem:[%s12657_s3 + $0x924] ss:$16 sps:$4 sm:$0xff]  }
 0x2a0   : > { %4056 = vmatpush2.bf16.msra.mxu0 %v9340_v60  ;;  %v9418_v60 = vld [vmem:[%s12657_s3 + $0x8c0] ss:$16 sps:$4 sm:$0xff]  }
 0x2a1   : > { %4057 = vmatprep.subr.bf16.mxu0 %v9348_v63  ;;  %v9426_v63 = vld [vmem:[%s12657_s3 + $0x8a4] ss:$16 sps:$4 sm:$0xff]  }
 0x2a2   : > { %4007 = vmatpush2.bf16.msra.mxu1 %v9337_v39  ;;  %v9421_v39 = vld [vmem:[%s12657_s3 + $0x920] ss:$16 sps:$4 sm:$0xff]  }
 0x2a3   : > { %4008 = vmatprep.subr.bf16.mxu1 %v9345_v7  ;;  %v9429_v7 = vld [vmem:[%s12657_s3 + $0x904] ss:$16 sps:$4 sm:$0xff]  }
 0x2a4   : > { %4058 = vmatpush2.bf16.msra.mxu0 %v9346_v41  ;;  %v9424_v41 = vld [vmem:[%s12657_s3 + $0x8a0] ss:$16 sps:$4 sm:$0xff]  }
 0x2a5   : > { %4059 = vmatprep.subr.bf16.mxu0 %v9354_v36  ;;  %v9432_v36 = vld [vmem:[%s12657_s3 + $0x884] ss:$16 sps:$4 sm:$0xff]  }
 0x2a6   : > { %4009 = vmatpush2.bf16.msra.mxu1 %v9343_v61  ;;  %v9427_v61 = vld [vmem:[%s12657_s3 + $0x900] ss:$16 sps:$4 sm:$0xff]  }
 0x2a7   : > { %4010 = vmatprep.subr.bf16.mxu1 %v9351_v62  ;;  %v9435_v62 = vld [vmem:[%s12657_s3 + $0xa64] ss:$16 sps:$4 sm:$0xff]  }
 0x2a8   : > { %4060 = vmatpush2.bf16.msra.mxu0 %v9352_v48  ;;  %v9430_v48 = vld [vmem:[%s12657_s3 + $0x880] ss:$16 sps:$4 sm:$0xff]  }
 0x2a9   : > { %4061 = vmatprep.subr.bf16.mxu0 %v9360_v24  ;;  %v9438_v24 = vld [vmem:[%s12657_s3 + $0x864] ss:$16 sps:$4 sm:$0xff]  }
 0x2aa   : > { %4011 = vmatpush2.bf16.msra.mxu1 %v9349_v35  ;;  %v9433_v35 = vld [vmem:[%s12657_s3 + $0xa60] ss:$16 sps:$4 sm:$0xff]  }
 0x2ab   : > { %4012 = vmatprep.subr.bf16.mxu1 %v9357_v2  ;;  %v9441_v2 = vld [vmem:[%s12657_s3 + $0xa44] ss:$16 sps:$4 sm:$0xff]  }
 0x2ac   : > { %4062 = vmatpush2.bf16.msra.mxu0 %v9358_v8  ;;  %v9436_v8 = vld [vmem:[%s12657_s3 + $0x860] ss:$16 sps:$4 sm:$0xff]  }
 0x2ad   : > { %4769 = vmatprep.subr.bf16.mxu0 %v9366_v9  ;;  %v9444_v9 = vld [vmem:[%s12657_s3 + $0x844] ss:$16 sps:$4 sm:$0xff]  }
 0x2ae   : > { %4013 = vmatpush2.bf16.msra.mxu1 %v9355_v4  ;;  %v9439_v4 = vld [vmem:[%s12657_s3 + $0xa40] ss:$16 sps:$4 sm:$0xff]  }
 0x2af   : > { %4014 = vmatprep.subr.bf16.mxu1 %v9363_v30  ;;  %4064 = vmatmul.mubr.bf16.vlgmr.msra.gmra.mxu0 %v11311_v56  ;;  %v9369_v56 = vld [vmem:[%s12657_s3 + $0x128] ss:$16 sps:$4 sm:$0xff]   ;;  %v9442_v30 = vld [vmem:[%s12657_s3 + $0x840] ss:$16 sps:$4 sm:$0xff]  }
 0x2b0   : > { %4770 = vmatpush1.bf16.msra.mxu0 %v9364_v0  ;;  %4801 = vmatprep.mubr.bf16.mxu0 %v11482_v55  ;;  %v9450_v0 = vld [vmem:[%s12657_s3 + $0x824] ss:$16 sps:$4 sm:$0xff]  }
 0x2b1   : > { %4771 = vmatprep.subr.bf16.mxu0 %v9374_v40  ;;  %v9445_v40 = vld [vmem:[%s12657_s3 + $0xa20] ss:$16 sps:$4 sm:$0xff]  }
 0x2b2   : > { %4015 = vmatpush2.bf16.msra.mxu1 %v9361_v52  ;;  %v9453_v52 = vld [vmem:[%s12657_s3 + $0xa04] ss:$16 sps:$4 sm:$0xff]  }
 0x2b3   : > { %4016 = vmatprep.subr.bf16.mxu1 %v9371_v38  ;;  %v9448_v38 = vld [vmem:[%s12657_s3 + $0x820] ss:$16 sps:$4 sm:$0xff]  }
 0x2b4   : > { %4772 = vmatpush1.bf16.msra.mxu0 %v9372_v44  ;;  %v9456_v44 = vld [vmem:[%s12657_s3 + $0x804] ss:$16 sps:$4 sm:$0xff]  }
 0x2b5   : > { %4773 = vmatprep.subr.bf16.mxu0 %v9380_v58  ;;  %v9451_v58 = vld [vmem:[%s12657_s3 + $0xa00] ss:$16 sps:$4 sm:$0xff]  }
 0x2b6   : > { %4017 = vmatpush2.bf16.msra.mxu1 %v9369_v56  ;;  %v8022_v56 = vcombine.low %v11507_v50, %v10933_v18  ;;  %v9458_v18 = vld [vmem:[%s12657_s3 + $0x7e8] ss:$16 sps:$4 sm:$0xff]  }
 0x2b7   : > { %4018 = vmatprep.subr.bf16.mxu1 %v9377_v14  ;;  %v9460_v14 = vld [vmem:[%s12657_s3 + $0x7ec] ss:$16 sps:$4 sm:$0xff]  }
 0x2b8   : > { %4774 = vmatpush1.bf16.msra.mxu0 %v9378_v10  ;;  %v9454_v10 = vld [vmem:[%s12657_s3 + $0x800] ss:$16 sps:$4 sm:$0xff]   ;;  %v11679_v50 = vrot.slane %v8022_v56, 1  ;;  %v9518_v56 = vld [vmem:[%s12657_s3 + $0xa48] ss:$16 sps:$4 sm:$0xff]  }
 0x2b9   : > { %4775 = vmatprep.subr.bf16.mxu0 %v9383_v20  ;;  %v8020_v20 = vcombine.low %v11457_v32, %v10939_v3  ;;  %v9464_v3 = vld [vmem:[%s12657_s3 + $0x9e8] ss:$16 sps:$4 sm:$0xff]  }
 0x2ba   : > { %4019 = vmatpush2.bf16.msra.mxu1 %v9375_v34  ;;  %v9466_v34 = vld [vmem:[%s12657_s3 + $0x9ec] ss:$16 sps:$4 sm:$0xff]  }
 0x2bb   : > { %4812 = vmatprep.subr.bf16.mxu1 %v9386_v11  ;;  %v9463_v11 = vld [vmem:[%s12657_s3 + $0x7cc] ss:$16 sps:$4 sm:$0xff]   ;;  %v11687_v32 = vrot.slane %v8020_v20, 1 }
 0x2bc   : > { %4776 = vmatpush1.bf16.msra.mxu0 %v9381_v21  ;;  %v9472_v21 = vld [vmem:[%s12657_s3 + $0x9cc] ss:$16 sps:$4 sm:$0xff]  }
 0x2bd   : > { %4021 = vmatmul.mubr.bf16.vlgmr.msra.gmra.mxu1 %v11321_v6  ;;  %4777 = vmatprep.subr.bf16.mxu0 %v9390_v26  ;;  %v9394_v6 = vld [vmem:[%s12657_s3 + $0x740] ss:$16 sps:$4 sm:$0xff]   ;;  %v9469_v26 = vld [vmem:[%s12657_s3 + $0x7ac] ss:$16 sps:$4 sm:$0xff]  }
 0x2be   : > { %4813 = vmatpush1.bf16.msra.mxu1 %v9384_v47  ;;  %8136 = vmatprep.mubr.msk.bf16.mxu1 %vm1792_vm5, %v11529_v25  ;;  %v9470_v47 = vld [vmem:[%s12657_s3 + $0x9c8] ss:$16 sps:$4 sm:$0xff]  }
 0x2bf   : > { %4814 = vmatprep.subr.bf16.mxu1 %v9393_v59  ;;  %v9467_v59 = vld [vmem:[%s12657_s3 + $0x7a8] ss:$16 sps:$4 sm:$0xff]  }
 0x2c0   : > { %4778 = vmatpush1.bf16.msra.mxu0 %v9388_v17  ;;  %v9475_v17 = vld [vmem:[%s12657_s3 + $0x78c] ss:$16 sps:$4 sm:$0xff]  }
 0x2c1   : > { %4779 = vmatprep.subr.bf16.mxu0 %v9396_v27  ;;  %v9484_v27 = vld [vmem:[%s12657_s3 + $0x98c] ss:$16 sps:$4 sm:$0xff]  }
 0x2c2   : > { %4815 = vmatpush1.bf16.msra.mxu1 %v9391_v45  ;;  %v9473_v45 = vld [vmem:[%s12657_s3 + $0x788] ss:$16 sps:$4 sm:$0xff]  }
 0x2c3   : > { %4816 = vmatprep.subr.bf16.mxu1 %v9399_v23  ;;  %v9481_v23 = vld [vmem:[%s12657_s3 + $0x76c] ss:$16 sps:$4 sm:$0xff]  }
 0x2c4   : > { %4780 = vmatpush1.bf16.msra.mxu0 %v9394_v6  ;;  %v9482_v6 = vld [vmem:[%s12657_s3 + $0x988] ss:$16 sps:$4 sm:$0xff]  }
 0x2c5   : > { %4781 = vmatprep.subr.bf16.mxu0 %v9402_v37 }
 0x2c6   : > { %4817 = vmatpush1.bf16.msra.mxu1 %v9397_v42  ;;  %v9490_v42 = vld [vmem:[%s12657_s3 + $0x96c] ss:$16 sps:$4 sm:$0xff]  }
 0x2c7   : > { %4818 = vmatprep.subr.bf16.mxu1 %v9405_v16  ;;  %v9479_v16 = vld [vmem:[%s12657_s3 + $0x768] ss:$16 sps:$4 sm:$0xff]  }
 0x2c8   : > { %4782 = vmatpush1.bf16.msra.mxu0 %v9400_v28  ;;  %v9487_v28 = vld [vmem:[%s12657_s3 + $0x74c] ss:$16 sps:$4 sm:$0xff]  }
 0x2c9   : > { %4783 = vmatprep.subr.bf16.mxu0 %v9408_v5  ;;  %v9488_v5 = vld [vmem:[%s12657_s3 + $0x968] ss:$16 sps:$4 sm:$0xff]  }
 0x2ca   : > { %4819 = vmatpush1.bf16.msra.mxu1 %v9403_v51 }
 0x2cb   : > { %4820 = vmatprep.subr.bf16.mxu1 %v9411_v15  ;;  %v9496_v15 = vld [vmem:[%s12657_s3 + $0x94c] ss:$16 sps:$4 sm:$0xff]  }
 0x2cc   : > { %4784 = vmatpush1.bf16.msra.mxu0 %v9406_v57  ;;  %v9485_v57 = vld [vmem:[%s12657_s3 + $0x748] ss:$16 sps:$4 sm:$0xff]  }
 0x2cd   : > { %4785 = vmatprep.subr.bf16.mxu0 %v9414_v43  ;;  %v11730_v37 = vpop.f32.mrf.mxu0  ;;  %v11752_v43 = vpop.f32.mrf.mxu1 }
 0x2ce   : > { %4821 = vmatpush1.bf16.msra.mxu1 %v9409_v46  ;;  %v9493_v46 = vld [vmem:[%s12657_s3 + $0x72c] ss:$16 sps:$4 sm:$0xff]  }
 0x2cf   : > { %4822 = vmatprep.subr.bf16.mxu1 %v9417_v29  ;;  %v11744_v51 = vpop.f32.mrf.mxu0  ;;  %v9494_v29 = vld [vmem:[%s12657_s3 + $0x948] ss:$16 sps:$4 sm:$0xff]  }
 0x2d0   : > { %4786 = vmatpush2.bf16.msra.mxu0 %v9412_v31 }
 0x2d1   : > { %4787 = vmatprep.subr.bf16.mxu0 %v9420_v1  ;;  %v11760_v31 = vpop.f32.mrf.mxu0  ;;  %v9502_v1 = vld [vmem:[%s12657_s3 + $0x92c] ss:$16 sps:$4 sm:$0xff]  }
 0x2d2   : > { %4823 = vmatpush1.bf16.msra.mxu1 %v9415_v19  ;;  %v9491_v19 = vld [vmem:[%s12657_s3 + $0x728] ss:$16 sps:$4 sm:$0xff]  }
 0x2d3   : > { %4824 = vmatprep.subr.bf16.mxu1 %v9423_v53  ;;  %v11768_v53 = vpop.f32.mrf.mxu1 }
 0x2d4   : > { %4788 = vmatpush2.bf16.msra.mxu0 %v9418_v60  ;;  %v9499_v60 = vld [vmem:[%s12657_s3 + $0x70c] ss:$16 sps:$4 sm:$0xff]  }
 0x2d5   : > { %4789 = vmatprep.subr.bf16.mxu0 %v9426_v63  ;;  %v9500_v63 = vld [vmem:[%s12657_s3 + $0x928] ss:$16 sps:$4 sm:$0xff]  }
 0x2d6   : > { %4825 = vmatpush1.bf16.msra.mxu1 %v9421_v39  ;;  %v11776_v39 = vpop.f32.mrf.mxu0 }
 0x2d7   : > { %4826 = vmatprep.subr.bf16.mxu1 %v9429_v7  ;;  %v9508_v7 = vld [vmem:[%s12657_s3 + $0x90c] ss:$16 sps:$4 sm:$0xff]  }
 0x2d8   : > { %4790 = vmatpush2.bf16.msra.mxu0 %v9424_v41  ;;  %v9497_v41 = vld [vmem:[%s12657_s3 + $0x708] ss:$16 sps:$4 sm:$0xff]  }
 0x2d9   : > { %4791 = vmatprep.subr.bf16.mxu0 %v9432_v36  ;;  %v11784_v36 = vpop.f32.mrf.mxu1 }
 0x2da   : > { %4827 = vmatpush1.bf16.msra.mxu1 %v9427_v61 }
 0x2db   : > { %4836 = vmatprep.subr.bf16.mxu1 %v9435_v62  ;;  %v9505_v62 = vld [vmem:[%s12657_s3 + $0x8ec] ss:$16 sps:$4 sm:$0xff]  }
 0x2dc   : > { %4792 = vmatpush2.bf16.msra.mxu0 %v9430_v48  ;;  %v9506_v48 = vld [vmem:[%s12657_s3 + $0x908] ss:$16 sps:$4 sm:$0xff]  }
 0x2dd   : > { %4793 = vmatprep.subr.bf16.mxu0 %v9438_v24  ;;  %v9514_v24 = vld [vmem:[%s12657_s3 + $0xa6c] ss:$16 sps:$4 sm:$0xff]  }
 0x2de   : > { %4837 = vmatpush2.bf16.msra.mxu1 %v9433_v35  ;;  %v9503_v35 = vld [vmem:[%s12657_s3 + $0x8e8] ss:$16 sps:$4 sm:$0xff]  }
 0x2df   : > { %4838 = vmatprep.subr.bf16.mxu1 %v9441_v2  ;;  %v11798_v2 = vpop.f32.mrf.mxu1 }
 0x2e0   : > { %4794 = vmatpush2.bf16.msra.mxu0 %v9436_v8 }
 0x2e1   : > { %4795 = vmatprep.subr.bf16.mxu0 %v9444_v9  ;;  %v9511_v9 = vld [vmem:[%s12657_s3 + $0x8cc] ss:$16 sps:$4 sm:$0xff]  }
 0x2e2   : > { %4839 = vmatpush2.bf16.msra.mxu1 %v9439_v4  ;;  %v9512_v4 = vld [vmem:[%s12657_s3 + $0xa68] ss:$16 sps:$4 sm:$0xff]  }
 0x2e3   : > { %4840 = vmatprep.subr.bf16.mxu1 %v9447_v49 }
 0x2e4   : > { %4796 = vmatpush2.bf16.msra.mxu0 %v9442_v30  ;;  %v9520_v30 = vld [vmem:[%s12657_s3 + $0xa4c] ss:$16 sps:$4 sm:$0xff]  }
 0x2e5   : > { %4797 = vmatprep.subr.bf16.mxu0 %v9450_v0 }
 0x2e6   : > { %4841 = vmatpush2.bf16.msra.mxu1 %v9445_v40  ;;  %v9509_v40 = vld [vmem:[%s12657_s3 + $0x8c8] ss:$16 sps:$4 sm:$0xff]  }
 0x2e7   : > { %4842 = vmatprep.subr.bf16.mxu1 %v9453_v52 }
 0x2e8   : > { %4798 = vmatpush2.bf16.msra.mxu0 %v9448_v38 }
 0x2e9   : > { %4799 = vmatprep.subr.bf16.mxu0 %v9456_v44  ;;  %v9517_v44 = vld [vmem:[%s12657_s3 + $0x8ac] ss:$16 sps:$4 sm:$0xff]  }
 0x2ea   : > { %4843 = vmatpush2.bf16.msra.mxu1 %v9451_v58 }
 0x2eb   : > { %4855 = vmatprep.subr.bf16.mxu1 %v9460_v14 }
 0x2ec   : > { %4800 = vmatpush2.bf16.msra.mxu0 %v9454_v10  ;;  %v9526_v10 = vld [vmem:[%s12657_s3 + $0xa2c] ss:$16 sps:$4 sm:$0xff]  }
 0x2ed   : > { %4845 = vmatmul.mubr.bf16.vlgmr.msra.gmra.mxu1 %v11679_v50  ;;  %4898 = vmatprep.subr.bf16.mxu0 %v9466_v34  ;;  %v9515_v34 = vld [vmem:[%s12657_s3 + $0x8a8] ss:$16 sps:$4 sm:$0xff]  }
 0x2ee   : > { %4856 = vmatpush1.bf16.msra.mxu1 %v9458_v18  ;;  %4887 = vmatprep.mubr.bf16.mxu1 %v11482_v55  ;;  %v9478_v55 = vld [vmem:[%s12657_s3 + $0x9ac] ss:$16 sps:$4 sm:$0xff]  }
 0x2ef   : > { %4802 = vmatmul.mubr.bf16.vlgmr.msra.gmra.mxu0 %v11687_v32  ;;  %4857 = vmatprep.subr.bf16.mxu1 %v9463_v11 }
 0x2f0   : > { %4899 = vmatpush1.bf16.msra.mxu0 %v9464_v3  ;;  %8137 = vmatprep.mubr.msk.bf16.mxu0 %vm1792_vm5, %v11529_v25  ;;  %v9476_v25 = vld [vmem:[%s12657_s3 + $0x9a8] ss:$16 sps:$4 sm:$0xff]   ;;  %v9523_v3 = vld [vmem:[%s12657_s3 + $0x88c] ss:$16 sps:$4 sm:$0xff]   ;;  %vm5217_vm5 = vcmask 391172  }
 0x2f1   : > { %4900 = vmatprep.subr.bf16.mxu0 %v9472_v21  ;;  %vm5218_vm6 = vmor %vm5217_vm5, %vm2180_vm9 }
 0x2f2   : > { %4858 = vmatpush1.bf16.msra.mxu1 %v9461_v54  ;;  %v9524_v54 = vld [vmem:[%s12657_s3 + $0xa28] ss:$16 sps:$4 sm:$0xff]  }
 0x2f3   : > { %4859 = vmatprep.subr.bf16.mxu1 %v9469_v26  ;;  %v9532_v26 = vld [vmem:[%s12657_s3 + $0xa0c] ss:$16 sps:$4 sm:$0xff]  }
 0x2f4   : > { %4901 = vmatpush1.bf16.msra.mxu0 %v9470_v47  ;;  %v9521_v47 = vld [vmem:[%s12657_s3 + $0x888] ss:$16 sps:$4 sm:$0xff]  }
 0x2f5   : > { %4902 = vmatprep.subr.bf16.mxu0 %v9478_v55  ;;  %v9529_v55 = vld [vmem:[%s12657_s3 + $0x86c] ss:$16 sps:$4 sm:$0xff]  }
 0x2f6   : > { %4860 = vmatpush1.bf16.msra.mxu1 %v9467_v59  ;;  %v9530_v59 = vld [vmem:[%s12657_s3 + $0xa08] ss:$16 sps:$4 sm:$0xff]  }
 0x2f7   : > { %4861 = vmatprep.subr.bf16.mxu1 %v9475_v17  ;;  %v9527_v17 = vld [vmem:[%s12657_s3 + $0x868] ss:$16 sps:$4 sm:$0xff]  }
 0x2f8   : > { %4903 = vmatpush1.bf16.msra.mxu0 %v9476_v25  ;;  %v9535_v25 = vld [vmem:[%s12657_s3 + $0x84c] ss:$16 sps:$4 sm:$0xff]  }
 0x2f9   : > { %4904 = vmatprep.subr.bf16.mxu0 %v9484_v27  ;;  %v9533_v27 = vld [vmem:[%s12657_s3 + $0x848] ss:$16 sps:$4 sm:$0xff]  }
 0x2fa   : > { %4862 = vmatpush1.bf16.msra.mxu1 %v9473_v45  ;;  %v9538_v45 = vld [vmem:[%s12657_s3 + $0x82c] ss:$16 sps:$4 sm:$0xff]  }
 0x2fb   : > { %4863 = vmatprep.subr.bf16.mxu1 %v9481_v23  ;;  %v9536_v23 = vld [vmem:[%s12657_s3 + $0x828] ss:$16 sps:$4 sm:$0xff]  }
 0x2fc   : > { %4905 = vmatpush1.bf16.msra.mxu0 %v9482_v6  ;;  %v9541_v6 = vld [vmem:[%s12657_s3 + $0x80c] ss:$16 sps:$4 sm:$0xff]  }
 0x2fd   : > { %4906 = vmatprep.subr.bf16.mxu0 %v9490_v42  ;;  %v9539_v42 = vld [vmem:[%s12657_s3 + $0x808] ss:$16 sps:$4 sm:$0xff]  }
 0x2fe   : > { %4864 = vmatpush1.bf16.msra.mxu1 %v9479_v16  ;;  %v3317_v61 = vpop.f32.mrf.mxu0 }
 0x2ff   : > { %4865 = vmatprep.subr.bf16.mxu1 %v9487_v28 }
 0x300   : > { %4907 = vmatpush1.bf16.msra.mxu0 %v9488_v5  ;;  %v3319_v8 = vpop.f32.mrf.mxu0 }
 0x301   : > { %4908 = vmatprep.subr.bf16.mxu0 %v9496_v15 }
 0x302   : > { %4866 = vmatpush1.bf16.msra.mxu1 %v9485_v57  ;;  %v3321_v52 = vpop.f32.mrf.mxu0 }
 0x303   : > { %4867 = vmatprep.subr.bf16.mxu1 %v9493_v46 }
 0x304   : > { %4909 = vmatpush1.bf16.msra.mxu0 %v9494_v29  ;;  %v3323_v18 = vpop.f32.mrf.mxu0 }
 0x305   : > { %4910 = vmatprep.subr.bf16.mxu0 %v9502_v1 }
 0x306   : > { %4868 = vmatpush1.bf16.msra.mxu1 %v9491_v19 }
 0x307   : > { %4869 = vmatprep.subr.bf16.mxu1 %v9499_v60 }
 0x308   : > { %4911 = vmatpush1.bf16.msra.mxu0 %v9500_v63 }
 0x309   : > { %4912 = vmatprep.subr.bf16.mxu0 %v9508_v7 }
 0x30a   : > { %4870 = vmatpush1.bf16.msra.mxu1 %v9497_v41 }
 0x30b   : > { %4871 = vmatprep.subr.bf16.mxu1 %v9505_v62 }
 0x30c   : > { %4913 = vmatpush1.bf16.msra.mxu0 %v9506_v48 }
 0x30d   : > { %v3274_v49 = vpop.f32.mrf.mxu1  ;;  %4922 = vmatprep.subr.bf16.mxu0 %v9514_v24 }
 0x30e   : > { %v11809_v0 = vadd.f32 %v3317_v61, %v3274_v49  ;;  %4872 = vmatpush2.bf16.msra.mxu1 %v9503_v35 }
 0x30f   : > { %v3276_v38 = vpop.f32.mrf.mxu1  ;;  %4873 = vmatprep.subr.bf16.mxu1 %v9511_v9 }
 0x310   : > { %v3320_v58 = vadd.f32 %v3319_v8, %v3276_v38  ;;  %4923 = vmatpush2.bf16.msra.mxu0 %v9512_v4  ;;  %v9543_v38 = vld [vmem:[%s12659_s5 + $0x188] sm:$0xff]  }
 0x311   : > { %v3278_v14 = vpop.f32.mrf.mxu1  ;;  %4924 = vmatprep.subr.bf16.mxu0 %v9520_v30 }
 0x312   : > { %v3322_v20 = vadd.f32 %v3321_v52, %v3278_v14  ;;  %4874 = vmatpush2.bf16.msra.mxu1 %v9509_v40  ;;  %v9545_v40 = vld [vmem:[%s12659_s5 + $0x150] sm:$0xff]   ;;  %v9544_v14 = vld [vmem:[%s12659_s5 + $0x180] sm:$0xff]  }
 0x313   : > { %v3280_v11 = vpop.f32.mrf.mxu1  ;;  %4875 = vmatprep.subr.bf16.mxu1 %v9517_v44  ;;  %v9546_v52 = vld [vmem:[%s12659_s5 + $0x110] sm:$0xff]   ;;  %v9548_v44 = vld [vmem:[%s12659_s5 + $0x148] sm:$0xff]  }
 0x314   : > { %v3324_v21 = vadd.f32 %v3323_v18, %v3280_v11  ;;  %4925 = vmatpush2.bf16.msra.mxu0 %v9518_v56  ;;  %v9551_v56 = vld [vmem:[%s12659_s5 + $0x140] sm:$0xff]   ;;  %v3232_v18 = vadd.f32 %v11752_v43, %v11730_v37  ;;  %v3234_v11 = vadd.f32 %v11768_v53, %v11744_v51 }
 0x315   : > { %4926 = vmatprep.subr.bf16.mxu0 %v9526_v10  ;;  %v9552_v10 = vld [vmem:[%s12659_s5 + $0x100] sm:$0xff]  }
 0x316   : > { %4876 = vmatpush2.bf16.msra.mxu1 %v9515_v34  ;;  %v9550_v34 = vld [vmem:[%s12659_s5 + $0x170] sm:$0xff]  }
 0x317   : > { %4877 = vmatprep.subr.bf16.mxu1 %v9523_v3 }
 0x318   : > { %4927 = vmatpush2.bf16.msra.mxu0 %v9524_v54  ;;  %v4949_v54 = vld [vmem:[%s12658_s4] sm:$0xf] }
 0x319   : > { %4928 = vmatprep.subr.bf16.mxu0 %v9532_v26  ;;  %v3236_v26 = vadd.f32 %v11784_v36, %v11760_v31  ;;  %v4954_v51 = vrot.slane %v4949_v54, %v12691_v22  ;;  %v4958_v31 = vrot.slane %v4949_v54, %v10424_v12 }
 0x31a   : > { %4878 = vmatpush2.bf16.msra.mxu1 %v9521_v47 }
 0x31b   : > { %4879 = vmatprep.subr.bf16.mxu1 %v9529_v55  ;;  %v3238_v55 = vadd.f32 %v11798_v2, %v11776_v39 }
 0x31c   : > { %4929 = vmatpush2.bf16.msra.mxu0 %v9530_v59 }
 0x31d   : > { %8608 = vmatprep.subr.bf16.mxu0 %v9545_v40 }
 0x31e   : > { %4880 = vmatpush2.bf16.msra.mxu1 %v9527_v17 }
 0x31f   : > { %4881 = vmatprep.subr.bf16.mxu1 %v9535_v25  ;;  %4931 = vmatmul.mubr.bf16.vlgmr.msra.gmra.mxu0 %v11679_v50  ;;  %v12692_v50 = vmov 0  }
 0x320   : > { %8609 = vmatpush3.bf16.msra.mxu0 %v9546_v52 }
 0x321   : > { %8610 = vmatprep.subr.bf16.mxu0 %v9548_v44  ;;  %v4966_v44 = vrot.slane %v4949_v54, %v10426_v13 }
 0x322   : > { %4882 = vmatpush2.bf16.msra.mxu1 %v9533_v27 }
 0x323   : > { %4883 = vmatprep.subr.bf16.mxu1 %v9538_v45 }
 0x326   : > { %4884 = vmatpush2.bf16.msra.mxu1 %v9536_v23 }
 0x327   : > { %4885 = vmatprep.subr.bf16.mxu1 %v9541_v6 }
 0x32a   : > { %4886 = vmatpush2.bf16.msra.mxu1 %v9539_v42 }
 0x32b   : > { %5561 = vmatprep.subr.bf16.mxu1 %v12692_v50 }
 0x32d   : > { %4888 = vmatmul.mubr.bf16.vlgmr.msra.gmra.mxu1 %v11687_v32 }
 0x33d   : > { %v3979_v28 = vpop.f32.mrf.mxu1 }
 0x33f   : > { %v3936_v16 = vpop.f32.mrf.mxu0  ;;  %v11868_v15 = vpop.f32.mrf.mxu1 }
 0x340   : > { %v3937_v3 = vadd.f32 %v3936_v16, %v3232_v18 }
 0x341   : > { %v3938_v5 = vpop.f32.mrf.mxu0  ;;  %v11870_v46 = vpop.f32.mrf.mxu1 }
 0x342   : > { %v3939_v47 = vadd.f32 %v3938_v5, %v3234_v11  ;;  %v3980_v25 = vadd.f32 %v3979_v28, %v3937_v3 }
 0x343   : > { %v3940_v57 = vpop.f32.mrf.mxu0  ;;  %v11872_v19 = vpop.f32.mrf.mxu1 }
 0x344   : > { %v3941_v37 = vadd.f32 %v3940_v57, %v3236_v26  ;;  %v3982_v23 = vadd.f32 %v11868_v15, %v3939_v47 }
 0x345   : > { %v3942_v29 = vpop.f32.mrf.mxu0 }
 0x346   : > { %v3943_v53 = vadd.f32 %v3942_v29, %v3238_v55  ;;  %v3984_v16 = vadd.f32 %v11870_v46, %v3941_v37 }
 0x348   : > { %v3986_v28 = vadd.f32 %v11872_v19, %v3943_v53 }
 0x36f   : > { %v4065_v1 = vpop.f32.mrf.mxu0 }
 0x371   : > { %v4067_v60 = vpop.f32.mrf.mxu0 }
 0x373   : > { %v4069_v62 = vpop.f32.mrf.mxu0 }
 0x375   : > { %v4071_v49 = vpop.f32.mrf.mxu0 }
 0x37d   : > { %v4022_v63 = vpop.f32.mrf.mxu1 }
 0x37e   : > { %v4023_v7 = vadd.f32 %v4022_v63, %v11809_v0  ;;  %v9542_v0 = vld [vmem:[%s12659_s5 + $0x190] sm:$0xff]  }
 0x37f   : > { %v4024_v41 = vpop.f32.mrf.mxu1  ;;  %5562 = vmatpush1.bf16.msra.mxu1 %v9542_v0 }
 0x380   : > { %v11875_v61 = vadd.f32 %v4065_v1, %v4023_v7  ;;  %v4025_v32 = vadd.f32 %v4024_v41, %v3320_v58  ;;  %5563 = vmatprep.subr.bf16.mxu1 %v12692_v50  ;;  %v9549_v58 = vld [vmem:[%s12659_s5 + $0x108] sm:$0xff]  }
 0x381   : > { %v4026_v48 = vpop.f32.mrf.mxu1  ;;  %8611 = vmatpush3.bf16.msra.mxu0 %v9549_v58 }
 0x382   : > { %v11877_v24 = vadd.f32 %v4067_v60, %v4025_v32  ;;  %v4027_v35 = vadd.f32 %v4026_v48, %v3322_v20  ;;  %8612 = vmatprep.subr.bf16.mxu0 %v9551_v56  ;;  %v9547_v20 = vld [vmem:[%s12659_s5 + $0x178] sm:$0xff]  }
 0x383   : > { %v4028_v8 = vpop.f32.mrf.mxu1  ;;  %5564 = vmatpush1.bf16.msra.mxu1 %v9543_v38 }
 0x384   : > { %v11879_v9 = vadd.f32 %v4069_v62, %v4027_v35  ;;  %v4029_v4 = vadd.f32 %v4028_v8, %v3324_v21  ;;  %5565 = vmatprep.subr.bf16.mxu1 %v12692_v50 }
 0x385   : > { %8613 = vmatpush3.bf16.msra.mxu0 %v9552_v10 }
 0x386   : > { %v11881_v30 = vadd.f32 %v4071_v49, %v4029_v4  ;;  %v4962_v49 = vrot.slane %v4949_v54, %v12690_v33 }
 0x387   : > { %5566 = vmatpush1.bf16.msra.mxu1 %v9544_v14 }
 0x388   : > { %5567 = vmatprep.subr.bf16.mxu1 %v12692_v50 }
 0x38b   : > { %5568 = vmatpush1.bf16.msra.mxu1 %v9547_v20 }
 0x38c   : > { %5569 = vmatprep.subr.bf16.mxu1 %v12692_v50 }
 0x38f   : > { %5570 = vmatpush1.bf16.msra.mxu1 %v9550_v34 }
 0x390   : > { %5571 = vmatprep.subr.bf16.mxu1 %v12692_v50 }
 0x3ad   : > { %v4846_v21 = vpop.f32.mrf.mxu1 }
 0x3af   : > { %v4848_v59 = vpop.f32.mrf.mxu1  ;;  %v4803_v17 = vpop.f32.mrf.mxu0 }
 0x3b0   : > { %v4847_v43 = vadd.f32 %v4846_v21, %v4803_v17 }
 0x3b1   : > { %v4850_v27 = vpop.f32.mrf.mxu1  ;;  %v4805_v45 = vpop.f32.mrf.mxu0 }
 0x3b2   : > { %v4941_v6 = vadd.f32 %v4847_v43, %v3980_v25  ;;  %v4849_v42 = vadd.f32 %v4848_v59, %v4805_v45  ;;  %v9553_v59 = vld [vmem:[%s12659_s5 + $0x168] sm:$0xff]  }
 0x3b3   : > { %v4807_v36 = vpop.f32.mrf.mxu0  ;;  %v4852_v57 = vpop.f32.mrf.mxu1  ;;  %5572 = vmatpush1.bf16.msra.mxu1 %v9553_v59 }
 0x3b4   : > { %v4971_v39 = vadd.f32 %v4954_v51, %v4941_v6  ;;  %v4942_v2 = vadd.f32 %v4849_v42, %v3982_v23  ;;  %v4851_v5 = vadd.f32 %v4850_v27, %v4807_v36  ;;  %5573 = vmatprep.subr.bf16.mxu1 %v12692_v50 }
 0x3b5   : > { %v4809_v1 = vpop.f32.mrf.mxu0 }
 0x3b6   : > { %v4979_v60 = vmax.f32 %v4971_v39, 0.0  ;;  %v4972_v29 = vadd.f32 %v4958_v31, %v4942_v2  ;;  %v4945_v63 = vadd.f32 %v4851_v5, %v3984_v16  ;;  %v4853_v7 = vadd.f32 %v4852_v57, %v4809_v1 }
 0x3b8   : > { %4987 = vst [vmem:[#allocation4] sm:$0xff] %v4979_v60  ;;  %v4980_v15 = vmax.f32 %v4972_v29, 0.0  ;;  %v4975_v41 = vadd.f32 %v4954_v51, %v4945_v63  ;;  %v4946_v32 = vadd.f32 %v4853_v7, %v3986_v28 }
 0x3ba   : > { %4988 = vst [vmem:[#allocation4 + $0x8] sm:$0xff] %v4980_v15  ;;  %v4983_v62 = vmax.f32 %v4975_v41, 0.0  ;;  %v4976_v48 = vadd.f32 %v4958_v31, %v4946_v32 }
 0x3bc   : > { %4992 = vst [vmem:[#allocation4 + $0x20] sm:$0xf] %v4983_v62  ;;  %v4984_v46 = vmax.f32 %v4976_v48, 0.0 }
 0x3be   : > { %4993 = vst [vmem:[#allocation4 + $0x28] sm:$0xf] %v4984_v46 }
 0x3df   : > { %v4932_v35 = vpop.f32.mrf.mxu0 }
 0x3e1   : > { %v4934_v8 = vpop.f32.mrf.mxu0 }
 0x3e3   : > { %v4936_v0 = vpop.f32.mrf.mxu0 }
 0x3e5   : > { %v4938_v20 = vpop.f32.mrf.mxu0 }
 0x3ed   : > { %v4889_v4 = vpop.f32.mrf.mxu1 }
 0x3ee   : > { %v4933_v19 = vadd.f32 %v4932_v35, %v4889_v4 }
 0x3ef   : > { %v4891_v40 = vpop.f32.mrf.mxu1 }
 0x3f0   : > { %v4943_v52 = vadd.f32 %v4933_v19, %v11875_v61  ;;  %v4935_v38 = vadd.f32 %v4934_v8, %v4891_v40 }
 0x3f1   : > { %v4893_v58 = vpop.f32.mrf.mxu1 }
 0x3f2   : > { %v4973_v56 = vadd.f32 %v4962_v49, %v4943_v52  ;;  %v4944_v14 = vadd.f32 %v4935_v38, %v11877_v24  ;;  %v4937_v10 = vadd.f32 %v4936_v0, %v4893_v58 }
 0x3f3   : > { %v4895_v34 = vpop.f32.mrf.mxu1 }
 0x3f4   : > { %v4981_v18 = vmax.f32 %v4973_v56, 0.0  ;;  %v4974_v11 = vadd.f32 %v4966_v44, %v4944_v14  ;;  %v4947_v3 = vadd.f32 %v4937_v10, %v11879_v9  ;;  %v4939_v21 = vadd.f32 %v4938_v20, %v4895_v34  ;;  %v9554_v9 = vld [vmem:[%s12659_s5 + $0x138] sm:$0xff]   ;;  %v9557_v20 = vld [vmem:[%s12659_s5 + $0x130] sm:$0xff]  }
 0x3f5   : > { %8614 = vmatprep.subr.bf16.mxu0 %v9554_v9  ;;  %v9559_v9 = vld [vmem:[%s12659_s5 + $0x158] sm:$0xff]  }
 0x3f6   : > { %4989 = vst [vmem:[#allocation4 + $0x10] sm:$0xff] %v4981_v18  ;;  %v4982_v26 = vmax.f32 %v4974_v11, 0.0  ;;  %v4977_v47 = vadd.f32 %v4962_v49, %v4947_v3  ;;  %v4948_v61 = vadd.f32 %v4939_v21, %v11881_v30 }
 0x3f8   : > { %4991 = vst.msk [vmem:[#allocation4 + $0x18] sm:$0xff] %vm4990_vm2, %v4982_v26  ;;  %v4985_v54 = vmax.f32 %v4977_v47, 0.0  ;;  %v4978_v55 = vadd.f32 %v4966_v44, %v4948_v61  ;;  %v9558_v61 = vld [vmem:[%s12659_s5 + $0xf0] sm:$0xff]  }
 0x3fa   : > { %4994 = vst [vmem:[#allocation4 + $0x30] sm:$0xf] %v4985_v54  ;;  %v4986_v24 = vmax.f32 %v4978_v55, 0.0 }
 0x3fc   : > { %4996 = vst.msk [vmem:[#allocation4 + $0x38] sm:$0xf] %vm4995_vm3, %v4986_v24 }
 0x3ff   : > { %v4997_v17 = vld [vmem:[#allocation4] ss:$8 sm:$0xf]  ;;  %v4999_v30 = vld [vmem:[#allocation4 + $0x1] ss:$8 sm:$0xf] }
 0x400   : > { %v5000_v25 = vmax.f32 %v4997_v17, %v4999_v30  ;;  %v5002_v37 = vld [vmem:[#allocation4 + $0x2] ss:$8 sm:$0xf]  ;;  %v5004_v43 = vld [vmem:[#allocation4 + $0x3] ss:$8 sm:$0xf] }
 0x401   : > { %v5005_v51 = vmax.f32 %v5002_v37, %v5004_v43  ;;  %v5007_v53 = vld [vmem:[#allocation4 + $0x4] ss:$8 sm:$0xf]  ;;  %v5009_v27 = vld [vmem:[#allocation4 + $0x5] ss:$8 sm:$0xf] }
 0x402   : > { %v5010_v45 = vmax.f32 %v5007_v53, %v5009_v27  ;;  %v5012_v23 = vld [vmem:[#allocation4 + $0x6] ss:$8 sm:$0xf]  ;;  %v5014_v6 = vld [vmem:[#allocation4 + $0x7] ss:$8 sm:$0xf]  ;;  %v5038_v42 = vrot.slane %v5000_v25, %v12690_v33  ;;  %v5030_v31 = vrot.slane %v5000_v25, %v12691_v22  ;;  %v5034_v36 = vrot.slane %v5000_v25, %v10424_v12 }
 0x403   : > { %v5015_v16 = vmax.f32 %v5012_v23, %v5014_v6  ;;  %v5017_v39 = vld [vmem:[#allocation4 + $0x20] ss:$8 sm:$0xf]  ;;  %v5019_v2 = vld [vmem:[#allocation4 + $0x21] ss:$8 sm:$0xf]  ;;  %v5059_v5 = vrot.slane %v5005_v51, %v12690_v33  ;;  %v5051_v28 = vrot.slane %v5005_v51, %v12691_v22  ;;  %v5055_v57 = vrot.slane %v5005_v51, %v10424_v12 }
 0x404   : > { %v5020_v1 = vmax.f32 %v5017_v39, %v5019_v2  ;;  %v5022_v60 = vld [vmem:[#allocation4 + $0x22] ss:$8 sm:$0xf]  ;;  %v5024_v29 = vld [vmem:[#allocation4 + $0x23] ss:$8 sm:$0xf]  ;;  %v5080_v63 = vrot.slane %v5010_v45, %v12690_v33  ;;  %v5072_v7 = vrot.slane %v5010_v45, %v12691_v22  ;;  %v5076_v15 = vrot.slane %v5010_v45, %v10424_v12 }
 0x405   : > { %v5025_v41 = vmax.f32 %v5022_v60, %v5024_v29  ;;  %v5101_v32 = vrot.slane %v5015_v16, %v12690_v33  ;;  %v5154_v62 = vsel %vm2170_vm7, %v5038_v42, %v5059_v5  ;;  %v5093_v48 = vrot.slane %v5015_v16, %v12691_v22  ;;  %v9560_v17 = vld [vmem:[%s12659_s5 + $0x128] sm:$0xff]   ;;  %v9564_v23 = vld [vmem:[%s12659_s5 + $0xe0] sm:$0xff]   ;;  %v9566_v42 = vld [vmem:[%s12659_s5 + $0x118] sm:$0xff]  }
 0x406   : > { %v5122_v46 = vrot.slane %v5020_v1, %v12690_v33  ;;  %v5158_v35 = vsel %vm2175_vm8, %v5154_v62, %v5080_v63  ;;  %v5097_v8 = vrot.slane %v5015_v16, %v10424_v12  ;;  %v5114_v4 = vrot.slane %v5020_v1, %v12691_v22  ;;  %v9561_v53 = vld [vmem:[%s12659_s5 + $0xe8] sm:$0xff]   ;;  %v9565_v6 = vld [vmem:[%s12659_s5 + $0x1a0] sm:$0xff]  }
 0x407   : > { %v5143_v19 = vrot.slane %v5025_v41, %v12690_v33  ;;  %v5162_v49 = vsel %vm2180_vm9, %v5158_v35, %v5101_v32  ;;  %v5118_v0 = vrot.slane %v5020_v1, %v10424_v12  ;;  %v5135_v40 = vrot.slane %v5025_v41, %v12691_v22  ;;  %v9555_v22 = vld [vmem:[%s12659_s5 + $0xf8] sm:$0xff]   ;;  %v9562_v27 = vld [vmem:[%s12659_s5 + $0x1a8] sm:$0xff]  }
 0x408   : > { %v5166_v52 = vsel %vm2185_vm10, %v5162_v49, %v5122_v46  ;;  %v5139_v38 = vrot.slane %v5025_v41, %v10424_v12  ;;  %v5152_v44 = vsel %vm2170_vm7, %v5030_v31, %v5051_v28  ;;  %v5153_v58 = vsel %vm2170_vm7, %v5034_v36, %v5055_v57  ;;  %v9556_v12 = vld [vmem:[%s12659_s5 + $0x160] sm:$0xff]   ;;  %8615 = vmatpush3.bf16.msra.mxu0 %v9555_v22  ;;  %v9567_v31 = vld [vmem:[%s12659_s5 + $0xd8] sm:$0xff]   ;;  %v9578_v22 = vld [vmem:[%s12659_s5 + $0xb0] sm:$0xff]  }
 0x409   : > { %v11976_v56 = vsel %vm2190_vm11, %v5166_v52, %v5143_v19  ;;  %v5156_v14 = vsel %vm2175_vm8, %v5152_v44, %v5072_v7  ;;  %v5157_v33 = vsel %vm2175_vm8, %v5153_v58, %v5076_v15  ;;  %v5042_v10 = vrot.slane %v5000_v25, %v10426_v13  ;;  %5574 = vmatpush1.bf16.msra.mxu1 %v9556_v12  ;;  %v9568_v36 = vld [vmem:[%s12659_s5 + $0x198] sm:$0xff]   ;;  %v9580_v12 = vld [vmem:[%s12659_s5 + $0x28] sm:$0xff]  }
 0x40a   : > { %5180 = vrot.lane.b32.xlu0 %v11976_v56, %s9787_s21  ;;  %v5160_v34 = vsel %vm2180_vm9, %v5156_v14, %v5093_v48  ;;  %v5161_v18 = vsel %vm2180_vm9, %v5157_v33, %v5097_v8  ;;  %v5063_v11 = vrot.slane %v5005_v51, %v10426_v13  ;;  %v5084_v3 = vrot.slane %v5010_v45, %v10426_v13  ;;  %v9576_v14 = vld [vmem:[%s12659_s5 + $0x70] sm:$0xff]  }
 0x40b   : > { %v5164_v21 = vsel %vm2185_vm10, %v5160_v34, %v5114_v4  ;;  %v5165_v26 = vsel %vm2185_vm10, %v5161_v18, %v5118_v0  ;;  %v5126_v47 = vrot.slane %v5020_v1, %v10426_v13  ;;  %v5105_v24 = vrot.slane %v5015_v16, %v10426_v13  ;;  %8616 = vmatprep.subr.bf16.mxu0 %v9557_v20  ;;  %v9571_v16 = vld [vmem:[%s12659_s5 + $0x78] sm:$0xff]   ;;  %v9577_v33 = vld [vmem:[%s12659_s5 + $0x30] sm:$0xff]   ;;  %v9582_v20 = vld [vmem:[%s12659_s5 + $0x60] sm:$0xff]  }
 0x40c   : > { %v5168_v54 = vsel %vm2190_vm11, %v5164_v21, %v5135_v40  ;;  %v5169_v55 = vsel %vm2190_vm11, %v5165_v26, %v5139_v38  ;;  %v5155_v59 = vsel %vm2170_vm7, %v5042_v10, %v5063_v11  ;;  %5575 = vmatprep.subr.bf16.mxu1 %v12692_v50  ;;  %v5147_v37 = vrot.slane %v5025_v41, %v10426_v13  ;;  %v9563_v13 = vld [vmem:[%s12659_s5 + $0x120] sm:$0xff]   ;;  %v9572_v40 = vld [vmem:[%s12659_s5 + $0x38] sm:$0xff]   ;;  %v9579_v10 = vld [vmem:[%s12659_s5 + $0x68] sm:$0xff]  }
 0x40d   : > { %v8839_v30 = vpack.i.bf16 %v5169_v55, %v5168_v54  ;;  %v5159_v25 = vsel %vm2175_vm8, %v5155_v59, %v5084_v3  ;;  %8617 = vmatpush3.bf16.msra.mxu0 %v9558_v61  ;;  %5576 = vmatpush1.bf16.msra.mxu1 %v9559_v9  ;;  %v9581_v34 = vld [vmem:[%s12659_s5 + $0xa8] sm:$0xff]   ;;  %v9583_v18 = vld [vmem:[%s12659_s5 + $0x20] sm:$0xff]   ;;  %v9585_v11 = vld [vmem:[%s12659_s5 + $0x58] sm:$0xff]   ;;  %vm9791_vm7 = vmmov 0   ;;  %vm7238_vm8 = vcmask 73728  }
 0x40e   : > { %5191 = vrot.lane.b32.xlu0 %v5168_v54, %s9789_s28  ;;  %v5163_v43 = vsel %vm2180_vm9, %v5159_v25, %v5105_v24  ;;  %8618 = vmatprep.subr.bf16.mxu0 %v9560_v17  ;;  %v9584_v3 = vld [vmem:[%s12659_s5 + $0xa0] sm:$0xff]   ;;  %v9586_v21 = vld [vmem:[%s12659_s5 + $0x18] sm:$0xff]   ;;  %v9588_v26 = vld [vmem:[%s12659_s5 + $0x50] sm:$0xff]  }
 0x40f   : > { %8840 = vrot.lane.b32.xlu1 %v8839_v30, %s9787_s21  ;;  %v5167_v51 = vsel %vm2185_vm10, %v5163_v43, %v5126_v47  ;;  %5587 = vmatprep.subr.bf16.mxu1 %v12692_v50  ;;  %v9587_v47 = vld [vmem:[%s12659_s5 + $0x98] sm:$0xff]   ;;  %v9589_v61 = vld [vmem:[%s12659_s5 + $0x10] sm:$0xff]   ;;  %v9592_v24 = vld [vmem:[%s12659_s5 + $0x8] sm:$0xff]  }
 0x410   : > { %v5171_v45 = vsel %vm2190_vm11, %v5167_v51, %v5147_v37  ;;  %v9594_v59 = vld [vmem:[%s12659_s5 + $0x40] sm:$0xff]   ;;  %v9593_v9 = vld [vmem:[%s12659_s5 + $0x88] sm:$0xff]  }
 0x411   : > { %8619 = vmatpush3.bf16.msra.mxu0 %v9561_v53  ;;  %5588 = vmatpush2.bf16.msra.mxu1 %v9562_v27  ;;  %v9595_v30 = vld [vmem:[%s12659_s5] sm:$0xff]   ;;  %v9597_v25 = vld [vmem:[%s12659_s5 + $0x228] sm:$0xff]  }
 0x412   : > { %8620 = vmatprep.subr.bf16.mxu0 %v9563_v13  ;;  %5589 = vmatprep.subr.bf16.mxu1 %v12692_v50  ;;  %v9596_v37 = vld [vmem:[%s12659_s5 + $0x80] sm:$0xff]   ;;  %v9598_v51 = vld [vmem:[%s12659_s5 + $0x1e8] sm:$0xff]   ;;  %v9601_v13 = vld [vmem:[%s12659_s5 + $0xd0] sm:$0xff]  }
 0x413   : > { %5182 = vrot.lane.b32.xlu1 %v5171_v45, %s9787_s21  ;;  %v9602_v53 = vld [vmem:[%s12659_s5 + $0x220] sm:$0xff]   ;;  %s9724_s21 = scalar_lea.vmem %s12615_s25, 16 }
 0x414   : > { %p9725_p11 = scmp.ne.s32.totalorder %s12615_s25, %s9724_s21  ;;  %p9732_p1 = scmp.lt.s32.totalorder %s9730_s22, %s9724_s21 }
 0x415   : > { %8621 = vmatpush3.bf16.msra.mxu0 %v9564_v23  ;;  %5590 = vmatpush2.bf16.msra.mxu1 %v9565_v6  ;;  %v9605_v23 = vld [vmem:[%s12659_s5 + $0x218] sm:$0xff]   ;;  %v9604_v6 = vld [vmem:[%s12659_s5 + $0xc8] sm:$0xff]  }
 0x416   : > { %8622 = vmatprep.subr.bf16.mxu0 %v9566_v42  ;;  %5591 = vmatprep.subr.bf16.mxu1 %v12692_v50  ;;  %v9606_v42 = vld [vmem:[%s12659_s5 + $0x1d8] sm:$0xff]   ;;  %p9726_p12 = pnand %p9725_p11, %p9881_p5  ;;  %p9733_p2 = por %p9732_p1, %p9731_p0 }
 0x418   : > { %p9727_p13 = pneg %p9726_p12 }
 0x419   : > { %8623 = vmatpush3.bf16.msra.mxu0 %v9567_v31  ;;  %5592 = vmatpush2.bf16.msra.mxu1 %v9568_v36  ;;  %v9608_v31 = vld [vmem:[%s12659_s5 + $0x210] sm:$0xff]  }
 0x41a   : > { %8630 = vmatprep.subr.bf16.mxu0 %v9571_v16  ;;  %5808 = vmatprep.subr.bf16.mxu1 %v12692_v50  ;;  %v9607_v16 = vld [vmem:[%s12659_s5 + $0xc0] sm:$0xff]   ;;  %p9734_p3 = pnand %p9733_p2, %p9727_p13 }
 0x47c   : > { %v5181_v39 = vpop.permute.xlu0 %5180 }
 0x480   : > { %v5192_v63 = vpop.permute.xlu0 %5191 }
 0x481   : > { %v8841_v2 = vpop.permute.xlu1 %8840 }
 0x482   : > { %v8843_v5 = vunpack.i.h.bf16 %v8841_v2  ;;  %v8842_v28 = vunpack.i.l.bf16 %v8841_v2 }
 0x484   : > { %v5185_v57 = vsel %vm2249_vm12, %v8843_v5, %v5181_v39  ;;  %v5184_v1 = vsel %vm2249_vm12, %v8842_v28, %v8843_v5  ;;  %v9612_v5 = vld [vmem:[%s12659_s5 + $0x208] sm:$0xff]  }
 0x485   : > { %v5197_v60 = vmax.f32 %v5169_v55, %v5185_v57  ;;  %v5196_v29 = vmax.f32 %v5168_v54, %v5184_v1  ;;  %v5183_v7 = vpop.permute.xlu1 %5182  ;;  %v9591_v54 = vld [vmem:[%s12659_s5 + $0x48] sm:$0xff]   ;;  %v9590_v55 = vld [vmem:[%s12659_s5 + $0x90] sm:$0xff]  }
 0x486   : > { %v5186_v15 = vsel %vm2249_vm12, %v5181_v39, %v5183_v7  ;;  %v5195_v41 = vsel %vm5194_vm4, %v5183_v7, %v5192_v63  ;;  %v9609_v39 = vld [vmem:[%s12659_s5 + $0x1d0] sm:$0xff]   ;;  %v9610_v28 = vld [vmem:[%s12659_s5 + $0x268] sm:$0xff]   ;;  %v9616_v63 = vld [vmem:[%s12659_s5 + $0x1c0] sm:$0xff]  }
 0x487   : > { %v8606_v32 = vpack.c.bf16 %v5197_v60, %v5196_v29  ;;  %v5198_v62 = vmax.f32 %v11976_v56, %v5186_v15  ;;  %v5199_v48 = vmax.f32 %v5171_v45, %v5195_v41  ;;  %v9575_v56 = vld [vmem:[%s12659_s5 + $0xb8] sm:$0xff]   ;;  %v9603_v45 = vld [vmem:[%s12659_s5 + $0x1e0] sm:$0xff]   ;;  %v9613_v1 = vld [vmem:[%s12659_s5 + $0x1c8] sm:$0xff]  }
 0x488   : > { %v9615_v60 = vld [vmem:[%s12659_s5 + $0x200] sm:$0xff]   ;;  %v9618_v7 = vld [vmem:[%s12659_s5 + $0x1f8] sm:$0xff]  }
 0x489   : > { %5216 = vst [vmem:[#allocation5] sm:$0x77] %v8606_v32  ;;  %v8607_v46 = vpack.c.bf16 %v5199_v48, %v5198_v62  ;;  %v9614_v29 = vld [vmem:[%s12659_s5 + $0x260] sm:$0xff]   ;;  %v9617_v15 = vld [vmem:[%s12659_s5 + $0x258] sm:$0xff]   ;;  %v9621_v32 = vld [vmem:[%s12659_s5 + $0x1f0] sm:$0xff]  }
 0x48a   : > { %v9619_v41 = vld [vmem:[%s12659_s5 + $0x1b8] sm:$0xff]   ;;  %v9620_v62 = vld [vmem:[%s12659_s5 + $0x250] sm:$0xff]  }
 0x48b   : > { %5219 = vst.msk [vmem:[#allocation5 + $0x8] sm:$0x77] %vm5218_vm6, %v8607_v46  ;;  %v9622_v48 = vld [vmem:[%s12659_s5 + $0x1b0] sm:$0xff]  }
 0x490   : > { %v5220_v35 = vld [vmem:[#allocation5] sm:$0x11]  ;;  %v12133_v17 = vld [vmem:[#allocation5] sm:$0x22] }
 0x491   : > { %v12056_v8 = vcombine.low %v5220_v35, %v5220_v35  ;;  %v8195_v4 = vcombine.high %v5220_v35, %v5220_v35  ;;  %v12146_v43 = vcombine.high %v12133_v17, %v12133_v17  ;;  %v12235_v46 = vcombine.low %v12133_v17, %v12133_v17  ;;  %v9624_v35 = vld [vmem:[%s12659_s5 + $0x300] sm:$0xff]   ;;  %v9651_v17 = vld [vmem:[%s12659_s5 + $0x3d0] sm:$0xff]  }
 0x492   : > { %v5221_v19 = vld [vmem:[#allocation5 + $0x8] sm:$0x11]  ;;  %v12177_v36 = vld [vmem:[#allocation5 + $0x8] sm:$0x22] }
 0x493   : > { %v5345_v49 = vshrl.u32 %v8195_v4, 16  ;;  %v5342_v0 = vshrl.u32 %v12056_v8, 16  ;;  %v8197_v52 = vcombine.high %v5221_v19, %v5221_v19  ;;  %v12062_v38 = vcombine.low %v5221_v19, %v5221_v19  ;;  %v9625_v19 = vld [vmem:[%s12659_s5 + $0x2c0] sm:$0xff]  }
 0x494   : > { %v5916_v27 = vrot.slane %v12146_v43, 1  ;;  %v12188_v2 = vcombine.high %v12177_v36, %v12177_v36 }
 0x495   : > { %5553 = vmatprep.mubr.bf16.mxu0 %v5345_v49  ;;  %v5351_v44 = vshrl.u32 %v8197_v52, 16  ;;  %v5348_v58 = vshrl.u32 %v12062_v38, 16  ;;  %v5915_v49 = vrot.slane %v12235_v46, 1 }
 0x496   : > { %5554 = vmatmul.mubr.bf16.vlgmr.msra.gmra.mxu0 %v5342_v0  ;;  %v5918_v57 = vrot.slane %v12188_v2, 1  ;;  %v9627_v0 = vld [vmem:[%s12659_s5 + $0x2f8] sm:$0xff]  }
 0x497   : > { %8631 = vmatpush3.bf16.msra.mxu0 %v9572_v40  ;;  %8225 = vmatprep.mubr.msk.bf16.mxu1 %vm4990_vm2, %v5351_v44  ;;  %v9630_v44 = vld [vmem:[%s12659_s5 + $0x2f0] sm:$0xff]  }
 0x498   : > { %5800 = vmatprep.mubr.bf16.mxu0 %v8195_v4  ;;  %5594 = vmatmul.mubr.bf16.vlgmr.msra.gmra.mxu1 %v5348_v58  ;;  %v6228_v4 = vshrl.u32 %v12146_v43, 16  ;;  %v9629_v58 = vld [vmem:[%s12659_s5 + $0x238] sm:$0xff]   ;;  %v9652_v43 = vld [vmem:[%s12659_s5 + $0x390] sm:$0xff]  }
 0x499   : > { %5809 = vmatpush1.bf16.msra.mxu1 %v9575_v56  ;;  %8632 = vmatprep.subr.bf16.mxu0 %v9576_v14  ;;  %v9631_v56 = vld [vmem:[%s12659_s5 + $0x2b0] sm:$0xff]   ;;  %v9633_v14 = vld [vmem:[%s12659_s5 + $0x2e8] sm:$0xff]  }
 0x49a   : > { %8253 = vmatprep.mubr.msk.bf16.mxu1 %vm4990_vm2, %v8197_v52  ;;  %5810 = vmatprep.subr.bf16.mxu1 %v12692_v50  ;;  %v6230_v40 = vrot.slane %v6228_v4, 1  ;;  %v9626_v52 = vld [vmem:[%s12659_s5 + $0x240] sm:$0xff]   ;;  %v9675_v4 = vld [vmem:[%s12659_s5 + $0x410] sm:$0xff]  }
 0x49b   : > { %8633 = vmatpush3.bf16.msra.mxu0 %v9577_v33  ;;  %v9632_v33 = vld [vmem:[%s12659_s5 + $0x230] sm:$0xff]  }
 0x49c   : > { %8634 = vmatprep.subr.bf16.mxu0 %v9579_v10  ;;  %v9634_v10 = vld [vmem:[%s12659_s5 + $0x2a8] sm:$0xff]  }
 0x49d   : > { %5811 = vmatpush1.bf16.msra.mxu1 %v9578_v22  ;;  %v9636_v22 = vld [vmem:[%s12659_s5 + $0x2e0] sm:$0xff]  }
 0x49e   : > { %5812 = vmatprep.subr.bf16.mxu1 %v12692_v50 }
 0x49f   : > { %8635 = vmatpush3.bf16.msra.mxu0 %v9580_v12  ;;  %v9635_v12 = vld [vmem:[%s12659_s5 + $0x280] sm:$0xff]  }
 0x4a0   : > { %8636 = vmatprep.subr.bf16.mxu0 %v9582_v20  ;;  %v9637_v20 = vld [vmem:[%s12659_s5 + $0x2a0] sm:$0xff]  }
 0x4a1   : > { %5813 = vmatpush1.bf16.msra.mxu1 %v9581_v34  ;;  %v9639_v34 = vld [vmem:[%s12659_s5 + $0x2d8] sm:$0xff]  }
 0x4a2   : > { %5814 = vmatprep.subr.bf16.mxu1 %v12692_v50 }
 0x4a3   : > { %8637 = vmatpush3.bf16.msra.mxu0 %v9583_v18  ;;  %v9638_v18 = vld [vmem:[%s12659_s5 + $0x278] sm:$0xff]  }
 0x4a4   : > { %8638 = vmatprep.subr.bf16.mxu0 %v9585_v11  ;;  %v9640_v11 = vld [vmem:[%s12659_s5 + $0x298] sm:$0xff]  }
 0x4a5   : > { %5815 = vmatpush1.bf16.msra.mxu1 %v9584_v3  ;;  %v9642_v3 = vld [vmem:[%s12659_s5 + $0x2d0] sm:$0xff]  }
 0x4a6   : > { %5816 = vmatprep.subr.bf16.mxu1 %v12692_v50 }
 0x4a7   : > { %8639 = vmatpush3.bf16.msra.mxu0 %v9586_v21  ;;  %v12302_v21 = vld [vmem:[#allocation5] sm:$0x44] }
 0x4a8   : > { %8640 = vmatprep.subr.bf16.mxu0 %v9588_v26  ;;  %v9641_v26 = vld [vmem:[%s12659_s5 + $0x270] sm:$0xff]  }
 0x4a9   : > { %5817 = vmatpush1.bf16.msra.mxu1 %v9587_v47  ;;  %v12310_v47 = vcombine.low %v12177_v36, %v12177_v36  ;;  %v9660_v36 = vld [vmem:[%s12659_s5 + $0x3b8] sm:$0xff]  }
 0x4aa   : > { %5818 = vmatprep.subr.bf16.mxu1 %v12692_v50 }
 0x4ab   : > { %8641 = vmatpush3.bf16.msra.mxu0 %v9589_v61  ;;  %v9645_v61 = vld [vmem:[%s12659_s5 + $0x3d8] sm:$0xff]  }
 0x4ac   : > { %8642 = vmatprep.subr.bf16.mxu0 %v9591_v54  ;;  %v9643_v54 = vld [vmem:[%s12659_s5 + $0x290] sm:$0xff]  }
 0x4ad   : > { %5819 = vmatpush1.bf16.msra.mxu1 %v9590_v55  ;;  %v12320_v55 = vcombine.high %v12302_v21, %v12302_v21 }
 0x4ae   : > { %5820 = vmatprep.subr.bf16.mxu1 %v12692_v50 }
 0x4af   : > { %8643 = vmatpush3.bf16.msra.mxu0 %v9592_v24  ;;  %v9649_v24 = vld [vmem:[%s12659_s5 + $0x2c8] sm:$0xff]  }
 0x4b0   : > { %8644 = vmatprep.subr.bf16.mxu0 %v9594_v59  ;;  %v9646_v59 = vld [vmem:[%s12659_s5 + $0x398] sm:$0xff]  }
 0x4b1   : > { %5821 = vmatpush1.bf16.msra.mxu1 %v9593_v9  ;;  %v5917_v9 = vrot.slane %v12310_v47, 1 }
 0x4b2   : > { %5822 = vmatprep.subr.bf16.mxu1 %v12692_v50 }
 0x4b3   : > { %8645 = vmatpush3.bf16.msra.mxu0 %v9595_v30  ;;  %v6556_v30 = vrot.slane %v12320_v55, 2 }
 0x4b4   : > { %8652 = vmatprep.subr.bf16.mxu0 %v9597_v25  ;;  %v9650_v25 = vld [vmem:[%s12659_s5 + $0x288] sm:$0xff]  }
 0x4b5   : > { %5823 = vmatpush1.bf16.msra.mxu1 %v9596_v37  ;;  %v6224_v37 = vshrl.u32 %v12235_v46, 16 }
 0x4b6   : > { %5801 = vmatmul.mubr.bf16.vlgmr.msra.gmra.mxu0 %v12056_v8  ;;  %5834 = vmatprep.subr.bf16.mxu1 %v12692_v50  ;;  %v9623_v8 = vld [vmem:[%s12659_s5 + $0x248] sm:$0xff]  }
 0x4b7   : > { %8653 = vmatpush3.bf16.msra.mxu0 %v9598_v51  ;;  %6119 = vmatprep.mubr.bf16.mxu0 %v5916_v27  ;;  %v6236_v51 = vshrl.u32 %v12188_v2, 16  ;;  %v9653_v27 = vld [vmem:[%s12659_s5 + $0x340] sm:$0xff]   ;;  %v9663_v2 = vld [vmem:[%s12659_s5 + $0x3b0] sm:$0xff]  }
 0x4b8   : > { %8654 = vmatprep.subr.bf16.mxu0 %v9602_v53  ;;  %v9654_v53 = vld [vmem:[%s12659_s5 + $0x3c8] sm:$0xff]  }
 0x4b9   : > { %5835 = vmatpush2.bf16.msra.mxu1 %v9601_v13  ;;  %v6226_v13 = vrot.slane %v6224_v37, 1  ;;  %v9703_v37 = vld [vmem:[%s12659_s5 + $0x478] sm:$0xff]  }
 0x4ba   : > { %5836 = vmatprep.subr.bf16.mxu1 %v12692_v50 }
 0x4bb   : > { %8655 = vmatpush3.bf16.msra.mxu0 %v9603_v45  ;;  %v6238_v45 = vrot.slane %v6236_v51, 1  ;;  %v9704_v51 = vld [vmem:[%s12659_s5 + $0x438] sm:$0xff]  }
 0x4bc   : > { %8656 = vmatprep.subr.bf16.mxu0 %v9605_v23  ;;  %v9655_v23 = vld [vmem:[%s12659_s5 + $0x388] sm:$0xff]  }
 0x4bd   : > { %5837 = vmatpush2.bf16.msra.mxu1 %v9604_v6  ;;  %v9657_v6 = vld [vmem:[%s12659_s5 + $0x3c0] sm:$0xff]  }
 0x4be   : > { %5838 = vmatprep.subr.bf16.mxu1 %v12692_v50 }
 0x4bf   : > { %8657 = vmatpush3.bf16.msra.mxu0 %v9606_v42  ;;  %v9656_v42 = vld [vmem:[%s12659_s5 + $0x338] sm:$0xff]  }
 0x4c0   : > { %8658 = vmatprep.subr.bf16.mxu0 %v9608_v31  ;;  %v9658_v31 = vld [vmem:[%s12659_s5 + $0x380] sm:$0xff]  }
 0x4c1   : > { %5839 = vmatpush2.bf16.msra.mxu1 %v9607_v16  ;;  %v9659_v16 = vld [vmem:[%s12659_s5 + $0x330] sm:$0xff]  }
 0x4c2   : > { %6127 = vmatprep.subr.bf16.mxu1 %v12692_v50 }
 0x4c3   : > { %8659 = vmatpush3.bf16.msra.mxu0 %v9609_v39  ;;  %v9661_v39 = vld [vmem:[%s12659_s5 + $0x378] sm:$0xff]  }
 0x4c4   : > { %5841 = vmatmul.mubr.bf16.vlgmr.msra.gmra.mxu1 %v12062_v38  ;;  %8660 = vmatprep.subr.bf16.mxu0 %v9612_v5  ;;  %v9628_v38 = vld [vmem:[%s12659_s5 + $0x2b8] sm:$0xff]   ;;  %v9662_v5 = vld [vmem:[%s12659_s5 + $0x328] sm:$0xff]  }
 0x4c5   : > { %6128 = vmatpush1.bf16.msra.mxu1 %v9610_v28  ;;  %8339 = vmatprep.mubr.msk.bf16.mxu1 %vm4990_vm2, %v5918_v57  ;;  %v9664_v28 = vld [vmem:[%s12659_s5 + $0x370] sm:$0xff]   ;;  %v9666_v57 = vld [vmem:[%s12659_s5 + $0x3a8] sm:$0xff]  }
 0x4c6   : > { %6129 = vmatprep.subr.bf16.mxu1 %v12692_v50 }
 0x4c7   : > { %8661 = vmatpush3.bf16.msra.mxu0 %v9613_v1  ;;  %v9665_v1 = vld [vmem:[%s12659_s5 + $0x320] sm:$0xff]  }
 0x4c8   : > { %8662 = vmatprep.subr.bf16.mxu0 %v9615_v60  ;;  %v9667_v60 = vld [vmem:[%s12659_s5 + $0x368] sm:$0xff]  }
 0x4c9   : > { %6130 = vmatpush1.bf16.msra.mxu1 %v9614_v29  ;;  %v9669_v29 = vld [vmem:[%s12659_s5 + $0x3a0] sm:$0xff]  }
 0x4ca   : > { %6131 = vmatprep.subr.bf16.mxu1 %v12692_v50 }
 0x4cb   : > { %8663 = vmatpush3.bf16.msra.mxu0 %v9616_v63  ;;  %v9668_v63 = vld [vmem:[%s12659_s5 + $0x318] sm:$0xff]  }
 0x4cc   : > { %8664 = vmatprep.subr.bf16.mxu0 %v9618_v7  ;;  %v12399_v7 = vld [vmem:[#allocation5 + $0x8] sm:$0x44] }
 0x4cd   : > { %6132 = vmatpush1.bf16.msra.mxu1 %v9617_v15  ;;  %v9670_v15 = vld [vmem:[%s12659_s5 + $0x360] sm:$0xff]  }
 0x4ce   : > { %6133 = vmatprep.subr.bf16.mxu1 %v12692_v50 }
 0x4cf   : > { %8665 = vmatpush3.bf16.msra.mxu0 %v9619_v41  ;;  %v12406_v41 = vcombine.low %v12302_v21, %v12302_v21  ;;  %v9690_v21 = vld [vmem:[%s12659_s5 + $0x3e0] sm:$0xff]  }
 0x4d0   : > { %8666 = vmatprep.subr.bf16.mxu0 %v9621_v32  ;;  %v9671_v32 = vld [vmem:[%s12659_s5 + $0x310] sm:$0xff]  }
 0x4d1   : > { %6134 = vmatpush1.bf16.msra.mxu1 %v9620_v62  ;;  %v12413_v62 = vcombine.high %v12399_v7, %v12399_v7  ;;  %v6555_v46 = vrot.slane %v12406_v41, 2 }
 0x4d2   : > { %6135 = vmatprep.subr.bf16.mxu1 %v12692_v50 }
 0x4d3   : > { %8667 = vmatpush3.bf16.msra.mxu0 %v9622_v48  ;;  %v9672_v48 = vld [vmem:[%s12659_s5 + $0x418] sm:$0xff]  }
 0x4d4   : > { %8674 = vmatprep.subr.bf16.mxu0 %v9624_v35  ;;  %v6558_v35 = vrot.slane %v12413_v62, 2 }
 0x4d5   : > { %6136 = vmatpush1.bf16.msra.mxu1 %v9623_v8  ;;  %v9674_v8 = vld [vmem:[%s12659_s5 + $0x308] sm:$0xff]  }
 0x4d6   : > { %6120 = vmatmul.mubr.bf16.vlgmr.msra.gmra.mxu0 %v5915_v49  ;;  %6137 = vmatprep.subr.bf16.mxu1 %v12692_v50  ;;  %v9677_v49 = vld [vmem:[%s12659_s5 + $0x408] sm:$0xff]  }
 0x4d7   : > { %8675 = vmatpush3.bf16.msra.mxu0 %v9625_v19  ;;  %6439 = vmatprep.mubr.bf16.mxu0 %v6230_v40  ;;  %v9676_v19 = vld [vmem:[%s12659_s5 + $0x358] sm:$0xff]   ;;  %v9679_v40 = vld [vmem:[%s12659_s5 + $0x400] sm:$0xff]  }
 0x4d8   : > { %8676 = vmatprep.subr.bf16.mxu0 %v9627_v0  ;;  %v9678_v0 = vld [vmem:[%s12659_s5 + $0x350] sm:$0xff]  }
 0x4d9   : > { %6138 = vmatpush1.bf16.msra.mxu1 %v9626_v52  ;;  %v9680_v52 = vld [vmem:[%s12659_s5 + $0x348] sm:$0xff]  }
 0x4da   : > { %6139 = vmatprep.subr.bf16.mxu1 %v12692_v50 }
 0x4db   : > { %8677 = vmatpush3.bf16.msra.mxu0 %v9628_v38  ;;  %v6232_v38 = vshrl.u32 %v12310_v47, 16  ;;  %v9694_v47 = vld [vmem:[%s12659_s5 + $0x490] sm:$0xff]  }
 0x4dc   : > { %8678 = vmatprep.subr.bf16.mxu0 %v9630_v44  ;;  %v9682_v44 = vld [vmem:[%s12659_s5 + $0x4b0] sm:$0xff]  }
 0x4dd   : > { %6140 = vmatpush1.bf16.msra.mxu1 %v9629_v58  ;;  %v9681_v58 = vld [vmem:[%s12659_s5 + $0x3f8] sm:$0xff]  }
 0x4de   : > { %6141 = vmatprep.subr.bf16.mxu1 %v12692_v50 }
 0x4df   : > { %8679 = vmatpush3.bf16.msra.mxu0 %v9631_v56  ;;  %v6868_v56 = vshrl.u32 %v12320_v55, 16  ;;  %v9697_v55 = vld [vmem:[%s12659_s5 + $0x488] sm:$0xff]  }
 0x4e0   : > { %8680 = vmatprep.subr.bf16.mxu0 %v9633_v14  ;;  %v9683_v14 = vld [vmem:[%s12659_s5 + $0x470] sm:$0xff]  }
 0x4e1   : > { %6142 = vmatpush1.bf16.msra.mxu1 %v9632_v33  ;;  %v6234_v33 = vrot.slane %v6232_v38, 1 }
 0x4e2   : > { %6153 = vmatprep.subr.bf16.mxu1 %v12692_v50 }
 0x4e3   : > { %8681 = vmatpush3.bf16.msra.mxu0 %v9634_v10  ;;  %v9685_v10 = vld [vmem:[%s12659_s5 + $0x4a8] sm:$0xff]  }
 0x4e4   : > { %8682 = vmatprep.subr.bf16.mxu0 %v9636_v22  ;;  %v6870_v22 = vrot.slane %v6868_v56, 2  ;;  %v9716_v56 = vld [vmem:[%s12661_s7 + $0x38] sm:$0xff]  }
 0x4e5   : > { %6154 = vmatpush2.bf16.msra.mxu1 %v9635_v12  ;;  %v9684_v12 = vld [vmem:[%s12659_s5 + $0x3f0] sm:$0xff]  }
 0x4e6   : > { %6155 = vmatprep.subr.bf16.mxu1 %v12692_v50 }
 0x4e7   : > { %8683 = vmatpush3.bf16.msra.mxu0 %v9637_v20  ;;  %v9686_v20 = vld [vmem:[%s12659_s5 + $0x468] sm:$0xff]  }
 0x4e8   : > { %8684 = vmatprep.subr.bf16.mxu0 %v9639_v34  ;;  %v9688_v34 = vld [vmem:[%s12659_s5 + $0x4a0] sm:$0xff]  }
 0x4e9   : > { %6156 = vmatpush2.bf16.msra.mxu1 %v9638_v18  ;;  %v9687_v18 = vld [vmem:[%s12659_s5 + $0x3e8] sm:$0xff]  }
 0x4ea   : > { %6157 = vmatprep.subr.bf16.mxu1 %v12692_v50 }
 0x4eb   : > { %8685 = vmatpush3.bf16.msra.mxu0 %v9640_v11  ;;  %v9689_v11 = vld [vmem:[%s12659_s5 + $0x460] sm:$0xff]  }
 0x4ec   : > { %8686 = vmatprep.subr.bf16.mxu0 %v9642_v3  ;;  %v9691_v3 = vld [vmem:[%s12659_s5 + $0x498] sm:$0xff]  }
 0x4ed   : > { %6158 = vmatpush2.bf16.msra.mxu1 %v9641_v26  ;;  %v9692_v26 = vld [vmem:[%s12659_s5 + $0x458] sm:$0xff]  }
 0x4ee   : > { %8696 = vmatprep.subr.bf16.mxu1 %v9645_v61  ;;  %v9693_v61 = vld [vmem:[%s12659_s5 + $0x430] sm:$0xff]  }
 0x4ef   : > { %8687 = vmatpush3.bf16.msra.mxu0 %v9643_v54  ;;  %v9695_v54 = vld [vmem:[%s12659_s5 + $0x450] sm:$0xff]  }
 0x4f0   : > { %6160 = vmatmul.mubr.bf16.vlgmr.msra.gmra.mxu1 %v5917_v9  ;;  %8688 = vmatprep.subr.bf16.mxu0 %v9649_v24  ;;  %v9696_v24 = vld [vmem:[%s12659_s5 + $0x428] sm:$0xff]   ;;  %v9700_v9 = vld [vmem:[%s12659_s5 + $0x480] sm:$0xff]  }
 0x4f1   : > { %8697 = vmatpush3.bf16.msra.mxu1 %v9646_v59  ;;  %6759 = vmatprep.mubr.bf16.mxu1 %v6556_v30  ;;  %v9698_v59 = vld [vmem:[%s12659_s5 + $0x448] sm:$0xff]   ;;  %v8478_v30 = vcombine.low %v12399_v7, %v12399_v7 }
 0x4f2   : > { %8698 = vmatprep.subr.bf16.mxu1 %v9651_v17  ;;  %v9699_v17 = vld [vmem:[%s12659_s5 + $0x420] sm:$0xff]  }
 0x4f3   : > { %8689 = vmatpush3.bf16.msra.mxu0 %v9650_v25  ;;  %v9701_v25 = vld [vmem:[%s12659_s5 + $0x440] sm:$0xff]  }
 0x4f4   : > { %6447 = vmatprep.subr.bf16.mxu0 %v12692_v50 }
 0x4f5   : > { %8699 = vmatpush3.bf16.msra.mxu1 %v9652_v43  ;;  %v6557_v43 = vrot.slane %v8478_v30, 2 }
 0x4f6   : > { %6440 = vmatmul.mubr.bf16.vlgmr.msra.gmra.mxu0 %v6226_v13  ;;  %8700 = vmatprep.subr.bf16.mxu1 %v9654_v53  ;;  %v6864_v53 = vshrl.u32 %v12406_v41, 16  ;;  %v9705_v13 = vld [vmem:[%s12659_s5 + $0x4f0] sm:$0xff]  }
 0x4f7   : > { %6448 = vmatpush1.bf16.msra.mxu0 %v9653_v27  ;;  %8421 = vmatprep.mubr.msk.bf16.mxu0 %vm4990_vm2, %v6238_v45  ;;  %v6876_v27 = vshrl.u32 %v12413_v62, 16  ;;  %v9714_v62 = vld [vmem:[%s12659_s5 + $0x500] sm:$0xff]  }
 0x4f8   : > { %6449 = vmatprep.subr.bf16.mxu0 %v12692_v50  ;;  %v6866_v45 = vrot.slane %v6864_v53, 2 }
 0x4f9   : > { %8701 = vmatpush3.bf16.msra.mxu1 %v9655_v23  ;;  %v6878_v23 = vrot.slane %v6876_v27, 2 }
 0x4fa   : > { %8702 = vmatprep.subr.bf16.mxu1 %v9657_v6  ;;  %v9706_v6 = vld [vmem:[%s12659_s5 + $0x4e8] sm:$0xff]  }
 0x4fb   : > { %6450 = vmatpush1.bf16.msra.mxu0 %v9656_v42  ;;  %v9707_v42 = vld [vmem:[%s12659_s5 + $0x4e0] sm:$0xff]  }
 0x4fc   : > { %6451 = vmatprep.subr.bf16.mxu0 %v12692_v50 }
 0x4fd   : > { %8703 = vmatpush3.bf16.msra.mxu1 %v9658_v31  ;;  %v9708_v31 = vld [vmem:[%s12659_s5 + $0x4d8] sm:$0xff]  }
 0x4fe   : > { %8704 = vmatprep.subr.bf16.mxu1 %v9660_v36  ;;  %v9709_v36 = vld [vmem:[%s12659_s5 + $0x4d0] sm:$0xff]  }
 0x4ff   : > { %6452 = vmatpush1.bf16.msra.mxu0 %v9659_v16  ;;  %v9710_v16 = vld [vmem:[%s12659_s5 + $0x4c8] sm:$0xff]  }
 0x500   : > { %6453 = vmatprep.subr.bf16.mxu0 %v12692_v50 }
 0x501   : > { %8705 = vmatpush3.bf16.msra.mxu1 %v9661_v39 }
 0x502   : > { %8706 = vmatprep.subr.bf16.mxu1 %v9663_v2  ;;  %v9711_v2 = vld [vmem:[%s12659_s5 + $0x4c0] sm:$0xff]  }
 0x503   : > { %6454 = vmatpush1.bf16.msra.mxu0 %v9662_v5 }
 0x504   : > { %6455 = vmatprep.subr.bf16.mxu0 %v12692_v50 }
 0x505   : > { %8707 = vmatpush3.bf16.msra.mxu1 %v9664_v28 }
 0x506   : > { %8708 = vmatprep.subr.bf16.mxu1 %v9666_v57 }
 0x507   : > { %6456 = vmatpush1.bf16.msra.mxu0 %v9665_v1 }
 0x508   : > { %6457 = vmatprep.subr.bf16.mxu0 %v12692_v50 }
 0x509   : > { %8709 = vmatpush3.bf16.msra.mxu1 %v9667_v60 }
 0x50a   : > { %8710 = vmatprep.subr.bf16.mxu1 %v9669_v29 }
 0x50b   : > { %6458 = vmatpush1.bf16.msra.mxu0 %v9668_v63  ;;  %v9712_v63 = vld [vmem:[%s12659_s5 + $0x4b8] sm:$0xff]  }
 0x50c   : > { %6459 = vmatprep.subr.bf16.mxu0 %v12692_v50 }
 0x50d   : > { %8711 = vmatpush3.bf16.msra.mxu1 %v9670_v15 }
 0x50e   : > { %6767 = vmatprep.subr.bf16.mxu1 %v12692_v50 }
 0x50f   : > { %6460 = vmatpush1.bf16.msra.mxu0 %v9671_v32  ;;  %v9713_v32 = vld [vmem:[%s12659_s5 + $0x508] sm:$0xff]  }
 0x510   : > { %6760 = vmatmul.mubr.bf16.vlgmr.msra.gmra.mxu1 %v6555_v46  ;;  %6461 = vmatprep.subr.bf16.mxu0 %v12692_v50  ;;  %v6872_v46 = vshrl.u32 %v8478_v30, 16 }
 0x511   : > { %6768 = vmatpush1.bf16.msra.mxu1 %v9672_v48  ;;  %8507 = vmatprep.mubr.msk.bf16.mxu1 %vm4990_vm2, %v6558_v35  ;;  %v9715_v48 = vld [vmem:[%s12659_s5 + $0x4f8] sm:$0xff]  }
 0x512   : > { %6769 = vmatprep.subr.bf16.mxu1 %v12692_v50  ;;  %v6874_v35 = vrot.slane %v6872_v46, 2 }
 0x513   : > { %6462 = vmatpush1.bf16.msra.mxu0 %v9674_v8 }
 0x514   : > { %6473 = vmatprep.subr.bf16.mxu0 %v12692_v50 }
 0x515   : > { %6770 = vmatpush1.bf16.msra.mxu1 %v9675_v4 }
 0x516   : > { %6771 = vmatprep.subr.bf16.mxu1 %v12692_v50 }
 0x517   : > { %6474 = vmatpush2.bf16.msra.mxu0 %v9676_v19 }
 0x518   : > { %6475 = vmatprep.subr.bf16.mxu0 %v12692_v50 }
 0x519   : > { %6772 = vmatpush1.bf16.msra.mxu1 %v9677_v49 }
 0x51a   : > { %6773 = vmatprep.subr.bf16.mxu1 %v12692_v50 }
 0x51b   : > { %6476 = vmatpush2.bf16.msra.mxu0 %v9678_v0 }
 0x51c   : > { %6477 = vmatprep.subr.bf16.mxu0 %v12692_v50 }
 0x51d   : > { %6774 = vmatpush1.bf16.msra.mxu1 %v9679_v40 }
 0x51e   : > { %6775 = vmatprep.subr.bf16.mxu1 %v12692_v50 }
 0x51f   : > { %6478 = vmatpush2.bf16.msra.mxu0 %v9680_v52 }
 0x520   : > { %8718 = vmatprep.subr.bf16.mxu0 %v9682_v44 }
 0x521   : > { %6776 = vmatpush1.bf16.msra.mxu1 %v9681_v58 }
 0x522   : > { %6480 = vmatmul.mubr.bf16.vlgmr.msra.gmra.mxu0 %v6234_v33  ;;  %6777 = vmatprep.subr.bf16.mxu1 %v12692_v50  ;;  %v9717_v33 = vld [vmem:[%s12661_s7 + $0x30] sm:$0xff]  }
 0x523   : > { %8719 = vmatpush3.bf16.msra.mxu0 %v9683_v14  ;;  %7079 = vmatprep.mubr.bf16.mxu0 %v6870_v22  ;;  %v9790_v14 = vmov 0.0   ;;  %v9719_v22 = vld [vmem:[%s12661_s7 + $0x20] sm:$0xff]  }
 0x524   : > { %8720 = vmatprep.subr.bf16.mxu0 %v9685_v10  ;;  %v9718_v10 = vld [vmem:[%s12661_s7 + $0x28] sm:$0xff]  }
 0x525   : > { %6778 = vmatpush1.bf16.msra.mxu1 %v9684_v12 }
 0x526   : > { %6779 = vmatprep.subr.bf16.mxu1 %v12692_v50 }
 0x527   : > { %8721 = vmatpush3.bf16.msra.mxu0 %v9686_v20  ;;  %v9720_v20 = vld [vmem:[%s12661_s7 + $0x18] sm:$0xff]  }
 0x528   : > { %8722 = vmatprep.subr.bf16.mxu0 %v9688_v34 }
 0x529   : > { %6780 = vmatpush1.bf16.msra.mxu1 %v9687_v18 }
 0x52a   : > { %6781 = vmatprep.subr.bf16.mxu1 %v12692_v50 }
 0x52b   : > { %8723 = vmatpush3.bf16.msra.mxu0 %v9689_v11 }
 0x52c   : > { %8724 = vmatprep.subr.bf16.mxu0 %v9691_v3 }
 0x52d   : > { %6782 = vmatpush1.bf16.msra.mxu1 %v9690_v21 }
 0x52e   : > { %6793 = vmatprep.subr.bf16.mxu1 %v12692_v50 }
 0x52f   : > { %8725 = vmatpush3.bf16.msra.mxu0 %v9692_v26 }
 0x530   : > { %8726 = vmatprep.subr.bf16.mxu0 %v9694_v47 }
 0x531   : > { %6794 = vmatpush2.bf16.msra.mxu1 %v9693_v61 }
 0x532   : > { %6795 = vmatprep.subr.bf16.mxu1 %v12692_v50 }
 0x533   : > { %8727 = vmatpush3.bf16.msra.mxu0 %v9695_v54 }
 0x534   : > { %8728 = vmatprep.subr.bf16.mxu0 %v9697_v55  ;;  %v9721_v55 = vld [vmem:[%s12661_s7 + $0x10] sm:$0xff]  }
 0x535   : > { %6796 = vmatpush2.bf16.msra.mxu1 %v9696_v24 }
 0x536   : > { %6797 = vmatprep.subr.bf16.mxu1 %v12692_v50 }
 0x537   : > { %8729 = vmatpush3.bf16.msra.mxu0 %v9698_v59 }
 0x538   : > { %8730 = vmatprep.subr.bf16.mxu0 %v9700_v9  ;;  %v9722_v9 = vld [vmem:[%s12661_s7 + $0x8] sm:$0xff]  }
 0x539   : > { %6798 = vmatpush2.bf16.msra.mxu1 %v9699_v17 }
 0x53a   : > { %8749 = vmatprep.subr.bf16.mxu1 %v9790_v14 }
 0x53b   : > { %8731 = vmatpush3.bf16.msra.mxu0 %v9701_v25 }
 0x53c   : > { %6800 = vmatmul.mubr.bf16.vlgmr.msra.gmra.mxu1 %v6557_v43  ;;  %8732 = vmatprep.subr.bf16.mxu0 %v9703_v37  ;;  %v9723_v37 = vld [vmem:[%s12661_s7] sm:$0xff]  }
 0x53d   : > { %8750 = vmatpush3.bf16.msra.mxu1 %v9716_v56  ;;  %8765 = vmatprep.mubr.msk.bf16.mxu1 %vm9791_vm7, %v9790_v14 }
 0x53e   : > { %8751 = vmatprep.subr.bf16.mxu1 %v9790_v14 }
 0x53f   : > { %8733 = vmatpush3.bf16.msra.mxu0 %v9704_v51 }
 0x540   : > { %7087 = vmatprep.subr.bf16.mxu0 %v12692_v50 }
 0x541   : > { %8752 = vmatpush3.bf16.msra.mxu1 %v9717_v33 }
 0x542   : > { %7080 = vmatmul.mubr.bf16.vlgmr.msra.gmra.mxu0 %v6866_v45  ;;  %8753 = vmatprep.subr.bf16.mxu1 %v9790_v14 }
 0x543   : > { %7088 = vmatpush1.bf16.msra.mxu0 %v9705_v13  ;;  %8589 = vmatprep.mubr.msk.bf16.mxu0 %vm4990_vm2, %v6878_v23 }
 0x544   : > { %7089 = vmatprep.subr.bf16.mxu0 %v12692_v50 }
 0x545   : > { %8754 = vmatpush3.bf16.msra.mxu1 %v9718_v10 }
 0x546   : > { %8755 = vmatprep.subr.bf16.mxu1 %v9790_v14 }
 0x547   : > { %7090 = vmatpush1.bf16.msra.mxu0 %v9706_v6 }
 0x548   : > { %7091 = vmatprep.subr.bf16.mxu0 %v12692_v50 }
 0x549   : > { %8756 = vmatpush3.bf16.msra.mxu1 %v9719_v22 }
 0x54a   : > { %8757 = vmatprep.subr.bf16.mxu1 %v9790_v14 }
 0x54b   : > { %7092 = vmatpush1.bf16.msra.mxu0 %v9707_v42 }
 0x54c   : > { %7093 = vmatprep.subr.bf16.mxu0 %v12692_v50 }
 0x54d   : > { %8758 = vmatpush3.bf16.msra.mxu1 %v9720_v20 }
 0x54e   : > { %8759 = vmatprep.subr.bf16.mxu1 %v9790_v14 }
 0x54f   : > { %7094 = vmatpush1.bf16.msra.mxu0 %v9708_v31 }
 0x550   : > { %7095 = vmatprep.subr.bf16.mxu0 %v12692_v50 }
 0x551   : > { %8760 = vmatpush3.bf16.msra.mxu1 %v9721_v55 }
 0x552   : > { %8761 = vmatprep.subr.bf16.mxu1 %v9790_v14 }
 0x553   : > { %7096 = vmatpush1.bf16.msra.mxu0 %v9709_v36 }
 0x554   : > { %7097 = vmatprep.subr.bf16.mxu0 %v12692_v50 }
 0x555   : > { %8762 = vmatpush3.bf16.msra.mxu1 %v9722_v9 }
 0x556   : > { %v8624_v39 = vpop.f32.mrf.mxu0  ;;  %8763 = vmatprep.subr.bf16.mxu1 %v9790_v14 }
 0x557   : > { %7098 = vmatpush1.bf16.msra.mxu0 %v9710_v16 }
 0x558   : > { %v8625_v5 = vpop.f32.mrf.mxu0  ;;  %v5595_v28 = vpop.f32.mrf.mxu1  ;;  %7099 = vmatprep.subr.bf16.mxu0 %v12692_v50 }
 0x559   : > { %v8626_v57 = vadd.f32 %v8625_v5, %v8624_v39  ;;  %8764 = vmatpush3.bf16.msra.mxu1 %v9723_v37 }
 0x55a   : > { %v8627_v1 = vpop.f32.mrf.mxu0  ;;  %v5597_v60 = vpop.f32.mrf.mxu1 }
 0x55b   : > { %v5596_v29 = vadd.f32 %v8626_v57, %v5595_v28  ;;  %7100 = vmatpush1.bf16.msra.mxu0 %v9711_v2 }
 0x55c   : > { %v8628_v7 = vpop.f32.mrf.mxu0  ;;  %v5598_v15 = vpop.f32.mrf.mxu1  ;;  %7101 = vmatprep.subr.bf16.mxu0 %v12692_v50 }
 0x55e   : > { %v5599_v41 = vpop.f32.mrf.mxu1 }
 0x55f   : > { %7102 = vmatpush1.bf16.msra.mxu0 %v9712_v63 }
 0x560   : > { %7113 = vmatprep.subr.bf16.mxu0 %v12692_v50 }
 0x563   : > { %7114 = vmatpush2.bf16.msra.mxu0 %v9713_v32 }
 0x564   : > { %7115 = vmatprep.subr.bf16.mxu0 %v12692_v50 }
 0x567   : > { %7116 = vmatpush2.bf16.msra.mxu0 %v9714_v62  ;;  %v7128_v62 = vld [vmem:[%s12660_s6] sm:$0x1] }
 0x568   : > { %7117 = vmatprep.subr.bf16.mxu0 %v12692_v50 }
 0x56b   : > { %7118 = vmatpush2.bf16.msra.mxu0 %v9715_v48 }
 0x56e   : > { %7120 = vmatmul.mubr.bf16.vlgmr.msra.gmra.mxu0 %v6874_v35 }
 0x576   : > { %v8646_v8 = vpop.f32.mrf.mxu0 }
 0x578   : > { %v8647_v4 = vpop.f32.mrf.mxu0 }
 0x579   : > { %v8648_v19 = vadd.f32 %v8647_v4, %v8646_v8 }
 0x57a   : > { %v8649_v49 = vpop.f32.mrf.mxu0 }
 0x57b   : > { %v5803_v0 = vadd.f32 %v8648_v19, %v5596_v29 }
 0x57c   : > { %v8650_v40 = vpop.f32.mrf.mxu0 }
 0x584   : > { %v5842_v52 = vpop.f32.mrf.mxu1 }
 0x585   : > { %v5843_v38 = vadd.f32 %v5842_v52, %v5803_v0  ;;  %v7148_v0 = vld [vmem:[%s12662_s8] sm:$0x1] }
 0x586   : > { %v5844_v44 = vpop.f32.mrf.mxu1 }
 0x588   : > { %v5845_v58 = vpop.f32.mrf.mxu1 }
 0x58a   : > { %v5846_v50 = vpop.f32.mrf.mxu1 }
 0x596   : > { %v8668_v12 = vpop.f32.mrf.mxu0 }
 0x598   : > { %v8669_v34 = vpop.f32.mrf.mxu0 }
 0x599   : > { %v8670_v18 = vadd.f32 %v8669_v34, %v8668_v12 }
 0x59a   : > { %v8671_v11 = vpop.f32.mrf.mxu0 }
 0x59c   : > { %v8672_v3 = vpop.f32.mrf.mxu0 }
 0x5b0   : > { %v6161_v21 = vpop.f32.mrf.mxu1 }
 0x5b1   : > { %v6162_v26 = vadd.f32 %v8670_v18, %v6161_v21 }
 0x5b2   : > { %v6163_v47 = vpop.f32.mrf.mxu1 }
 0x5b3   : > { %v6167_v61 = vadd.f32 %v6162_v26, %v5843_v38 }
 0x5b4   : > { %v6164_v54 = vpop.f32.mrf.mxu1 }
 0x5b6   : > { %v6165_v24 = vpop.f32.mrf.mxu1  ;;  %v8690_v59 = vpop.f32.mrf.mxu0 }
 0x5b8   : > { %v8691_v17 = vpop.f32.mrf.mxu0 }
 0x5b9   : > { %v8692_v30 = vadd.f32 %v8691_v17, %v8690_v59 }
 0x5ba   : > { %v8693_v25 = vpop.f32.mrf.mxu0 }
 0x5bc   : > { %v8694_v43 = vpop.f32.mrf.mxu0 }
 0x5d0   : > { %v8712_v51 = vpop.f32.mrf.mxu1 }
 0x5d2   : > { %v8713_v53 = vpop.f32.mrf.mxu1 }
 0x5d3   : > { %v8714_v27 = vadd.f32 %v8713_v53, %v8712_v51 }
 0x5d4   : > { %v8715_v13 = vpop.f32.mrf.mxu1 }
 0x5d6   : > { %v8716_v45 = vpop.f32.mrf.mxu1 }
 0x5e2   : > { %v6481_v23 = vpop.f32.mrf.mxu0 }
 0x5e3   : > { %v6482_v6 = vadd.f32 %v8692_v30, %v6481_v23 }
 0x5e4   : > { %v6483_v42 = vpop.f32.mrf.mxu0 }
 0x5e5   : > { %v6487_v31 = vadd.f32 %v6482_v6, %v6167_v61 }
 0x5e6   : > { %v6484_v36 = vpop.f32.mrf.mxu0 }
 0x5e8   : > { %v6485_v16 = vpop.f32.mrf.mxu0 }
 0x5fc   : > { %v6801_v39 = vpop.f32.mrf.mxu1 }
 0x5fd   : > { %v6802_v2 = vadd.f32 %v8714_v27, %v6801_v39 }
 0x5fe   : > { %v6803_v5 = vpop.f32.mrf.mxu1 }
 0x5ff   : > { %v6807_v28 = vadd.f32 %v6802_v2, %v6487_v31 }
 0x600   : > { %v6804_v57 = vpop.f32.mrf.mxu1 }
 0x602   : > { %v6805_v1 = vpop.f32.mrf.mxu1  ;;  %v8734_v60 = vpop.f32.mrf.mxu0 }
 0x604   : > { %v8735_v29 = vpop.f32.mrf.mxu0 }
 0x605   : > { %v8736_v15 = vadd.f32 %v8735_v29, %v8734_v60 }
 0x606   : > { %v8737_v63 = vpop.f32.mrf.mxu0 }
 0x608   : > { %v8738_v7 = vpop.f32.mrf.mxu0 }
 0x62e   : > { %v7121_v41 = vpop.f32.mrf.mxu0 }
 0x62f   : > { %v7122_v32 = vadd.f32 %v8736_v15, %v7121_v41 }
 0x630   : > { %v7123_v48 = vpop.f32.mrf.mxu0 }
 0x631   : > { %v7127_v46 = vadd.f32 %v7122_v32, %v6807_v28 }
 0x632   : > { %v7124_v35 = vpop.f32.mrf.mxu0 }
 0x633   : > { %v7129_v8 = vadd.f32 %v7128_v62, %v7127_v46 }
 0x634   : > { %v7125_v4 = vpop.f32.mrf.mxu0 }
 0x635   : > { %v7130_v19 = vmax.f32 %v7129_v8, 0.0 }
 0x637   : > { %v7131_v49 = vpack.c.bf16 %v7130_v19, %v7130_v19 }
 0x639   : > { %8766 = vmatmul.mubr.bf16.vlgmr.msra.gmra.mxu1 %v7131_v49 }
 0x6f9   : > { %v7231_v40 = vpop.f32.mrf.mxu1 }
 0x6fa   : > { %v7232_v52 = vadd.f32 %v7231_v40, %v7148_v0 }
 0x6fb   : > { %v8767_v38 = vpop.f32.mrf.mxu1 }
 0x6fc   : > { %v7237_v44 = vmax.f32 %v7232_v52, 0.0 }
 0x6fd   : > { %v7234_v58 = vpop.f32.mrf.mxu1 }
 0x6fe   : > { %7239 = vst.msk [vmem:[%s324_s24] sm:$0x1] %vm7238_vm8, %v7237_v44 }
 0x6ff   : > { %v8768_v56 = vpop.f32.mrf.mxu1 }
 0x700   : > { %9737 = shalt.err (!%p9734_p3)
}
 0x701   : > { %s9738_s23 = scalar_lea.hbm %s12613_s14, 16  ;;  %s9742_s24 = scalar_lea.hbm %s12663_s9, 32 }
 0x702   : > { %p9739_p4 = scmp.ne.s32.totalorder %s12613_s14, %s9738_s23  ;;  %p9743_p9 = scmp.lt.s32.totalorder %s12613_s14, %s12663_s9 }
 0x703   : > { %p9744_p10 = scmp.lt.s32.totalorder %s9742_s24, %s9738_s23 }
 0x704   : > { %p9740_p7 = pnand %p9739_p4, %p9881_p5 }
 0x705   : > { %p9745_p11 = por %p9744_p10, %p9743_p9 }
 0x706   : > { %p9741_p8 = pneg %p9740_p7 }
 0x708   : > { %p9746_p12 = pnand %p9745_p11, %p9741_p8 }
 0x70a   : > { %9749 = shalt.err (!%p9746_p12)
}
 0x70b   : > { %8769 = dma.vmem_to_hbm [thread:$0]  (%p9881_p5), %s12615_s25, 16, %s12613_s14, %s7241_s13  }
 0x70c PF: > { %p8775_p13 = scmp.ge.s32.totalorder %s9784_s12, 2  ;;  %s7265_s21 = sand.u32 1, %s9772_s30  }
 0x70d   : > { %s7266_s16 = scalar_lea.sflag [#allocation7], %s7265_s21 }
 0x70e   : > { %p8772_p0 = pnand %p8775_p13, %p9885_p6 }
 0x710   : > { %p8773_p1 = pneg %p8772_p0 }
 0x712   : > { %9767 = dma.done.wait (%p8773_p1), %s7266_s16, 16  }
 0x713   : > { %9769 = vsyncadd (%p8773_p1), %s7266_s16, 4294967280  ;;  %p19_p2 = scmp.ge.s32.totalorder %s9868_s15, 4   ;;  %s12693_s30 = smov %s9776_s10 }
 0x714   : > { %s12694_s10 = smov %s9780_s11  ;;  %s12695_s11 = smov %s9879_s18 }
 0x715   : > { %s12696_s12 = smov %s9868_s15  ;;  %21 = sbr.rel (!%p19_p2) target bundleno = 3 (0x3), region = 140 }
 0x71a   :  { %7270 = vsyncpa [#allocation7], 1 }
 0x71b   :  { %7272 = vsyncpa [#allocation7 + $0x1], 1 }

</bundles_post_ra>
